<compile_context>
chip_gen: v6e
topology: v6e:2x2x1
jax: 0.10.0
libtpu: 0.0.40
codegen_flags: <defaults>
</compile_context>

<pallas_src>
import numpy as np
import jax
import jax.numpy as jnp
from jax.experimental import pallas as pl
from jax.experimental.pallas import tpu as pltpu


# ----------------------------------------------------------------------------
# Fused encoder kernel: one batch tile per grid step, 4 dense GEMMs
# ----------------------------------------------------------------------------
def _encoder_kernel(x_ref, t1_ref, b1_ref, t2_ref, b2_ref, t3_ref, b3_ref,
                    wl_ref, bl_ref, o_ref):
    f32, bf16 = jnp.float32, jnp.bfloat16

    x = x_ref[...]                                                      # (Bt, D0) bf16

    # conv1 (as Toeplitz GEMM) + bias + ReLU
    a1 = jnp.dot(x, t1_ref[...], preferred_element_type=f32)            # (Bt, D1) f32
    a1 = jnp.maximum(a1 + b1_ref[...], 0.0).astype(bf16)

    # conv2 + bias + ReLU
    a2 = jnp.dot(a1, t2_ref[...], preferred_element_type=f32)           # (Bt, D2)
    a2 = jnp.maximum(a2 + b2_ref[...], 0.0).astype(bf16)

    # conv3 + bias + ReLU
    a3 = jnp.dot(a2, t3_ref[...], preferred_element_type=f32)           # (Bt, D3)
    a3 = jnp.maximum(a3 + b3_ref[...], 0.0).astype(bf16)

    # Flatten (already CHW-flattened) + Linear
    out = jnp.dot(a3, wl_ref[...], preferred_element_type=f32) + bl_ref[...]
    o_ref[...] = out.astype(o_ref.dtype)                                # (Bt, Cout) lane-dense


# ----------------------------------------------------------------------------
# Init-time parameter folding (zero per-forward cost)
# ----------------------------------------------------------------------------
def _conv_toeplitz(w, b, hin, win, stride):
    """Dense Toeplitz matrix of a VALID strided conv, CHW-flattened in and out.
    Returns T (cin*hin*win, cout*ho*wo), bias (cout*ho*wo,), ho, wo."""
    w = np.asarray(w, np.float32)
    b = np.asarray(b, np.float32)
    cout, cin, k, _ = w.shape
    ho = (hin - k) // stride + 1
    wo = (win - k) // stride + 1
    T = np.zeros((cin * hin * win, cout * ho * wo), np.float32)
    co_cols = np.arange(cout) * (ho * wo)
    for oy in range(ho):
        for ox in range(wo):
            out_cols = co_cols + oy * wo + ox
            for ci in range(cin):
                for i in range(k):
                    for j in range(k):
                        in_row = (ci * hin * win
                                  + (stride * oy + i) * win
                                  + (stride * ox + j))
                        T[in_row, out_cols] = w[:, ci, i, j]
    bias = np.repeat(b, ho * wo)
    return T, bias, ho, wo


def fold_params(torch_params, obs_shape):
    """Fold conv weights into dense Toeplitz GEMM matrices; transpose the Linear."""
    (w1, b1, s1), (w2, b2, s2), (w3, b3, s3) = torch_params["convs"]
    wl, bl = torch_params["mid"]
    cin, h, w = obs_shape

    t1, tb1, h1, w1o = _conv_toeplitz(w1, b1, h, w, s1)
    t2, tb2, h2, w2o = _conv_toeplitz(w2, b2, h1, w1o, s2)
    t3, tb3, h3, w3o = _conv_toeplitz(w3, b3, h2, w2o, s3)

    wl_np = np.asarray(wl, np.float32)
    c_out, flat = wl_np.shape
    assert flat == t3.shape[1], (flat, t3.shape)

    bf16, f32 = jnp.bfloat16, jnp.float32
    return {
        "t1": jnp.asarray(t1, bf16), "b1": jnp.asarray(tb1, f32).reshape(1, -1),
        "t2": jnp.asarray(t2, bf16), "b2": jnp.asarray(tb2, f32).reshape(1, -1),
        "t3": jnp.asarray(t3, bf16), "b3": jnp.asarray(tb3, f32).reshape(1, -1),
        # torch Flatten on NCHW == CHW-flatten == T3's output layout, so only a
        # transpose is needed here.
        "wl": jnp.asarray(wl_np.T, bf16),
        "bl": jnp.asarray(np.asarray(bl, np.float32), f32).reshape(1, -1),
    }


def _round_up(x, m):
    return ((x + m - 1) // m) * m


# ----------------------------------------------------------------------------
# Forward wrapper: batch-tiled single pallas_call
# ----------------------------------------------------------------------------
@jax.jit
def conv_encoder_forward(x_nchw, params):
    n = x_nchw.shape[0]
    d0, d1 = params["t1"].shape
    d2 = params["t2"].shape[1]
    d3 = params["t3"].shape[1]
    c_out = params["bl"].shape[1]

    # Only wrapper glue: CHW-flatten + bf16 cast (no transpose / im2col).
    x = x_nchw.reshape(n, -1).astype(jnp.bfloat16)                     # (N, D0)

    # Batch tile: >=8 rows (unmasked stores), up to 256 (fills the v6e/v7x MXU M-dim);
    # pad the batch so the grid divides evenly.
    bt = min(256, _round_up(n, 8))
    n_pad = _round_up(n, bt)
    if n_pad != n:
        x = jnp.pad(x, ((0, n_pad - n), (0, 0)))
    grid = (n_pad // bt,)

    flops = 2 * n_pad * (d0 * d1 + d1 * d2 + d2 * d3 + d3 * c_out)
    bytes_accessed = int(x.size) * 2 + n_pad * c_out * 4
    for a in params.values():
        bytes_accessed += int(a.size) * a.dtype.itemsize

    const2 = lambda b: (0, 0)
    out = pl.pallas_call(
        _encoder_kernel,
        out_shape=jax.ShapeDtypeStruct((n_pad, c_out), jnp.float32),
        grid=grid,
        in_specs=[
            pl.BlockSpec((bt, d0), lambda b: (b, 0)),                   # batch tile
            pl.BlockSpec(params["t1"].shape, const2),                   # weights: constant
            pl.BlockSpec(params["b1"].shape, const2),                   # block index ->
            pl.BlockSpec(params["t2"].shape, const2),                   # DMA'd once,
            pl.BlockSpec(params["b2"].shape, const2),                   # reused by every
            pl.BlockSpec(params["t3"].shape, const2),                   # grid step
            pl.BlockSpec(params["b3"].shape, const2),
            pl.BlockSpec(params["wl"].shape, const2),
            pl.BlockSpec(params["bl"].shape, const2),
        ],
        out_specs=pl.BlockSpec((bt, c_out), lambda b: (b, 0)),          # >=8x128 dense store
        compiler_params=pltpu.CompilerParams(
            dimension_semantics=("parallel",),        # shard batch tiles across TCs
            vmem_limit_bytes=32 * 1024 * 1024,
        ),
        cost_estimate=pl.CostEstimate(flops=flops, transcendentals=0,
                                      bytes_accessed=bytes_accessed),
    )(x, params["t1"], params["b1"], params["t2"], params["b2"],
      params["t3"], params["b3"], params["wl"], params["bl"])
    return out[:n]


# ----------------------------------------------------------------------------
# Parameter init (PyTorch-native layouts) and pure-JAX f32 reference
# ----------------------------------------------------------------------------
def init_params(key, obs_shape, hidden_size_list=(32, 64, 128),
                kernel_size=(3, 3, 3), stride=(2, 2, 2)):
    cin, h, w = obs_shape
    convs = []
    in_c = cin
    for i in range(len(kernel_size)):
        key, k1, k2 = jax.random.split(key, 3)
        cout, k, s = hidden_size_list[i], kernel_size[i], stride[i]
        scale = 1.0 / np.sqrt(in_c * k * k)
        w_conv = jax.random.uniform(k1, (cout, in_c, k, k), jnp.float32, -scale, scale)
        b_conv = jax.random.uniform(k2, (cout,), jnp.float32, -scale, scale)
        convs.append((w_conv, b_conv, s))
        in_c = cout
        h = (h - k) // s + 1
        w = (w - k) // s + 1
    flatten_size = in_c * h * w
    key, k1, k2 = jax.random.split(key, 3)
    scale = 1.0 / np.sqrt(flatten_size)
    w_lin = jax.random.uniform(k1, (hidden_size_list[-1], flatten_size),
                               jnp.float32, -scale, scale)
    b_lin = jax.random.uniform(k2, (hidden_size_list[-1],), jnp.float32, -scale, scale)
    return {"convs": convs, "mid": (w_lin, b_lin)}


def reference_forward(x_nchw, torch_params):
    """Pure-JAX f32 reference with PyTorch semantics (tolerance check only)."""
    x = x_nchw.astype(jnp.float32)
    for (w, b, s) in torch_params["convs"]:
        x = jax.lax.conv_general_dilated(
            x, w, window_strides=(s, s), padding="VALID",
            dimension_numbers=("NCHW", "OIHW", "NCHW"))
        x = jnp.maximum(x + b.reshape(1, -1, 1, 1), 0.0)
    w_lin, b_lin = torch_params["mid"]
    return x.reshape(x.shape[0], -1) @ w_lin.T + b_lin


if __name__ == "__main__":
    batch = 2
    obs_shape = (4, 16, 16)            # (C, H, W)
    hidden_size_list = (32, 64, 128)

    key = jax.random.PRNGKey(0)
    key, pkey, xkey = jax.random.split(key, 3)
    torch_params = init_params(pkey, obs_shape, hidden_size_list)
    params = fold_params(torch_params, obs_shape)

    x = jax.random.normal(xkey, (batch,) + obs_shape, dtype=jnp.float32)

    out = conv_encoder_forward(x, params)
    out = jax.block_until_ready(out)

    assert out.shape == (batch, hidden_size_list[-1]), out.shape
    assert out.dtype == jnp.float32
    assert bool(jnp.all(jnp.isfinite(out)))

    # Tolerance check vs f32 reference (kernel uses bf16 operands, f32 accumulation).
    ref = reference_forward(x, torch_params)
    max_err = float(jnp.max(jnp.abs(out - ref)))
    assert max_err < 5e-2, f"max abs err vs f32 reference: {max_err}"

    print("KERNEL_OK")
</pallas_src>

<mosaic_0001>
module attributes {stable_mosaic.version = 11 : i64} {
  func.func @_encoder_kernel(%arg0: i32, %arg1: memref<8x1024xbf16, #tpu.memory_space<vmem>>, %arg2: memref<1024x1568xbf16, #tpu.memory_space<vmem>>, %arg3: memref<1x1568xf32, #tpu.memory_space<vmem>>, %arg4: memref<1568x576xbf16, #tpu.memory_space<vmem>>, %arg5: memref<1x576xf32, #tpu.memory_space<vmem>>, %arg6: memref<576x128xbf16, #tpu.memory_space<vmem>>, %arg7: memref<1x128xf32, #tpu.memory_space<vmem>>, %arg8: memref<128x128xbf16, #tpu.memory_space<vmem>>, %arg9: memref<1x128xf32, #tpu.memory_space<vmem>>, %arg10: memref<8x128xf32, #tpu.memory_space<vmem>>) attributes {dimension_semantics = [#tpu.dimension_semantics<parallel>], iteration_bounds = array<i64: 1>, scalar_prefetch = 0 : i64, scratch_operands = 0 : i64, tpu.core_type = #tpu.core_type<tc>, window_params = [{transform_indices = @transform_0, window_bounds = array<i64: 8, 1024>}, {pipeline_mode = #tpu.pipeline_mode<synchronous>, transform_indices = @transform_1, window_bounds = array<i64: 1024, 1568>}, {pipeline_mode = #tpu.pipeline_mode<synchronous>, transform_indices = @transform_2, window_bounds = array<i64: 1, 1568>}, {pipeline_mode = #tpu.pipeline_mode<synchronous>, transform_indices = @transform_3, window_bounds = array<i64: 1568, 576>}, {pipeline_mode = #tpu.pipeline_mode<synchronous>, transform_indices = @transform_4, window_bounds = array<i64: 1, 576>}, {pipeline_mode = #tpu.pipeline_mode<synchronous>, transform_indices = @transform_5, window_bounds = array<i64: 576, 128>}, {pipeline_mode = #tpu.pipeline_mode<synchronous>, transform_indices = @transform_6, window_bounds = array<i64: 1, 128>}, {pipeline_mode = #tpu.pipeline_mode<synchronous>, transform_indices = @transform_7, window_bounds = array<i64: 128, 128>}, {pipeline_mode = #tpu.pipeline_mode<synchronous>, transform_indices = @transform_8, window_bounds = array<i64: 1, 128>}, {transform_indices = @transform_9, window_bounds = array<i64: 8, 128>}]} {
    %c0 = arith.constant 0 : index
    %c0_0 = arith.constant 0 : index
    %0 = vector.load %arg1[%c0, %c0_0] : memref<8x1024xbf16, #tpu.memory_space<vmem>>, vector<8x1024xbf16>
    %c0_1 = arith.constant 0 : index
    %c0_2 = arith.constant 0 : index
    %1 = vector.load %arg2[%c0_1, %c0_2] : memref<1024x1568xbf16, #tpu.memory_space<vmem>>, vector<1024x1568xbf16>
    %cst = arith.constant dense<0.000000e+00> : vector<8x1568xf32>
    %2 = tpu.matmul %0, %1, %cst {dimension_numbers = #tpu.dot_dimension_numbers<[1], [0], [0], [1], [0, 0, 1, 1], [], []>} : vector<8x1024xbf16>, vector<1024x1568xbf16>, vector<8x1568xf32> -> vector<8x1568xf32>
    %c0_3 = arith.constant 0 : index
    %c0_4 = arith.constant 0 : index
    %3 = vector.load %arg3[%c0_3, %c0_4] : memref<1x1568xf32, #tpu.memory_space<vmem>>, vector<1x1568xf32>
    %4 = vector.broadcast %3 : vector<1x1568xf32> to vector<8x1568xf32>
    %5 = arith.addf %2, %4 : vector<8x1568xf32>
    %cst_5 = arith.constant 0.000000e+00 : f32
    %6 = vector.broadcast %cst_5 : f32 to vector<8x1568xf32>
    %7 = arith.maximumf %5, %6 : vector<8x1568xf32>
    %8 = arith.truncf %7 : vector<8x1568xf32> to vector<8x1568xbf16>
    %c0_6 = arith.constant 0 : index
    %c0_7 = arith.constant 0 : index
    %9 = vector.load %arg4[%c0_6, %c0_7] : memref<1568x576xbf16, #tpu.memory_space<vmem>>, vector<1568x576xbf16>
    %cst_8 = arith.constant dense<0.000000e+00> : vector<8x576xf32>
    %10 = tpu.matmul %8, %9, %cst_8 {dimension_numbers = #tpu.dot_dimension_numbers<[1], [0], [0], [1], [0, 0, 1, 1], [], []>} : vector<8x1568xbf16>, vector<1568x576xbf16>, vector<8x576xf32> -> vector<8x576xf32>
    %c0_9 = arith.constant 0 : index
    %c0_10 = arith.constant 0 : index
    %11 = vector.load %arg5[%c0_9, %c0_10] : memref<1x576xf32, #tpu.memory_space<vmem>>, vector<1x576xf32>
    %12 = vector.broadcast %11 : vector<1x576xf32> to vector<8x576xf32>
    %13 = arith.addf %10, %12 : vector<8x576xf32>
    %cst_11 = arith.constant 0.000000e+00 : f32
    %14 = vector.broadcast %cst_11 : f32 to vector<8x576xf32>
    %15 = arith.maximumf %13, %14 : vector<8x576xf32>
    %16 = arith.truncf %15 : vector<8x576xf32> to vector<8x576xbf16>
    %c0_12 = arith.constant 0 : index
    %c0_13 = arith.constant 0 : index
    %17 = vector.load %arg6[%c0_12, %c0_13] : memref<576x128xbf16, #tpu.memory_space<vmem>>, vector<576x128xbf16>
    %cst_14 = arith.constant dense<0.000000e+00> : vector<8x128xf32>
    %18 = tpu.matmul %16, %17, %cst_14 {dimension_numbers = #tpu.dot_dimension_numbers<[1], [0], [0], [1], [0, 0, 1, 1], [], []>} : vector<8x576xbf16>, vector<576x128xbf16>, vector<8x128xf32> -> vector<8x128xf32>
    %c0_15 = arith.constant 0 : index
    %c0_16 = arith.constant 0 : index
    %19 = vector.load %arg7[%c0_15, %c0_16] : memref<1x128xf32, #tpu.memory_space<vmem>>, vector<1x128xf32>
    %20 = vector.broadcast %19 : vector<1x128xf32> to vector<8x128xf32>
    %21 = arith.addf %18, %20 : vector<8x128xf32>
    %cst_17 = arith.constant 0.000000e+00 : f32
    %22 = vector.broadcast %cst_17 : f32 to vector<8x128xf32>
    %23 = arith.maximumf %21, %22 : vector<8x128xf32>
    %24 = arith.truncf %23 : vector<8x128xf32> to vector<8x128xbf16>
    %c0_18 = arith.constant 0 : index
    %c0_19 = arith.constant 0 : index
    %25 = vector.load %arg8[%c0_18, %c0_19] : memref<128x128xbf16, #tpu.memory_space<vmem>>, vector<128x128xbf16>
    %cst_20 = arith.constant dense<0.000000e+00> : vector<8x128xf32>
    %26 = tpu.matmul %24, %25, %cst_20 {dimension_numbers = #tpu.dot_dimension_numbers<[1], [0], [0], [1], [0, 0, 1, 1], [], []>} : vector<8x128xbf16>, vector<128x128xbf16>, vector<8x128xf32> -> vector<8x128xf32>
    %c0_21 = arith.constant 0 : index
    %c0_22 = arith.constant 0 : index
    %27 = vector.load %arg9[%c0_21, %c0_22] : memref<1x128xf32, #tpu.memory_space<vmem>>, vector<1x128xf32>
    %28 = vector.broadcast %27 : vector<1x128xf32> to vector<8x128xf32>
    %29 = arith.addf %26, %28 : vector<8x128xf32>
    %c0_23 = arith.constant 0 : index
    %c0_24 = arith.constant 0 : index
    %30 = vector.load %arg10[%c0_23, %c0_24] : memref<8x128xf32, #tpu.memory_space<vmem>>, vector<8x128xf32>
    tpu.vector_store %arg10[%c0_23, %c0_24], %29 {strides = array<i32>} : memref<8x128xf32, #tpu.memory_space<vmem>>, vector<8x128xf32>,
    return
  }
  func.func @transform_0(%arg0: i32) -> (i32, i32) {
    %c0_i32 = arith.constant 0 : i32
    %c0_i32_0 = arith.constant 0 : i32
    return %arg0, %c0_i32 : i32, i32
  }
  func.func @transform_1(%arg0: i32) -> (i32, i32) {
    %c0_i32 = arith.constant 0 : i32
    %c0_i32_0 = arith.constant 0 : i32
    %c0_i32_1 = arith.constant 0 : i32
    return %c0_i32, %c0_i32_0 : i32, i32
  }
  func.func @transform_2(%arg0: i32) -> (i32, i32) {
    %c0_i32 = arith.constant 0 : i32
    %c0_i32_0 = arith.constant 0 : i32
    %c0_i32_1 = arith.constant 0 : i32
    return %c0_i32, %c0_i32_0 : i32, i32
  }
  func.func @transform_3(%arg0: i32) -> (i32, i32) {
    %c0_i32 = arith.constant 0 : i32
    %c0_i32_0 = arith.constant 0 : i32
    %c0_i32_1 = arith.constant 0 : i32
    return %c0_i32, %c0_i32_0 : i32, i32
  }
  func.func @transform_4(%arg0: i32) -> (i32, i32) {
    %c0_i32 = arith.constant 0 : i32
    %c0_i32_0 = arith.constant 0 : i32
    %c0_i32_1 = arith.constant 0 : i32
    return %c0_i32, %c0_i32_0 : i32, i32
  }
  func.func @transform_5(%arg0: i32) -> (i32, i32) {
    %c0_i32 = arith.constant 0 : i32
    %c0_i32_0 = arith.constant 0 : i32
    %c0_i32_1 = arith.constant 0 : i32
    return %c0_i32, %c0_i32_0 : i32, i32
  }
  func.func @transform_6(%arg0: i32) -> (i32, i32) {
    %c0_i32 = arith.constant 0 : i32
    %c0_i32_0 = arith.constant 0 : i32
    %c0_i32_1 = arith.constant 0 : i32
    return %c0_i32, %c0_i32_0 : i32, i32
  }
  func.func @transform_7(%arg0: i32) -> (i32, i32) {
    %c0_i32 = arith.constant 0 : i32
    %c0_i32_0 = arith.constant 0 : i32
    %c0_i32_1 = arith.constant 0 : i32
    return %c0_i32, %c0_i32_0 : i32, i32
  }
  func.func @transform_8(%arg0: i32) -> (i32, i32) {
    %c0_i32 = arith.constant 0 : i32
    %c0_i32_0 = arith.constant 0 : i32
    %c0_i32_1 = arith.constant 0 : i32
    return %c0_i32, %c0_i32_0 : i32, i32
  }
  func.func @transform_9(%arg0: i32) -> (i32, i32) {
    %c0_i32 = arith.constant 0 : i32
    %c0_i32_0 = arith.constant 0 : i32
    return %arg0, %c0_i32 : i32, i32
  }
}

</mosaic_0001>

<bundles_post_ra>
// kernel: conv_encoder_forward.1
= control target key start
LH: loop header
LB: loop body
LE: loop exit
PB: predicated region body
PF: predicated region fallthrough
CT: control target
= control target key end

     0   :  { %vm9587_vm0 = vcmask 261120   ;;  %vm14657_vm1 = vmmov 0   ;;  %vm10750_vm2 = vcmask 523264   ;;  %s19189_s1 = inlined_call_operand.vmem [shape: bf16[1024,1568], index: 1, kind: input, shape index: {}]   ;;  %s19190_s0 = inlined_call_operand.vmem [shape: bf16[8,1024], index: 0, kind: input, shape index: {}]   ;;  %s19191_s2 = inlined_call_operand.vmem [shape: f32[1,1568], index: 2, kind: input, shape index: {}]   ;;  %s19192_s3 = inlined_call_operand.vmem [shape: bf16[1568,576], index: 3, kind: input, shape index: {}]   ;;  %s19193_s4 = inlined_call_operand.vmem [shape: f32[1,576], index: 4, kind: input, shape index: {}]   ;;  %s19194_s5 = inlined_call_operand.vmem [shape: bf16[576,128], index: 5, kind: input, shape index: {}]   ;;  %s19195_s7 = inlined_call_operand.vmem [shape: bf16[128,128], index: 7, kind: input, shape index: {}]   ;;  %s19196_s6 = inlined_call_operand.vmem [shape: f32[1,128], index: 6, kind: input, shape index: {}]   ;;  %s19197_s8 = inlined_call_operand.vmem [shape: f32[1,128], index: 8, kind: input, shape index: {}]   ;;  %s19198_s9 = inlined_call_operand.vmem [shape: f32[8,128], index: 9, kind: output, shape index: {}]  }
   0x1   :  { %v12696_v0 = vld [vmem:[%s19189_s1 + $0x2dc] ss:$52 sps:$4 sm:$0xff]   ;;  %v12700_v2 = vld [vmem:[%s19189_s1 + $0x2d8] ss:$52 sps:$4 sm:$0xff]   ;;  %v12702_v4 = vld [vmem:[%s19189_s1 + $0x274] ss:$52 sps:$4 sm:$0xff]  }
   0x2   :  { %v12698_v1 = vld [vmem:[%s19189_s1 + $0x95c] ss:$52 sps:$4 sm:$0xff]   ;;  %5254 = vmatprep.subr.bf16.mxu0 %v12696_v0  ;;  %v12701_v3 = vld [vmem:[%s19189_s1 + $0x958] ss:$52 sps:$4 sm:$0xff]   ;;  %v12704_v5 = vld [vmem:[%s19189_s1 + $0x8f4] ss:$52 sps:$4 sm:$0xff]  }
   0x3   :  { %5295 = vmatprep.subr.bf16.mxu1 %v12698_v1  ;;  %5255 = vmatpush1.bf16.msra.mxu0 %v12700_v2  ;;  %v12706_v6 = vld [vmem:[%s19189_s1 + $0x270] ss:$52 sps:$4 sm:$0xff]   ;;  %v12708_v8 = vld [vmem:[%s19189_s1 + $0x20c] ss:$52 sps:$4 sm:$0xff]   ;;  %v12712_v10 = vld [vmem:[%s19189_s1 + $0x208] ss:$52 sps:$4 sm:$0xff]  }
   0x4   :  { %5296 = vmatpush1.bf16.msra.mxu1 %v12701_v3  ;;  %5256 = vmatprep.subr.bf16.mxu0 %v12702_v4  ;;  %v12707_v7 = vld [vmem:[%s19189_s1 + $0x8f0] ss:$52 sps:$4 sm:$0xff]   ;;  %v12710_v9 = vld [vmem:[%s19189_s1 + $0x88c] ss:$52 sps:$4 sm:$0xff]   ;;  %v12713_v11 = vld [vmem:[%s19189_s1 + $0x888] ss:$52 sps:$4 sm:$0xff]  }
   0x5   :  { %5297 = vmatprep.subr.bf16.mxu1 %v12704_v5  ;;  %v12714_v12 = vld [vmem:[%s19189_s1 + $0x1a4] ss:$52 sps:$4 sm:$0xff]   ;;  %v12718_v14 = vld [vmem:[%s19189_s1 + $0x1a0] ss:$52 sps:$4 sm:$0xff]   ;;  %v12720_v16 = vld [vmem:[%s19189_s1 + $0x13c] ss:$52 sps:$4 sm:$0xff]  }
   0x6   :  { %v12716_v13 = vld [vmem:[%s19189_s1 + $0x824] ss:$52 sps:$4 sm:$0xff]   ;;  %v12719_v15 = vld [vmem:[%s19189_s1 + $0x820] ss:$52 sps:$4 sm:$0xff]   ;;  %v12722_v17 = vld [vmem:[%s19189_s1 + $0x7bc] ss:$52 sps:$4 sm:$0xff]  }
   0x7   :  { %5257 = vmatpush1.bf16.msra.mxu0 %v12706_v6  ;;  %v12724_v18 = vld [vmem:[%s19189_s1 + $0x138] ss:$52 sps:$4 sm:$0xff]   ;;  %v12726_v20 = vld [vmem:[%s19189_s1 + $0xd4] ss:$52 sps:$4 sm:$0xff]   ;;  %v12730_v22 = vld [vmem:[%s19189_s1 + $0xd0] ss:$52 sps:$4 sm:$0xff]  }
   0x8   :  { %5298 = vmatpush1.bf16.msra.mxu1 %v12707_v7  ;;  %5258 = vmatprep.subr.bf16.mxu0 %v12708_v8  ;;  %v12725_v19 = vld [vmem:[%s19189_s1 + $0x7b8] ss:$52 sps:$4 sm:$0xff]   ;;  %v12728_v21 = vld [vmem:[%s19189_s1 + $0x754] ss:$52 sps:$4 sm:$0xff]   ;;  %v12731_v23 = vld [vmem:[%s19189_s1 + $0x750] ss:$52 sps:$4 sm:$0xff]  }
   0x9   :  { %5299 = vmatprep.subr.bf16.mxu1 %v12710_v9  ;;  %v12732_v24 = vld [vmem:[%s19189_s1 + $0x6c] ss:$52 sps:$4 sm:$0xff]   ;;  %v12736_v26 = vld [vmem:[%s19189_s1 + $0x68] ss:$52 sps:$4 sm:$0xff]   ;;  %v12738_v28 = vld [vmem:[%s19189_s1 + $0x4] ss:$52 sps:$4 sm:$0xff]  }
   0xa   :  { %v12734_v25 = vld [vmem:[%s19189_s1 + $0x6ec] ss:$52 sps:$4 sm:$0xff]   ;;  %v12737_v27 = vld [vmem:[%s19189_s1 + $0x6e8] ss:$52 sps:$4 sm:$0xff]   ;;  %v12740_v29 = vld [vmem:[%s19189_s1 + $0x684] ss:$52 sps:$4 sm:$0xff]  }
   0xb   :  { %5259 = vmatpush1.bf16.msra.mxu0 %v12712_v10  ;;  %v12742_v30 = vld [vmem:[%s19189_s1] ss:$52 sps:$4 sm:$0xff]   ;;  %v12744_v32 = vld [vmem:[%s19189_s1 + $0x61c] ss:$52 sps:$4 sm:$0xff]   ;;  %v12748_v34 = vld [vmem:[%s19189_s1 + $0x618] ss:$52 sps:$4 sm:$0xff]  }
   0xc   :  { %5300 = vmatpush1.bf16.msra.mxu1 %v12713_v11  ;;  %5260 = vmatprep.subr.bf16.mxu0 %v12714_v12  ;;  %v12743_v31 = vld [vmem:[%s19189_s1 + $0x680] ss:$52 sps:$4 sm:$0xff]   ;;  %v12746_v33 = vld [vmem:[%s19189_s1 + $0xc9c] ss:$52 sps:$4 sm:$0xff]   ;;  %v12749_v35 = vld [vmem:[%s19189_s1 + $0xc98] ss:$52 sps:$4 sm:$0xff]  }
   0xd   :  { %5301 = vmatprep.subr.bf16.mxu1 %v12716_v13  ;;  %v12750_v36 = vld [vmem:[%s19189_s1 + $0x5b4] ss:$52 sps:$4 sm:$0xff]   ;;  %v12754_v38 = vld [vmem:[%s19189_s1 + $0x5b0] ss:$52 sps:$4 sm:$0xff]   ;;  %v12756_v40 = vld [vmem:[%s19189_s1 + $0x54c] ss:$52 sps:$4 sm:$0xff]  }
   0xe   :  { %v12752_v37 = vld [vmem:[%s19189_s1 + $0xc34] ss:$52 sps:$4 sm:$0xff]   ;;  %v12755_v39 = vld [vmem:[%s19189_s1 + $0xc30] ss:$52 sps:$4 sm:$0xff]   ;;  %v12758_v41 = vld [vmem:[%s19189_s1 + $0xbcc] ss:$52 sps:$4 sm:$0xff]  }
   0xf   :  { %5261 = vmatpush1.bf16.msra.mxu0 %v12718_v14  ;;  %v12760_v42 = vld [vmem:[%s19189_s1 + $0x548] ss:$52 sps:$4 sm:$0xff]   ;;  %v12762_v44 = vld [vmem:[%s19189_s1 + $0x4e4] ss:$52 sps:$4 sm:$0xff]   ;;  %v12766_v49 = vld [vmem:[%s19189_s1 + $0x4e0] ss:$52 sps:$4 sm:$0xff]  }
  0x10   :  { %5302 = vmatpush1.bf16.msra.mxu1 %v12719_v15  ;;  %5262 = vmatprep.subr.bf16.mxu0 %v12720_v16  ;;  %v12761_v43 = vld [vmem:[%s19189_s1 + $0xbc8] ss:$52 sps:$4 sm:$0xff]   ;;  %v12764_v45 = vld [vmem:[%s19189_s1 + $0xb64] ss:$52 sps:$4 sm:$0xff]   ;;  %v12767_v50 = vld [vmem:[%s19189_s1 + $0xb60] ss:$52 sps:$4 sm:$0xff]  }
  0x11   :  { %5303 = vmatprep.subr.bf16.mxu1 %v12722_v17  ;;  %v33_v46 = vld [vmem:[%s19190_s0] sm:$0xff]  ;;  %v34_v48 = vld [vmem:[%s19190_s0 + $0x8] sm:$0xff]  ;;  %v12768_v52 = vld [vmem:[%s19189_s1 + $0x47c] ss:$52 sps:$4 sm:$0xff]  }
  0x12   :  { %v14849_v47 = vcombine.high %v33_v46, %v33_v46  ;;  %v14860_v51 = vcombine.high %v34_v48, %v34_v48  ;;  %v12770_v53 = vld [vmem:[%s19189_s1 + $0xafc] ss:$52 sps:$4 sm:$0xff]   ;;  %v12772_v54 = vld [vmem:[%s19189_s1 + $0x478] ss:$52 sps:$4 sm:$0xff]   ;;  %v12774_v56 = vld [vmem:[%s19189_s1 + $0x414] ss:$52 sps:$4 sm:$0xff]   ;;  %v14918_v6 = vcombine.low %v33_v46, %v33_v46  ;;  %v14920_v7 = vcombine.low %v34_v48, %v34_v48 }
  0x13   :  { %5263 = vmatpush1.bf16.msra.mxu0 %v12724_v18  ;;  %v12773_v55 = vld [vmem:[%s19189_s1 + $0xaf8] ss:$52 sps:$4 sm:$0xff]   ;;  %v12776_v57 = vld [vmem:[%s19189_s1 + $0xa94] ss:$52 sps:$4 sm:$0xff]   ;;  %v12778_v58 = vld [vmem:[%s19189_s1 + $0x410] ss:$52 sps:$4 sm:$0xff]  }
  0x14   :  { %5304 = vmatpush1.bf16.msra.mxu1 %v12725_v19  ;;  %5264 = vmatprep.subr.bf16.mxu0 %v12726_v20  ;;  %v12779_v59 = vld [vmem:[%s19189_s1 + $0xa90] ss:$52 sps:$4 sm:$0xff]   ;;  %v12780_v60 = vld [vmem:[%s19189_s1 + $0x3ac] ss:$52 sps:$4 sm:$0xff]   ;;  %v12784_v62 = vld [vmem:[%s19189_s1 + $0x3a8] ss:$52 sps:$4 sm:$0xff]  }
  0x15   :  { %5305 = vmatprep.subr.bf16.mxu1 %v12728_v21  ;;  %5286 = vmatprep.mubr.bf16.mxu0 %v14849_v47  ;;  %v12782_v61 = vld [vmem:[%s19189_s1 + $0xa2c] ss:$52 sps:$4 sm:$0xff]   ;;  %v12785_v63 = vld [vmem:[%s19189_s1 + $0xa28] ss:$52 sps:$4 sm:$0xff]   ;;  %v12786_v0 = vld [vmem:[%s19189_s1 + $0x344] ss:$52 sps:$4 sm:$0xff]  }
  0x16   :  { %5327 = vmatprep.mubr.bf16.mxu1 %v14860_v51  ;;  %v12788_v1 = vld [vmem:[%s19189_s1 + $0x9c4] ss:$52 sps:$4 sm:$0xff]   ;;  %v12790_v2 = vld [vmem:[%s19189_s1 + $0x340] ss:$52 sps:$4 sm:$0xff]   ;;  %v12798_v4 = vld [vmem:[%s19189_s1 + $0xfdc] ss:$52 sps:$4 sm:$0xff]  }
  0x17   :  { %5265 = vmatpush1.bf16.msra.mxu0 %v12730_v22  ;;  %v12791_v3 = vld [vmem:[%s19189_s1 + $0x9c0] ss:$52 sps:$4 sm:$0xff]   ;;  %v12801_v5 = vld [vmem:[%s19189_s1 + $0x165c] ss:$52 sps:$4 sm:$0xff]   ;;  %v12796_v8 = vld [vmem:[%s19189_s1 + $0xfd8] ss:$52 sps:$4 sm:$0xff]  }
  0x18   :  { %5306 = vmatpush1.bf16.msra.mxu1 %v12731_v23  ;;  %5266 = vmatprep.subr.bf16.mxu0 %v12732_v24  ;;  %v12799_v9 = vld [vmem:[%s19189_s1 + $0x1658] ss:$52 sps:$4 sm:$0xff]   ;;  %v12804_v10 = vld [vmem:[%s19189_s1 + $0xf74] ss:$52 sps:$4 sm:$0xff]   ;;  %v12802_v12 = vld [vmem:[%s19189_s1 + $0xf70] ss:$52 sps:$4 sm:$0xff]  }
  0x19   :  { %5307 = vmatprep.subr.bf16.mxu1 %v12734_v25  ;;  %v12807_v11 = vld [vmem:[%s19189_s1 + $0x15f4] ss:$52 sps:$4 sm:$0xff]   ;;  %v12805_v13 = vld [vmem:[%s19189_s1 + $0x15f0] ss:$52 sps:$4 sm:$0xff]   ;;  %v12810_v14 = vld [vmem:[%s19189_s1 + $0xf0c] ss:$52 sps:$4 sm:$0xff]  }
  0x1a   :  { %v12813_v15 = vld [vmem:[%s19189_s1 + $0x158c] ss:$52 sps:$4 sm:$0xff]   ;;  %v12808_v16 = vld [vmem:[%s19189_s1 + $0xf08] ss:$52 sps:$4 sm:$0xff]   ;;  %v12816_v18 = vld [vmem:[%s19189_s1 + $0xea4] ss:$52 sps:$4 sm:$0xff]  }
  0x1b   :  { %5267 = vmatpush1.bf16.msra.mxu0 %v12736_v26  ;;  %v12811_v17 = vld [vmem:[%s19189_s1 + $0x1588] ss:$52 sps:$4 sm:$0xff]   ;;  %v12819_v19 = vld [vmem:[%s19189_s1 + $0x1524] ss:$52 sps:$4 sm:$0xff]   ;;  %v12814_v20 = vld [vmem:[%s19189_s1 + $0xea0] ss:$52 sps:$4 sm:$0xff]  }
  0x1c   :  { %5308 = vmatpush1.bf16.msra.mxu1 %v12737_v27  ;;  %5268 = vmatprep.subr.bf16.mxu0 %v12738_v28  ;;  %v12817_v21 = vld [vmem:[%s19189_s1 + $0x1520] ss:$52 sps:$4 sm:$0xff]   ;;  %v12822_v22 = vld [vmem:[%s19189_s1 + $0xe3c] ss:$52 sps:$4 sm:$0xff]   ;;  %v12820_v24 = vld [vmem:[%s19189_s1 + $0xe38] ss:$52 sps:$4 sm:$0xff]  }
  0x1d   :  { %5309 = vmatprep.subr.bf16.mxu1 %v12740_v29  ;;  %v12825_v23 = vld [vmem:[%s19189_s1 + $0x14bc] ss:$52 sps:$4 sm:$0xff]   ;;  %v12823_v25 = vld [vmem:[%s19189_s1 + $0x14b8] ss:$52 sps:$4 sm:$0xff]   ;;  %v12828_v26 = vld [vmem:[%s19189_s1 + $0xdd4] ss:$52 sps:$4 sm:$0xff]  }
  0x1e   :  { %v12831_v27 = vld [vmem:[%s19189_s1 + $0x1454] ss:$52 sps:$4 sm:$0xff]   ;;  %v12826_v28 = vld [vmem:[%s19189_s1 + $0xdd0] ss:$52 sps:$4 sm:$0xff]  }
  0x1f   :  { %5269 = vmatpush1.bf16.msra.mxu0 %v12742_v30  ;;  %v12829_v29 = vld [vmem:[%s19189_s1 + $0x1450] ss:$52 sps:$4 sm:$0xff]   ;;  %v12834_v30 = vld [vmem:[%s19189_s1 + $0xd6c] ss:$52 sps:$4 sm:$0xff]   ;;  %v12852_v46 = vld [vmem:[%s19189_s1 + $0x12b4] ss:$52 sps:$4 sm:$0xff]  }
  0x20   :  { %5310 = vmatpush1.bf16.msra.mxu1 %v12743_v31  ;;  %5270 = vmatprep.subr.bf16.mxu0 %v12744_v32  ;;  %v12837_v31 = vld [vmem:[%s19189_s1 + $0x13ec] ss:$52 sps:$4 sm:$0xff]   ;;  %v14999_v32 = vld [vmem:[%s19190_s0 + $0x10] sm:$0xff] }
  0x21   :  { %5311 = vmatprep.subr.bf16.mxu1 %v12746_v33  ;;  %v15004_v33 = vld [vmem:[%s19190_s0 + $0x18] sm:$0xff]  ;;  %v12855_v48 = vld [vmem:[%s19189_s1 + $0x1934] ss:$52 sps:$4 sm:$0xff]  }
  0x23   :  { %5271 = vmatpush2.bf16.msra.mxu0 %v12748_v34  ;;  %v12832_v34 = vld [vmem:[%s19189_s1 + $0xd68] ss:$52 sps:$4 sm:$0xff]  }
  0x24   :  { %5312 = vmatpush2.bf16.msra.mxu1 %v12749_v35  ;;  %5272 = vmatprep.subr.bf16.mxu0 %v12750_v36  ;;  %v12835_v35 = vld [vmem:[%s19189_s1 + $0x13e8] ss:$52 sps:$4 sm:$0xff]   ;;  %v15014_v36 = vcombine.high %v14999_v32, %v14999_v32 }
  0x25   :  { %5313 = vmatprep.subr.bf16.mxu1 %v12752_v37  ;;  %v15018_v37 = vcombine.high %v15004_v33, %v15004_v33 }
  0x27   :  { %5273 = vmatpush2.bf16.msra.mxu0 %v12754_v38  ;;  %v12840_v38 = vld [vmem:[%s19189_s1 + $0xd04] ss:$52 sps:$4 sm:$0xff]  }
  0x28   :  { %5314 = vmatpush2.bf16.msra.mxu1 %v12755_v39  ;;  %5274 = vmatprep.subr.bf16.mxu0 %v12756_v40  ;;  %v12843_v39 = vld [vmem:[%s19189_s1 + $0x1384] ss:$52 sps:$4 sm:$0xff]   ;;  %v12838_v40 = vld [vmem:[%s19189_s1 + $0xd00] ss:$52 sps:$4 sm:$0xff]  }
  0x29   :  { %5315 = vmatprep.subr.bf16.mxu1 %v12758_v41  ;;  %v12841_v41 = vld [vmem:[%s19189_s1 + $0x1380] ss:$52 sps:$4 sm:$0xff]  }
  0x2b   :  { %5275 = vmatpush2.bf16.msra.mxu0 %v12760_v42  ;;  %v12846_v42 = vld [vmem:[%s19189_s1 + $0x131c] ss:$52 sps:$4 sm:$0xff]  }
  0x2c   :  { %5316 = vmatpush2.bf16.msra.mxu1 %v12761_v43  ;;  %5276 = vmatprep.subr.bf16.mxu0 %v12762_v44  ;;  %v12849_v43 = vld [vmem:[%s19189_s1 + $0x199c] ss:$52 sps:$4 sm:$0xff]   ;;  %v12844_v44 = vld [vmem:[%s19189_s1 + $0x1318] ss:$52 sps:$4 sm:$0xff]  }
  0x2d   :  { %5317 = vmatprep.subr.bf16.mxu1 %v12764_v45  ;;  %v12847_v45 = vld [vmem:[%s19189_s1 + $0x1998] ss:$52 sps:$4 sm:$0xff]  }
  0x2f   :  { %5277 = vmatpush2.bf16.msra.mxu0 %v12766_v49  ;;  %v12850_v49 = vld [vmem:[%s19189_s1 + $0x12b0] ss:$52 sps:$4 sm:$0xff]  }
  0x30   :  { %5318 = vmatpush2.bf16.msra.mxu1 %v12767_v50  ;;  %5278 = vmatprep.subr.bf16.mxu0 %v12768_v52  ;;  %v12853_v50 = vld [vmem:[%s19189_s1 + $0x1930] ss:$52 sps:$4 sm:$0xff]   ;;  %v12858_v52 = vld [vmem:[%s19189_s1 + $0x124c] ss:$52 sps:$4 sm:$0xff]  }
  0x31   :  { %5319 = vmatprep.subr.bf16.mxu1 %v12770_v53  ;;  %v12861_v53 = vld [vmem:[%s19189_s1 + $0x18cc] ss:$52 sps:$4 sm:$0xff]  }
  0x33   :  { %5279 = vmatpush2.bf16.msra.mxu0 %v12772_v54  ;;  %v12856_v54 = vld [vmem:[%s19189_s1 + $0x1248] ss:$52 sps:$4 sm:$0xff]  }
  0x34   :  { %5320 = vmatpush2.bf16.msra.mxu1 %v12773_v55  ;;  %5280 = vmatprep.subr.bf16.mxu0 %v12774_v56  ;;  %v12859_v55 = vld [vmem:[%s19189_s1 + $0x18c8] ss:$52 sps:$4 sm:$0xff]   ;;  %v12864_v56 = vld [vmem:[%s19189_s1 + $0x11e4] ss:$52 sps:$4 sm:$0xff]  }
  0x35   :  { %5321 = vmatprep.subr.bf16.mxu1 %v12776_v57  ;;  %v12867_v57 = vld [vmem:[%s19189_s1 + $0x1864] ss:$52 sps:$4 sm:$0xff]  }
  0x37   :  { %5281 = vmatpush2.bf16.msra.mxu0 %v12778_v58  ;;  %v12862_v58 = vld [vmem:[%s19189_s1 + $0x11e0] ss:$52 sps:$4 sm:$0xff]  }
  0x38   :  { %5322 = vmatpush2.bf16.msra.mxu1 %v12779_v59  ;;  %5282 = vmatprep.subr.bf16.mxu0 %v12780_v60  ;;  %v12865_v59 = vld [vmem:[%s19189_s1 + $0x1860] ss:$52 sps:$4 sm:$0xff]   ;;  %v12870_v60 = vld [vmem:[%s19189_s1 + $0x117c] ss:$52 sps:$4 sm:$0xff]  }
  0x39   :  { %5323 = vmatprep.subr.bf16.mxu1 %v12782_v61  ;;  %v12873_v61 = vld [vmem:[%s19189_s1 + $0x17fc] ss:$52 sps:$4 sm:$0xff]  }
  0x3b   :  { %5283 = vmatpush2.bf16.msra.mxu0 %v12784_v62  ;;  %v12868_v62 = vld [vmem:[%s19189_s1 + $0x1178] ss:$52 sps:$4 sm:$0xff]  }
  0x3c   :  { %5324 = vmatpush2.bf16.msra.mxu1 %v12785_v63  ;;  %5284 = vmatprep.subr.bf16.mxu0 %v12786_v0  ;;  %v12871_v63 = vld [vmem:[%s19189_s1 + $0x17f8] ss:$52 sps:$4 sm:$0xff]   ;;  %v12876_v0 = vld [vmem:[%s19189_s1 + $0x1114] ss:$52 sps:$4 sm:$0xff]  }
  0x3d   :  { %5325 = vmatprep.subr.bf16.mxu1 %v12788_v1  ;;  %v12879_v1 = vld [vmem:[%s19189_s1 + $0x1794] ss:$52 sps:$4 sm:$0xff]  }
  0x3f   :  { %5285 = vmatpush2.bf16.msra.mxu0 %v12790_v2  ;;  %v12874_v2 = vld [vmem:[%s19189_s1 + $0x1110] ss:$52 sps:$4 sm:$0xff]  }
  0x40   :  { %5326 = vmatpush2.bf16.msra.mxu1 %v12791_v3  ;;  %5336 = vmatprep.subr.bf16.mxu0 %v12798_v4  ;;  %v12877_v3 = vld [vmem:[%s19189_s1 + $0x1790] ss:$52 sps:$4 sm:$0xff]   ;;  %v12882_v4 = vld [vmem:[%s19189_s1 + $0x10ac] ss:$52 sps:$4 sm:$0xff]  }
  0x41   :  { %5377 = vmatprep.subr.bf16.mxu1 %v12801_v5  ;;  %v12885_v5 = vld [vmem:[%s19189_s1 + $0x172c] ss:$52 sps:$4 sm:$0xff]  }
  0x42   :  { %5287 = vmatmul.mubr.bf16.vlgmr.msra.gmra.mxu0 %v14918_v6 }
  0x43   :  { %5328 = vmatmul.mubr.bf16.vlgmr.msra.gmra.mxu1 %v14920_v7  ;;  %5337 = vmatpush1.bf16.msra.mxu0 %v12796_v8  ;;  %v12880_v8 = vld [vmem:[%s19189_s1 + $0x10a8] ss:$52 sps:$4 sm:$0xff]  }
  0x44   :  { %5378 = vmatpush1.bf16.msra.mxu1 %v12799_v9  ;;  %5338 = vmatprep.subr.bf16.mxu0 %v12804_v10  ;;  %v12883_v9 = vld [vmem:[%s19189_s1 + $0x1728] ss:$52 sps:$4 sm:$0xff]   ;;  %v12888_v10 = vld [vmem:[%s19189_s1 + $0x1044] ss:$52 sps:$4 sm:$0xff]  }
  0x45   :  { %5379 = vmatprep.subr.bf16.mxu1 %v12807_v11  ;;  %5368 = vmatprep.mubr.bf16.mxu0 %v15014_v36  ;;  %v12891_v11 = vld [vmem:[%s19189_s1 + $0x16c4] ss:$52 sps:$4 sm:$0xff]  }
  0x46   :  { %5409 = vmatprep.mubr.bf16.mxu1 %v15018_v37 }
  0x47   :  { %5339 = vmatpush1.bf16.msra.mxu0 %v12802_v12  ;;  %v12886_v12 = vld [vmem:[%s19189_s1 + $0x1040] ss:$52 sps:$4 sm:$0xff]  }
  0x48   :  { %5380 = vmatpush1.bf16.msra.mxu1 %v12805_v13  ;;  %5340 = vmatprep.subr.bf16.mxu0 %v12810_v14  ;;  %v12889_v13 = vld [vmem:[%s19189_s1 + $0x16c0] ss:$52 sps:$4 sm:$0xff]   ;;  %v12898_v14 = vld [vmem:[%s19189_s1 + $0x2e4] ss:$52 sps:$4 sm:$0xff]  }
  0x49   :  { %5381 = vmatprep.subr.bf16.mxu1 %v12813_v15  ;;  %v12901_v15 = vld [vmem:[%s19189_s1 + $0x964] ss:$52 sps:$4 sm:$0xff]  }
  0x4b   :  { %5341 = vmatpush1.bf16.msra.mxu0 %v12808_v16  ;;  %v15138_v16 = vcombine.low %v14999_v32, %v14999_v32  ;;  %v12922_v32 = vld [vmem:[%s19189_s1 + $0x144] ss:$52 sps:$4 sm:$0xff]  }
  0x4c   :  { %5382 = vmatpush1.bf16.msra.mxu1 %v12811_v17  ;;  %5342 = vmatprep.subr.bf16.mxu0 %v12816_v18  ;;  %v15142_v17 = vcombine.low %v15004_v33, %v15004_v33  ;;  %v12896_v18 = vld [vmem:[%s19189_s1 + $0x2e0] ss:$52 sps:$4 sm:$0xff]   ;;  %v12925_v33 = vld [vmem:[%s19189_s1 + $0x7c4] ss:$52 sps:$4 sm:$0xff]  }
  0x4d   :  { %5383 = vmatprep.subr.bf16.mxu1 %v12819_v19  ;;  %v12899_v19 = vld [vmem:[%s19189_s1 + $0x960] ss:$52 sps:$4 sm:$0xff]  }
  0x4f   :  { %5343 = vmatpush1.bf16.msra.mxu0 %v12814_v20  ;;  %v12904_v20 = vld [vmem:[%s19189_s1 + $0x27c] ss:$52 sps:$4 sm:$0xff]  }
  0x50   :  { %5384 = vmatpush1.bf16.msra.mxu1 %v12817_v21  ;;  %5344 = vmatprep.subr.bf16.mxu0 %v12822_v22  ;;  %v12907_v21 = vld [vmem:[%s19189_s1 + $0x8fc] ss:$52 sps:$4 sm:$0xff]   ;;  %v12902_v22 = vld [vmem:[%s19189_s1 + $0x278] ss:$52 sps:$4 sm:$0xff]  }
  0x51   :  { %5385 = vmatprep.subr.bf16.mxu1 %v12825_v23  ;;  %v12905_v23 = vld [vmem:[%s19189_s1 + $0x8f8] ss:$52 sps:$4 sm:$0xff]  }
  0x53   :  { %5345 = vmatpush1.bf16.msra.mxu0 %v12820_v24  ;;  %v12910_v24 = vld [vmem:[%s19189_s1 + $0x214] ss:$52 sps:$4 sm:$0xff]  }
  0x54   :  { %5386 = vmatpush1.bf16.msra.mxu1 %v12823_v25  ;;  %5346 = vmatprep.subr.bf16.mxu0 %v12828_v26  ;;  %v12913_v25 = vld [vmem:[%s19189_s1 + $0x894] ss:$52 sps:$4 sm:$0xff]   ;;  %v12908_v26 = vld [vmem:[%s19189_s1 + $0x210] ss:$52 sps:$4 sm:$0xff]  }
  0x55   :  { %5387 = vmatprep.subr.bf16.mxu1 %v12831_v27  ;;  %v12911_v27 = vld [vmem:[%s19189_s1 + $0x890] ss:$52 sps:$4 sm:$0xff]  }
  0x57   :  { %5347 = vmatpush1.bf16.msra.mxu0 %v12826_v28  ;;  %v12916_v28 = vld [vmem:[%s19189_s1 + $0x1ac] ss:$52 sps:$4 sm:$0xff]  }
  0x58   :  { %5388 = vmatpush1.bf16.msra.mxu1 %v12829_v29  ;;  %5348 = vmatprep.subr.bf16.mxu0 %v12834_v30  ;;  %v12919_v29 = vld [vmem:[%s19189_s1 + $0x82c] ss:$52 sps:$4 sm:$0xff]   ;;  %v12914_v30 = vld [vmem:[%s19189_s1 + $0x1a8] ss:$52 sps:$4 sm:$0xff]  }
  0x59   :  { %5389 = vmatprep.subr.bf16.mxu1 %v12837_v31  ;;  %v12917_v31 = vld [vmem:[%s19189_s1 + $0x828] ss:$52 sps:$4 sm:$0xff]  }
  0x5b   :  { %5349 = vmatpush1.bf16.msra.mxu0 %v12832_v34  ;;  %v12920_v34 = vld [vmem:[%s19189_s1 + $0x140] ss:$52 sps:$4 sm:$0xff]  }
  0x5c   :  { %5390 = vmatpush1.bf16.msra.mxu1 %v12835_v35  ;;  %5350 = vmatprep.subr.bf16.mxu0 %v12840_v38  ;;  %v12923_v35 = vld [vmem:[%s19189_s1 + $0x7c0] ss:$52 sps:$4 sm:$0xff]   ;;  %v12928_v38 = vld [vmem:[%s19189_s1 + $0xdc] ss:$52 sps:$4 sm:$0xff]  }
  0x5d   :  { %5391 = vmatprep.subr.bf16.mxu1 %v12843_v39  ;;  %v12931_v39 = vld [vmem:[%s19189_s1 + $0x75c] ss:$52 sps:$4 sm:$0xff]  }
  0x5f   :  { %5351 = vmatpush1.bf16.msra.mxu0 %v12838_v40  ;;  %v12926_v40 = vld [vmem:[%s19189_s1 + $0xd8] ss:$52 sps:$4 sm:$0xff]  }
  0x60   :  { %5392 = vmatpush1.bf16.msra.mxu1 %v12841_v41  ;;  %5352 = vmatprep.subr.bf16.mxu0 %v12846_v42  ;;  %v12929_v41 = vld [vmem:[%s19189_s1 + $0x758] ss:$52 sps:$4 sm:$0xff]   ;;  %v12934_v42 = vld [vmem:[%s19189_s1 + $0x74] ss:$52 sps:$4 sm:$0xff]  }
  0x61   :  { %5393 = vmatprep.subr.bf16.mxu1 %v12849_v43  ;;  %v12937_v43 = vld [vmem:[%s19189_s1 + $0x6f4] ss:$52 sps:$4 sm:$0xff]  }
  0x63   :  { %5353 = vmatpush2.bf16.msra.mxu0 %v12844_v44  ;;  %v12932_v44 = vld [vmem:[%s19189_s1 + $0x70] ss:$52 sps:$4 sm:$0xff]  }
  0x64   :  { %5394 = vmatpush2.bf16.msra.mxu1 %v12847_v45  ;;  %5354 = vmatprep.subr.bf16.mxu0 %v12852_v46  ;;  %v12935_v45 = vld [vmem:[%s19189_s1 + $0x6f0] ss:$52 sps:$4 sm:$0xff]   ;;  %v12940_v46 = vld [vmem:[%s19189_s1 + $0xc] ss:$52 sps:$4 sm:$0xff]  }
  0x65   :  { %5395 = vmatprep.subr.bf16.mxu1 %v12855_v48  ;;  %v12943_v48 = vld [vmem:[%s19189_s1 + $0x68c] ss:$52 sps:$4 sm:$0xff]  }
  0x67   :  { %5355 = vmatpush2.bf16.msra.mxu0 %v12850_v49  ;;  %v12938_v49 = vld [vmem:[%s19189_s1 + $0x8] ss:$52 sps:$4 sm:$0xff]  }
  0x68   :  { %5396 = vmatpush2.bf16.msra.mxu1 %v12853_v50  ;;  %5356 = vmatprep.subr.bf16.mxu0 %v12858_v52  ;;  %v12941_v50 = vld [vmem:[%s19189_s1 + $0x688] ss:$52 sps:$4 sm:$0xff]   ;;  %v12946_v52 = vld [vmem:[%s19189_s1 + $0x624] ss:$52 sps:$4 sm:$0xff]  }
  0x69   :  { %5397 = vmatprep.subr.bf16.mxu1 %v12861_v53  ;;  %v12949_v53 = vld [vmem:[%s19189_s1 + $0xca4] ss:$52 sps:$4 sm:$0xff]  }
  0x6b   :  { %5357 = vmatpush2.bf16.msra.mxu0 %v12856_v54  ;;  %v12944_v54 = vld [vmem:[%s19189_s1 + $0x620] ss:$52 sps:$4 sm:$0xff]  }
  0x6c   :  { %5398 = vmatpush2.bf16.msra.mxu1 %v12859_v55  ;;  %5358 = vmatprep.subr.bf16.mxu0 %v12864_v56  ;;  %v12947_v55 = vld [vmem:[%s19189_s1 + $0xca0] ss:$52 sps:$4 sm:$0xff]   ;;  %v12952_v56 = vld [vmem:[%s19189_s1 + $0x5bc] ss:$52 sps:$4 sm:$0xff]  }
  0x6d   :  { %5399 = vmatprep.subr.bf16.mxu1 %v12867_v57  ;;  %v12955_v57 = vld [vmem:[%s19189_s1 + $0xc3c] ss:$52 sps:$4 sm:$0xff]  }
  0x6f   :  { %5359 = vmatpush2.bf16.msra.mxu0 %v12862_v58  ;;  %v12950_v58 = vld [vmem:[%s19189_s1 + $0x5b8] ss:$52 sps:$4 sm:$0xff]  }
  0x70   :  { %5400 = vmatpush2.bf16.msra.mxu1 %v12865_v59  ;;  %5360 = vmatprep.subr.bf16.mxu0 %v12870_v60  ;;  %v12953_v59 = vld [vmem:[%s19189_s1 + $0xc38] ss:$52 sps:$4 sm:$0xff]   ;;  %v12958_v60 = vld [vmem:[%s19189_s1 + $0x554] ss:$52 sps:$4 sm:$0xff]  }
  0x71   :  { %5401 = vmatprep.subr.bf16.mxu1 %v12873_v61  ;;  %v12961_v61 = vld [vmem:[%s19189_s1 + $0xbd4] ss:$52 sps:$4 sm:$0xff]  }
  0x73   :  { %5361 = vmatpush2.bf16.msra.mxu0 %v12868_v62  ;;  %v12956_v62 = vld [vmem:[%s19189_s1 + $0x550] ss:$52 sps:$4 sm:$0xff]  }
  0x74   :  { %5402 = vmatpush2.bf16.msra.mxu1 %v12871_v63  ;;  %5362 = vmatprep.subr.bf16.mxu0 %v12876_v0  ;;  %v12959_v63 = vld [vmem:[%s19189_s1 + $0xbd0] ss:$52 sps:$4 sm:$0xff]   ;;  %v12964_v0 = vld [vmem:[%s19189_s1 + $0x4ec] ss:$52 sps:$4 sm:$0xff]  }
  0x75   :  { %5403 = vmatprep.subr.bf16.mxu1 %v12879_v1  ;;  %v12967_v1 = vld [vmem:[%s19189_s1 + $0xb6c] ss:$52 sps:$4 sm:$0xff]  }
  0x77   :  { %5363 = vmatpush2.bf16.msra.mxu0 %v12874_v2  ;;  %v12962_v2 = vld [vmem:[%s19189_s1 + $0x4e8] ss:$52 sps:$4 sm:$0xff]  }
  0x78   :  { %5404 = vmatpush2.bf16.msra.mxu1 %v12877_v3  ;;  %5364 = vmatprep.subr.bf16.mxu0 %v12882_v4  ;;  %v12965_v3 = vld [vmem:[%s19189_s1 + $0xb68] ss:$52 sps:$4 sm:$0xff]   ;;  %v12970_v4 = vld [vmem:[%s19189_s1 + $0x484] ss:$52 sps:$4 sm:$0xff]  }
  0x79   :  { %5405 = vmatprep.subr.bf16.mxu1 %v12885_v5  ;;  %v12973_v5 = vld [vmem:[%s19189_s1 + $0xb04] ss:$52 sps:$4 sm:$0xff]  }
  0x7b   :  { %5365 = vmatpush2.bf16.msra.mxu0 %v12880_v8  ;;  %v12968_v8 = vld [vmem:[%s19189_s1 + $0x480] ss:$52 sps:$4 sm:$0xff]  }
  0x7c   :  { %5406 = vmatpush2.bf16.msra.mxu1 %v12883_v9  ;;  %5366 = vmatprep.subr.bf16.mxu0 %v12888_v10  ;;  %v12971_v9 = vld [vmem:[%s19189_s1 + $0xb00] ss:$52 sps:$4 sm:$0xff]   ;;  %v12976_v10 = vld [vmem:[%s19189_s1 + $0x41c] ss:$52 sps:$4 sm:$0xff]  }
  0x7d   :  { %5407 = vmatprep.subr.bf16.mxu1 %v12891_v11  ;;  %v12979_v11 = vld [vmem:[%s19189_s1 + $0xa9c] ss:$52 sps:$4 sm:$0xff]  }
  0x7f   :  { %5367 = vmatpush2.bf16.msra.mxu0 %v12886_v12  ;;  %v12974_v12 = vld [vmem:[%s19189_s1 + $0x418] ss:$52 sps:$4 sm:$0xff]  }
  0x80   :  { %5408 = vmatpush2.bf16.msra.mxu1 %v12889_v13  ;;  %5418 = vmatprep.subr.bf16.mxu0 %v12898_v14  ;;  %v12977_v13 = vld [vmem:[%s19189_s1 + $0xa98] ss:$52 sps:$4 sm:$0xff]   ;;  %v12982_v14 = vld [vmem:[%s19189_s1 + $0x3b4] ss:$52 sps:$4 sm:$0xff]  }
  0x81   :  { %5459 = vmatprep.subr.bf16.mxu1 %v12901_v15  ;;  %v12985_v15 = vld [vmem:[%s19189_s1 + $0xa34] ss:$52 sps:$4 sm:$0xff]  }
  0x82   :  { %5369 = vmatmul.mubr.bf16.vlgmr.msra.gmra.mxu0 %v15138_v16 }
  0x83   :  { %5410 = vmatmul.mubr.bf16.vlgmr.msra.gmra.mxu1 %v15142_v17  ;;  %5419 = vmatpush1.bf16.msra.mxu0 %v12896_v18  ;;  %v12980_v18 = vld [vmem:[%s19189_s1 + $0x3b0] ss:$52 sps:$4 sm:$0xff]  }
  0x84   :  { %5460 = vmatpush1.bf16.msra.mxu1 %v12899_v19  ;;  %5420 = vmatprep.subr.bf16.mxu0 %v12904_v20  ;;  %v12983_v19 = vld [vmem:[%s19189_s1 + $0xa30] ss:$52 sps:$4 sm:$0xff]   ;;  %v12988_v20 = vld [vmem:[%s19189_s1 + $0x34c] ss:$52 sps:$4 sm:$0xff]  }
  0x85   :  { %5461 = vmatprep.subr.bf16.mxu1 %v12907_v21  ;;  %5450 = vmatprep.mubr.bf16.mxu0 %v14849_v47  ;;  %v12991_v21 = vld [vmem:[%s19189_s1 + $0x9cc] ss:$52 sps:$4 sm:$0xff]  }
  0x86   :  { %5491 = vmatprep.mubr.bf16.mxu1 %v14860_v51 }
  0x87   :  { %5421 = vmatpush1.bf16.msra.mxu0 %v12902_v22  ;;  %v12986_v22 = vld [vmem:[%s19189_s1 + $0x348] ss:$52 sps:$4 sm:$0xff]  }
  0x88   :  { %5462 = vmatpush1.bf16.msra.mxu1 %v12905_v23  ;;  %5422 = vmatprep.subr.bf16.mxu0 %v12910_v24  ;;  %v12989_v23 = vld [vmem:[%s19189_s1 + $0x9c8] ss:$52 sps:$4 sm:$0xff]   ;;  %v12994_v24 = vld [vmem:[%s19189_s1 + $0xfe4] ss:$52 sps:$4 sm:$0xff]  }
  0x89   :  { %5463 = vmatprep.subr.bf16.mxu1 %v12913_v25  ;;  %v12997_v25 = vld [vmem:[%s19189_s1 + $0x1664] ss:$52 sps:$4 sm:$0xff]  }
  0x8b   :  { %5423 = vmatpush1.bf16.msra.mxu0 %v12908_v26  ;;  %v12992_v26 = vld [vmem:[%s19189_s1 + $0xfe0] ss:$52 sps:$4 sm:$0xff]  }
  0x8c   :  { %5464 = vmatpush1.bf16.msra.mxu1 %v12911_v27  ;;  %5424 = vmatprep.subr.bf16.mxu0 %v12916_v28  ;;  %v12995_v27 = vld [vmem:[%s19189_s1 + $0x1660] ss:$52 sps:$4 sm:$0xff]   ;;  %v13000_v28 = vld [vmem:[%s19189_s1 + $0xf7c] ss:$52 sps:$4 sm:$0xff]  }
  0x8d   :  { %5465 = vmatprep.subr.bf16.mxu1 %v12919_v29  ;;  %v13003_v29 = vld [vmem:[%s19189_s1 + $0x15fc] ss:$52 sps:$4 sm:$0xff]  }
  0x8f   :  { %5425 = vmatpush1.bf16.msra.mxu0 %v12914_v30  ;;  %v12998_v30 = vld [vmem:[%s19189_s1 + $0xf78] ss:$52 sps:$4 sm:$0xff]  }
  0x90   :  { %5466 = vmatpush1.bf16.msra.mxu1 %v12917_v31  ;;  %5426 = vmatprep.subr.bf16.mxu0 %v12922_v32  ;;  %v13001_v31 = vld [vmem:[%s19189_s1 + $0x15f8] ss:$52 sps:$4 sm:$0xff]   ;;  %v13006_v32 = vld [vmem:[%s19189_s1 + $0xf14] ss:$52 sps:$4 sm:$0xff]  }
  0x91   :  { %5467 = vmatprep.subr.bf16.mxu1 %v12925_v33  ;;  %v13009_v33 = vld [vmem:[%s19189_s1 + $0x1594] ss:$52 sps:$4 sm:$0xff]  }
  0x93   :  { %5427 = vmatpush1.bf16.msra.mxu0 %v12920_v34  ;;  %v13004_v34 = vld [vmem:[%s19189_s1 + $0xf10] ss:$52 sps:$4 sm:$0xff]  }
  0x94   :  { %5468 = vmatpush1.bf16.msra.mxu1 %v12923_v35  ;;  %5428 = vmatprep.subr.bf16.mxu0 %v12928_v38  ;;  %v13007_v35 = vld [vmem:[%s19189_s1 + $0x1590] ss:$52 sps:$4 sm:$0xff]   ;;  %v13012_v38 = vld [vmem:[%s19189_s1 + $0xeac] ss:$52 sps:$4 sm:$0xff]  }
  0x95   :  { %5469 = vmatprep.subr.bf16.mxu1 %v12931_v39  ;;  %v13015_v39 = vld [vmem:[%s19189_s1 + $0x152c] ss:$52 sps:$4 sm:$0xff]  }
  0x97   :  { %5429 = vmatpush1.bf16.msra.mxu0 %v12926_v40  ;;  %v13010_v40 = vld [vmem:[%s19189_s1 + $0xea8] ss:$52 sps:$4 sm:$0xff]  }
  0x98   :  { %5470 = vmatpush1.bf16.msra.mxu1 %v12929_v41  ;;  %5430 = vmatprep.subr.bf16.mxu0 %v12934_v42  ;;  %v13013_v41 = vld [vmem:[%s19189_s1 + $0x1528] ss:$52 sps:$4 sm:$0xff]   ;;  %v13018_v42 = vld [vmem:[%s19189_s1 + $0xe44] ss:$52 sps:$4 sm:$0xff]  }
  0x99   :  { %5471 = vmatprep.subr.bf16.mxu1 %v12937_v43  ;;  %v13021_v43 = vld [vmem:[%s19189_s1 + $0x14c4] ss:$52 sps:$4 sm:$0xff]  }
  0x9b   :  { %5431 = vmatpush1.bf16.msra.mxu0 %v12932_v44  ;;  %v13016_v44 = vld [vmem:[%s19189_s1 + $0xe40] ss:$52 sps:$4 sm:$0xff]  }
  0x9c   :  { %5472 = vmatpush1.bf16.msra.mxu1 %v12935_v45  ;;  %5432 = vmatprep.subr.bf16.mxu0 %v12940_v46  ;;  %v13019_v45 = vld [vmem:[%s19189_s1 + $0x14c0] ss:$52 sps:$4 sm:$0xff]   ;;  %v13024_v46 = vld [vmem:[%s19189_s1 + $0xddc] ss:$52 sps:$4 sm:$0xff]  }
  0x9d   :  { %5473 = vmatprep.subr.bf16.mxu1 %v12943_v48  ;;  %v13027_v48 = vld [vmem:[%s19189_s1 + $0x145c] ss:$52 sps:$4 sm:$0xff]  }
  0x9f   :  { %5433 = vmatpush1.bf16.msra.mxu0 %v12938_v49  ;;  %v13022_v49 = vld [vmem:[%s19189_s1 + $0xdd8] ss:$52 sps:$4 sm:$0xff]  }
  0xa0   :  { %5474 = vmatpush1.bf16.msra.mxu1 %v12941_v50  ;;  %5434 = vmatprep.subr.bf16.mxu0 %v12946_v52  ;;  %v13025_v50 = vld [vmem:[%s19189_s1 + $0x1458] ss:$52 sps:$4 sm:$0xff]   ;;  %v13030_v52 = vld [vmem:[%s19189_s1 + $0xd74] ss:$52 sps:$4 sm:$0xff]  }
  0xa1   :  { %5475 = vmatprep.subr.bf16.mxu1 %v12949_v53  ;;  %v13033_v53 = vld [vmem:[%s19189_s1 + $0x13f4] ss:$52 sps:$4 sm:$0xff]  }
  0xa3   :  { %5435 = vmatpush2.bf16.msra.mxu0 %v12944_v54  ;;  %v13028_v54 = vld [vmem:[%s19189_s1 + $0xd70] ss:$52 sps:$4 sm:$0xff]  }
  0xa4   :  { %5476 = vmatpush2.bf16.msra.mxu1 %v12947_v55  ;;  %5436 = vmatprep.subr.bf16.mxu0 %v12952_v56  ;;  %v13031_v55 = vld [vmem:[%s19189_s1 + $0x13f0] ss:$52 sps:$4 sm:$0xff]   ;;  %v13036_v56 = vld [vmem:[%s19189_s1 + $0xd0c] ss:$52 sps:$4 sm:$0xff]  }
  0xa5   :  { %5477 = vmatprep.subr.bf16.mxu1 %v12955_v57  ;;  %v13039_v57 = vld [vmem:[%s19189_s1 + $0x138c] ss:$52 sps:$4 sm:$0xff]  }
  0xa7   :  { %5437 = vmatpush2.bf16.msra.mxu0 %v12950_v58  ;;  %v13034_v58 = vld [vmem:[%s19189_s1 + $0xd08] ss:$52 sps:$4 sm:$0xff]  }
  0xa8   :  { %5478 = vmatpush2.bf16.msra.mxu1 %v12953_v59  ;;  %5438 = vmatprep.subr.bf16.mxu0 %v12958_v60  ;;  %v13037_v59 = vld [vmem:[%s19189_s1 + $0x1388] ss:$52 sps:$4 sm:$0xff]   ;;  %v13042_v60 = vld [vmem:[%s19189_s1 + $0x1324] ss:$52 sps:$4 sm:$0xff]  }
  0xa9   :  { %5479 = vmatprep.subr.bf16.mxu1 %v12961_v61  ;;  %v13045_v61 = vld [vmem:[%s19189_s1 + $0x19a4] ss:$52 sps:$4 sm:$0xff]  }
  0xab   :  { %5439 = vmatpush2.bf16.msra.mxu0 %v12956_v62  ;;  %v13040_v62 = vld [vmem:[%s19189_s1 + $0x1320] ss:$52 sps:$4 sm:$0xff]  }
  0xac   :  { %5480 = vmatpush2.bf16.msra.mxu1 %v12959_v63  ;;  %5440 = vmatprep.subr.bf16.mxu0 %v12964_v0  ;;  %v13043_v63 = vld [vmem:[%s19189_s1 + $0x19a0] ss:$52 sps:$4 sm:$0xff]   ;;  %v13048_v0 = vld [vmem:[%s19189_s1 + $0x12bc] ss:$52 sps:$4 sm:$0xff]  }
  0xad   :  { %5481 = vmatprep.subr.bf16.mxu1 %v12967_v1  ;;  %v13051_v1 = vld [vmem:[%s19189_s1 + $0x193c] ss:$52 sps:$4 sm:$0xff]  }
  0xaf   :  { %5441 = vmatpush2.bf16.msra.mxu0 %v12962_v2  ;;  %v13046_v2 = vld [vmem:[%s19189_s1 + $0x12b8] ss:$52 sps:$4 sm:$0xff]  }
  0xb0   :  { %5482 = vmatpush2.bf16.msra.mxu1 %v12965_v3  ;;  %5442 = vmatprep.subr.bf16.mxu0 %v12970_v4  ;;  %v13049_v3 = vld [vmem:[%s19189_s1 + $0x1938] ss:$52 sps:$4 sm:$0xff]   ;;  %v13054_v4 = vld [vmem:[%s19189_s1 + $0x1254] ss:$52 sps:$4 sm:$0xff]  }
  0xb1   :  { %5483 = vmatprep.subr.bf16.mxu1 %v12973_v5  ;;  %v13057_v5 = vld [vmem:[%s19189_s1 + $0x18d4] ss:$52 sps:$4 sm:$0xff]  }
  0xb3   :  { %5443 = vmatpush2.bf16.msra.mxu0 %v12968_v8  ;;  %v13052_v8 = vld [vmem:[%s19189_s1 + $0x1250] ss:$52 sps:$4 sm:$0xff]  }
  0xb4   :  { %5484 = vmatpush2.bf16.msra.mxu1 %v12971_v9  ;;  %5444 = vmatprep.subr.bf16.mxu0 %v12976_v10  ;;  %v13055_v9 = vld [vmem:[%s19189_s1 + $0x18d0] ss:$52 sps:$4 sm:$0xff]   ;;  %v13060_v10 = vld [vmem:[%s19189_s1 + $0x11ec] ss:$52 sps:$4 sm:$0xff]  }
  0xb5   :  { %5485 = vmatprep.subr.bf16.mxu1 %v12979_v11  ;;  %v13063_v11 = vld [vmem:[%s19189_s1 + $0x186c] ss:$52 sps:$4 sm:$0xff]  }
  0xb7   :  { %5445 = vmatpush2.bf16.msra.mxu0 %v12974_v12  ;;  %v13058_v12 = vld [vmem:[%s19189_s1 + $0x11e8] ss:$52 sps:$4 sm:$0xff]  }
  0xb8   :  { %5486 = vmatpush2.bf16.msra.mxu1 %v12977_v13  ;;  %5446 = vmatprep.subr.bf16.mxu0 %v12982_v14  ;;  %v13061_v13 = vld [vmem:[%s19189_s1 + $0x1868] ss:$52 sps:$4 sm:$0xff]   ;;  %v13066_v14 = vld [vmem:[%s19189_s1 + $0x1184] ss:$52 sps:$4 sm:$0xff]  }
  0xb9   :  { %5487 = vmatprep.subr.bf16.mxu1 %v12985_v15  ;;  %v13069_v15 = vld [vmem:[%s19189_s1 + $0x1804] ss:$52 sps:$4 sm:$0xff]  }
  0xbb   :  { %5447 = vmatpush2.bf16.msra.mxu0 %v12980_v18  ;;  %v13064_v18 = vld [vmem:[%s19189_s1 + $0x1180] ss:$52 sps:$4 sm:$0xff]  }
  0xbc   :  { %5488 = vmatpush2.bf16.msra.mxu1 %v12983_v19  ;;  %5448 = vmatprep.subr.bf16.mxu0 %v12988_v20  ;;  %v13067_v19 = vld [vmem:[%s19189_s1 + $0x1800] ss:$52 sps:$4 sm:$0xff]   ;;  %v13072_v20 = vld [vmem:[%s19189_s1 + $0x111c] ss:$52 sps:$4 sm:$0xff]  }
  0xbd   :  { %5489 = vmatprep.subr.bf16.mxu1 %v12991_v21  ;;  %v13075_v21 = vld [vmem:[%s19189_s1 + $0x179c] ss:$52 sps:$4 sm:$0xff]  }
  0xbf   :  { %5449 = vmatpush2.bf16.msra.mxu0 %v12986_v22  ;;  %v13070_v22 = vld [vmem:[%s19189_s1 + $0x1118] ss:$52 sps:$4 sm:$0xff]  }
  0xc0   :  { %5490 = vmatpush2.bf16.msra.mxu1 %v12989_v23  ;;  %5500 = vmatprep.subr.bf16.mxu0 %v12994_v24  ;;  %v13073_v23 = vld [vmem:[%s19189_s1 + $0x1798] ss:$52 sps:$4 sm:$0xff]   ;;  %v937_v24 = vlaneseq }
  0xc1   :  { %5541 = vmatprep.subr.bf16.mxu1 %v12997_v25  ;;  %v13078_v25 = vld [vmem:[%s19189_s1 + $0x10b4] ss:$52 sps:$4 sm:$0xff]  }
  0xc2   :  { %5451 = vmatmul.mubr.bf16.vlgmr.msra.gmra.mxu0 %v14918_v6 }
  0xc3   :  { %5492 = vmatmul.mubr.bf16.vlgmr.msra.gmra.mxu1 %v14920_v7  ;;  %5501 = vmatpush1.bf16.msra.mxu0 %v12992_v26  ;;  %v13081_v26 = vld [vmem:[%s19189_s1 + $0x1734] ss:$52 sps:$4 sm:$0xff]  }
  0xc4   :  { %5542 = vmatpush1.bf16.msra.mxu1 %v12995_v27  ;;  %5502 = vmatprep.subr.bf16.mxu0 %v13000_v28  ;;  %v13076_v27 = vld [vmem:[%s19189_s1 + $0x10b0] ss:$52 sps:$4 sm:$0xff]  }
  0xc5   :  { %5543 = vmatprep.subr.bf16.mxu1 %v13003_v29  ;;  %5532 = vmatprep.mubr.bf16.mxu0 %v15014_v36  ;;  %v13079_v28 = vld [vmem:[%s19189_s1 + $0x1730] ss:$52 sps:$4 sm:$0xff]   ;;  %v15518_v29 = vshrl.u32 %v937_v24, 7  ;;  %v13135_v24 = vld [vmem:[%s19189_s1 + $0x694] ss:$52 sps:$4 sm:$0xff]  }
  0xc6   :  { %5573 = vmatprep.mubr.bf16.mxu1 %v15018_v37 }
  0xc7   :  { %5503 = vmatpush1.bf16.msra.mxu0 %v12998_v30  ;;  %v13084_v30 = vld [vmem:[%s19189_s1 + $0x104c] ss:$52 sps:$4 sm:$0xff]  }
  0xc8   :  { %5544 = vmatpush1.bf16.msra.mxu1 %v13001_v31  ;;  %5504 = vmatprep.subr.bf16.mxu0 %v13006_v32  ;;  %v13087_v31 = vld [vmem:[%s19189_s1 + $0x16cc] ss:$52 sps:$4 sm:$0xff]   ;;  %v13082_v32 = vld [vmem:[%s19189_s1 + $0x1048] ss:$52 sps:$4 sm:$0xff]  }
  0xc9   :  { %5545 = vmatprep.subr.bf16.mxu1 %v13009_v33  ;;  %v13085_v33 = vld [vmem:[%s19189_s1 + $0x16c8] ss:$52 sps:$4 sm:$0xff]  }
  0xcb   :  { %5505 = vmatpush1.bf16.msra.mxu0 %v13004_v34  ;;  %v933_v34 = vld [vmem:[%s19191_s2] sm:$0xff] }
  0xcc   :  { %5546 = vmatpush1.bf16.msra.mxu1 %v13007_v35  ;;  %5506 = vmatprep.subr.bf16.mxu0 %v13012_v38  ;;  %v15536_v35 = vsub.s32 0, %v15518_v29  ;;  %v13090_v38 = vld [vmem:[%s19189_s1 + $0x2ec] ss:$52 sps:$4 sm:$0xff]  }
  0xcd   :  { %5547 = vmatprep.subr.bf16.mxu1 %v13015_v39  ;;  %v13093_v39 = vld [vmem:[%s19189_s1 + $0x96c] ss:$52 sps:$4 sm:$0xff]  }
  0xcf   :  { %5507 = vmatpush1.bf16.msra.mxu0 %v13010_v40  ;;  %v15545_v40 = vsub.s32 1, %v15518_v29 }
  0xd0   :  { %5548 = vmatpush1.bf16.msra.mxu1 %v13013_v41  ;;  %5508 = vmatprep.subr.bf16.mxu0 %v13018_v42  ;;  %v13088_v41 = vld [vmem:[%s19189_s1 + $0x2e8] ss:$52 sps:$4 sm:$0xff]   ;;  %v940_v42 = vrot.slane %v933_v34, %v15536_v35 }
  0xd1   :  { %5549 = vmatprep.subr.bf16.mxu1 %v13021_v43  ;;  %v13091_v43 = vld [vmem:[%s19189_s1 + $0x968] ss:$52 sps:$4 sm:$0xff]  }
  0xd3   :  { %5509 = vmatpush1.bf16.msra.mxu0 %v13016_v44  ;;  %v13096_v44 = vld [vmem:[%s19189_s1 + $0x284] ss:$52 sps:$4 sm:$0xff]  }
  0xd4   :  { %5550 = vmatpush1.bf16.msra.mxu1 %v13019_v45  ;;  %5510 = vmatprep.subr.bf16.mxu0 %v13024_v46  ;;  %v13099_v45 = vld [vmem:[%s19189_s1 + $0x904] ss:$52 sps:$4 sm:$0xff]   ;;  %v944_v46 = vrot.slane %v933_v34, %v15545_v40  ;;  %v13142_v34 = vld [vmem:[%s19189_s1 + $0x5c0] ss:$52 sps:$4 sm:$0xff]  }
  0xd5   :  { %5551 = vmatprep.subr.bf16.mxu1 %v13027_v48  ;;  %v13094_v48 = vld [vmem:[%s19189_s1 + $0x280] ss:$52 sps:$4 sm:$0xff]  }
  0xd7   :  { %5511 = vmatpush1.bf16.msra.mxu0 %v13022_v49 }
  0xd8   :  { %5552 = vmatpush1.bf16.msra.mxu1 %v13025_v50  ;;  %5512 = vmatprep.subr.bf16.mxu0 %v13030_v52  ;;  %v13097_v52 = vld [vmem:[%s19189_s1 + $0x900] ss:$52 sps:$4 sm:$0xff]  }
  0xd9   :  { %5553 = vmatprep.subr.bf16.mxu1 %v13033_v53 }
  0xdb   :  { %5513 = vmatpush1.bf16.msra.mxu0 %v13028_v54  ;;  %v13102_v54 = vld [vmem:[%s19189_s1 + $0x21c] ss:$52 sps:$4 sm:$0xff]  }
  0xdc   :  { %5554 = vmatpush1.bf16.msra.mxu1 %v13031_v55  ;;  %5514 = vmatprep.subr.bf16.mxu0 %v13036_v56 }
  0xdd   :  { %5555 = vmatprep.subr.bf16.mxu1 %v13039_v57  ;;  %v13105_v57 = vld [vmem:[%s19189_s1 + $0x89c] ss:$52 sps:$4 sm:$0xff]  }
  0xdf   :  { %5515 = vmatpush1.bf16.msra.mxu0 %v13034_v58 }
  0xe0   :  { %5556 = vmatpush1.bf16.msra.mxu1 %v13037_v59  ;;  %5516 = vmatprep.subr.bf16.mxu0 %v13042_v60  ;;  %v13100_v60 = vld [vmem:[%s19189_s1 + $0x218] ss:$52 sps:$4 sm:$0xff]  }
  0xe1   :  { %5557 = vmatprep.subr.bf16.mxu1 %v13045_v61  ;;  %v13103_v61 = vld [vmem:[%s19189_s1 + $0x898] ss:$52 sps:$4 sm:$0xff]  }
  0xe3   :  { %5517 = vmatpush2.bf16.msra.mxu0 %v13040_v62 }
  0xe4   :  { %5558 = vmatpush2.bf16.msra.mxu1 %v13043_v63  ;;  %5518 = vmatprep.subr.bf16.mxu0 %v13048_v0 }
  0xe5   :  { %5559 = vmatprep.subr.bf16.mxu1 %v13051_v1 }
  0xe7   :  { %5519 = vmatpush2.bf16.msra.mxu0 %v13046_v2 }
  0xe8   :  { %5560 = vmatpush2.bf16.msra.mxu1 %v13049_v3  ;;  %5520 = vmatprep.subr.bf16.mxu0 %v13054_v4  ;;  %v13108_v3 = vld [vmem:[%s19189_s1 + $0x1b4] ss:$52 sps:$4 sm:$0xff]  }
  0xe9   :  { %5561 = vmatprep.subr.bf16.mxu1 %v13057_v5  ;;  %v13111_v4 = vld [vmem:[%s19189_s1 + $0x834] ss:$52 sps:$4 sm:$0xff]   ;;  %v13106_v5 = vld [vmem:[%s19189_s1 + $0x1b0] ss:$52 sps:$4 sm:$0xff]  }
  0xeb   :  { %5521 = vmatpush2.bf16.msra.mxu0 %v13052_v8  ;;  %v13109_v8 = vld [vmem:[%s19189_s1 + $0x830] ss:$52 sps:$4 sm:$0xff]  }
  0xec   :  { %5562 = vmatpush2.bf16.msra.mxu1 %v13055_v9  ;;  %5522 = vmatprep.subr.bf16.mxu0 %v13060_v10  ;;  %v13114_v9 = vld [vmem:[%s19189_s1 + $0x14c] ss:$52 sps:$4 sm:$0xff]  }
  0xed   :  { %5563 = vmatprep.subr.bf16.mxu1 %v13063_v11  ;;  %v13117_v10 = vld [vmem:[%s19189_s1 + $0x7cc] ss:$52 sps:$4 sm:$0xff]   ;;  %v13112_v11 = vld [vmem:[%s19189_s1 + $0x148] ss:$52 sps:$4 sm:$0xff]  }
  0xef   :  { %5523 = vmatpush2.bf16.msra.mxu0 %v13058_v12  ;;  %v13115_v12 = vld [vmem:[%s19189_s1 + $0x7c8] ss:$52 sps:$4 sm:$0xff]  }
  0xf0   :  { %5564 = vmatpush2.bf16.msra.mxu1 %v13061_v13  ;;  %5524 = vmatprep.subr.bf16.mxu0 %v13066_v14  ;;  %v13120_v13 = vld [vmem:[%s19189_s1 + $0xe4] ss:$52 sps:$4 sm:$0xff]  }
  0xf1   :  { %5565 = vmatprep.subr.bf16.mxu1 %v13069_v15  ;;  %v13123_v14 = vld [vmem:[%s19189_s1 + $0x764] ss:$52 sps:$4 sm:$0xff]   ;;  %v13118_v15 = vld [vmem:[%s19189_s1 + $0xe0] ss:$52 sps:$4 sm:$0xff]  }
  0xf3   :  { %5525 = vmatpush2.bf16.msra.mxu0 %v13064_v18  ;;  %v13121_v18 = vld [vmem:[%s19189_s1 + $0x760] ss:$52 sps:$4 sm:$0xff]  }
  0xf4   :  { %5566 = vmatpush2.bf16.msra.mxu1 %v13067_v19  ;;  %5526 = vmatprep.subr.bf16.mxu0 %v13072_v20  ;;  %v13126_v19 = vld [vmem:[%s19189_s1 + $0x7c] ss:$52 sps:$4 sm:$0xff]  }
  0xf5   :  { %5567 = vmatprep.subr.bf16.mxu1 %v13075_v21  ;;  %v13129_v20 = vld [vmem:[%s19189_s1 + $0x6fc] ss:$52 sps:$4 sm:$0xff]   ;;  %v13124_v21 = vld [vmem:[%s19189_s1 + $0x78] ss:$52 sps:$4 sm:$0xff]  }
  0xf7   :  { %5527 = vmatpush2.bf16.msra.mxu0 %v13070_v22  ;;  %v13127_v22 = vld [vmem:[%s19189_s1 + $0x6f8] ss:$52 sps:$4 sm:$0xff]  }
  0xf8   :  { %5568 = vmatpush2.bf16.msra.mxu1 %v13073_v23  ;;  %5528 = vmatprep.subr.bf16.mxu0 %v13078_v25  ;;  %v13132_v23 = vld [vmem:[%s19189_s1 + $0x14] ss:$52 sps:$4 sm:$0xff]   ;;  %v13130_v25 = vld [vmem:[%s19189_s1 + $0x10] ss:$52 sps:$4 sm:$0xff]  }
  0xf9   :  { %5569 = vmatprep.subr.bf16.mxu1 %v13081_v26  ;;  %v13133_v26 = vld [vmem:[%s19189_s1 + $0x690] ss:$52 sps:$4 sm:$0xff]  }
  0xfb   :  { %5529 = vmatpush2.bf16.msra.mxu0 %v13076_v27  ;;  %v13138_v27 = vld [vmem:[%s19189_s1 + $0x62c] ss:$52 sps:$4 sm:$0xff]  }
  0xfc   :  { %5570 = vmatpush2.bf16.msra.mxu1 %v13079_v28  ;;  %5530 = vmatprep.subr.bf16.mxu0 %v13084_v30  ;;  %v13141_v28 = vld [vmem:[%s19189_s1 + $0xcac] ss:$52 sps:$4 sm:$0xff]   ;;  %v13136_v30 = vld [vmem:[%s19189_s1 + $0x628] ss:$52 sps:$4 sm:$0xff]  }
  0xfd   :  { %5571 = vmatprep.subr.bf16.mxu1 %v13087_v31  ;;  %v13139_v31 = vld [vmem:[%s19189_s1 + $0xca8] ss:$52 sps:$4 sm:$0xff]  }
  0xff   :  { %5531 = vmatpush2.bf16.msra.mxu0 %v13082_v32  ;;  %v13144_v32 = vld [vmem:[%s19189_s1 + $0x5c4] ss:$52 sps:$4 sm:$0xff]  }
 0x100   :  { %5572 = vmatpush2.bf16.msra.mxu1 %v13085_v33  ;;  %5582 = vmatprep.subr.bf16.mxu0 %v13090_v38  ;;  %v13147_v33 = vld [vmem:[%s19189_s1 + $0xc44] ss:$52 sps:$4 sm:$0xff]   ;;  %v13145_v38 = vld [vmem:[%s19189_s1 + $0xc40] ss:$52 sps:$4 sm:$0xff]  }
 0x101   :  { %5623 = vmatprep.subr.bf16.mxu1 %v13093_v39  ;;  %v13150_v39 = vld [vmem:[%s19189_s1 + $0x55c] ss:$52 sps:$4 sm:$0xff]  }
 0x102   :  { %v5288_v49 = vpop.f32.mrf.mxu0  ;;  %5533 = vmatmul.mubr.bf16.vlgmr.msra.gmra.mxu0 %v15138_v16 }
 0x103   :  { %v5329_v50 = vpop.f32.mrf.mxu1  ;;  %5574 = vmatmul.mubr.bf16.vlgmr.msra.gmra.mxu1 %v15142_v17  ;;  %v5289_v53 = vadd.f32 %v5288_v49, %v940_v42  ;;  %5583 = vmatpush1.bf16.msra.mxu0 %v13088_v41  ;;  %v13153_v41 = vld [vmem:[%s19189_s1 + $0xbdc] ss:$52 sps:$4 sm:$0xff]   ;;  %v13148_v42 = vld [vmem:[%s19189_s1 + $0x558] ss:$52 sps:$4 sm:$0xff]  }
 0x104   :  { %5624 = vmatpush1.bf16.msra.mxu1 %v13091_v43  ;;  %v5290_v55 = vpop.f32.mrf.mxu0  ;;  %5584 = vmatprep.subr.bf16.mxu0 %v13096_v44  ;;  %v13151_v43 = vld [vmem:[%s19189_s1 + $0xbd8] ss:$52 sps:$4 sm:$0xff]   ;;  %v13156_v44 = vld [vmem:[%s19189_s1 + $0x4f4] ss:$52 sps:$4 sm:$0xff]  }
 0x105   :  { %v5331_v56 = vpop.f32.mrf.mxu1  ;;  %5625 = vmatprep.subr.bf16.mxu1 %v13099_v45  ;;  %v15575_v58 = vadd.f32 %v5329_v50, %v5289_v53  ;;  %v5291_v59 = vadd.f32 %v5290_v55, %v944_v46  ;;  %5614 = vmatprep.mubr.bf16.mxu0 %v14849_v47  ;;  %v13159_v45 = vld [vmem:[%s19189_s1 + $0xb74] ss:$52 sps:$4 sm:$0xff]   ;;  %v13154_v46 = vld [vmem:[%s19189_s1 + $0x4f0] ss:$52 sps:$4 sm:$0xff]   ;;  %v13162_v49 = vld [vmem:[%s19189_s1 + $0x48c] ss:$52 sps:$4 sm:$0xff]  }
 0x106   :  { %5655 = vmatprep.mubr.bf16.mxu1 %v14860_v51  ;;  %v5292_v62 = vpop.f32.mrf.mxu0  ;;  %v13165_v50 = vld [vmem:[%s19189_s1 + $0xb0c] ss:$52 sps:$4 sm:$0xff]   ;;  %v13163_v53 = vld [vmem:[%s19189_s1 + $0xb08] ss:$52 sps:$4 sm:$0xff]   ;;  %v13171_v55 = vld [vmem:[%s19189_s1 + $0xaa4] ss:$52 sps:$4 sm:$0xff]  }
 0x107   :  { %v5333_v63 = vpop.f32.mrf.mxu1  ;;  %v15585_v0 = vadd.f32 %v5331_v56, %v5291_v59  ;;  %5585 = vmatpush1.bf16.msra.mxu0 %v13094_v48  ;;  %v13157_v48 = vld [vmem:[%s19189_s1 + $0xb70] ss:$52 sps:$4 sm:$0xff]   ;;  %v13166_v56 = vld [vmem:[%s19189_s1 + $0x420] ss:$52 sps:$4 sm:$0xff]   ;;  %v13175_v62 = vld [vmem:[%s19189_s1 + $0xa38] ss:$52 sps:$4 sm:$0xff]  }
 0x108   :  { %5626 = vmatpush1.bf16.msra.mxu1 %v13097_v52  ;;  %v5293_v1 = vpop.f32.mrf.mxu0  ;;  %5586 = vmatprep.subr.bf16.mxu0 %v13102_v54  ;;  %v13160_v52 = vld [vmem:[%s19189_s1 + $0x488] ss:$52 sps:$4 sm:$0xff]   ;;  %v13168_v54 = vld [vmem:[%s19189_s1 + $0x424] ss:$52 sps:$4 sm:$0xff]  }
 0x109   :  { %v5334_v2 = vpop.f32.mrf.mxu1  ;;  %5627 = vmatprep.subr.bf16.mxu1 %v13105_v57  ;;  %v13169_v57 = vld [vmem:[%s19189_s1 + $0xaa0] ss:$52 sps:$4 sm:$0xff]   ;;  %v13174_v59 = vld [vmem:[%s19189_s1 + $0x3bc] ss:$52 sps:$4 sm:$0xff]  }
 0x10a   :  { %v13180_v63 = vld [vmem:[%s19189_s1 + $0x354] ss:$52 sps:$4 sm:$0xff]   ;;  %v13178_v2 = vld [vmem:[%s19189_s1 + $0x350] ss:$52 sps:$4 sm:$0xff]  }
 0x10b   :  { %5587 = vmatpush1.bf16.msra.mxu0 %v13100_v60  ;;  %v13177_v60 = vld [vmem:[%s19189_s1 + $0xa3c] ss:$52 sps:$4 sm:$0xff]   ;;  %v13183_v1 = vld [vmem:[%s19189_s1 + $0x9d4] ss:$52 sps:$4 sm:$0xff]  }
 0x10c   :  { %5628 = vmatpush1.bf16.msra.mxu1 %v13103_v61  ;;  %5588 = vmatprep.subr.bf16.mxu0 %v13108_v3  ;;  %v13172_v61 = vld [vmem:[%s19189_s1 + $0x3b8] ss:$52 sps:$4 sm:$0xff]   ;;  %v13181_v3 = vld [vmem:[%s19189_s1 + $0x9d0] ss:$52 sps:$4 sm:$0xff]  }
 0x10d   :  { %5629 = vmatprep.subr.bf16.mxu1 %v13111_v4  ;;  %v13186_v4 = vld [vmem:[%s19189_s1 + $0xfec] ss:$52 sps:$4 sm:$0xff]  }
 0x10f   :  { %5589 = vmatpush1.bf16.msra.mxu0 %v13106_v5  ;;  %v13189_v5 = vld [vmem:[%s19189_s1 + $0x166c] ss:$52 sps:$4 sm:$0xff]  }
 0x110   :  { %5630 = vmatpush1.bf16.msra.mxu1 %v13109_v8  ;;  %5590 = vmatprep.subr.bf16.mxu0 %v13114_v9  ;;  %v13184_v8 = vld [vmem:[%s19189_s1 + $0xfe8] ss:$52 sps:$4 sm:$0xff]  }
 0x111   :  { %5631 = vmatprep.subr.bf16.mxu1 %v13117_v10  ;;  %v13187_v9 = vld [vmem:[%s19189_s1 + $0x1668] ss:$52 sps:$4 sm:$0xff]   ;;  %v13192_v10 = vld [vmem:[%s19189_s1 + $0xf84] ss:$52 sps:$4 sm:$0xff]  }
 0x113   :  { %5591 = vmatpush1.bf16.msra.mxu0 %v13112_v11  ;;  %v13195_v11 = vld [vmem:[%s19189_s1 + $0x1604] ss:$52 sps:$4 sm:$0xff]  }
 0x114   :  { %5632 = vmatpush1.bf16.msra.mxu1 %v13115_v12  ;;  %5592 = vmatprep.subr.bf16.mxu0 %v13120_v13  ;;  %v13190_v12 = vld [vmem:[%s19189_s1 + $0xf80] ss:$52 sps:$4 sm:$0xff]  }
 0x115   :  { %5633 = vmatprep.subr.bf16.mxu1 %v13123_v14  ;;  %v13193_v13 = vld [vmem:[%s19189_s1 + $0x1600] ss:$52 sps:$4 sm:$0xff]  }
 0x117   :  { %5593 = vmatpush1.bf16.msra.mxu0 %v13118_v15 }
 0x118   :  { %5634 = vmatpush1.bf16.msra.mxu1 %v13121_v18  ;;  %5594 = vmatprep.subr.bf16.mxu0 %v13126_v19 }
 0x119   :  { %5635 = vmatprep.subr.bf16.mxu1 %v13129_v20 }
 0x11b   :  { %5595 = vmatpush1.bf16.msra.mxu0 %v13124_v21  ;;  %v13198_v21 = vld [vmem:[%s19189_s1 + $0xf1c] ss:$52 sps:$4 sm:$0xff]  }
 0x11c   :  { %5636 = vmatpush1.bf16.msra.mxu1 %v13127_v22  ;;  %5596 = vmatprep.subr.bf16.mxu0 %v13132_v23  ;;  %v13201_v22 = vld [vmem:[%s19189_s1 + $0x159c] ss:$52 sps:$4 sm:$0xff]  }
 0x11d   :  { %5637 = vmatprep.subr.bf16.mxu1 %v13135_v24 }
 0x11f   :  { %5597 = vmatpush1.bf16.msra.mxu0 %v13130_v25  ;;  %v13199_v25 = vld [vmem:[%s19189_s1 + $0x1598] ss:$52 sps:$4 sm:$0xff]  }
 0x120   :  { %5638 = vmatpush1.bf16.msra.mxu1 %v13133_v26  ;;  %5598 = vmatprep.subr.bf16.mxu0 %v13138_v27 }
 0x121   :  { %5639 = vmatprep.subr.bf16.mxu1 %v13141_v28 }
 0x123   :  { %5599 = vmatpush2.bf16.msra.mxu0 %v13136_v30 }
 0x124   :  { %5640 = vmatpush2.bf16.msra.mxu1 %v13139_v31  ;;  %5600 = vmatprep.subr.bf16.mxu0 %v13144_v32  ;;  %v13204_v31 = vld [vmem:[%s19189_s1 + $0xeb4] ss:$52 sps:$4 sm:$0xff]  }
 0x125   :  { %5641 = vmatprep.subr.bf16.mxu1 %v13147_v33  ;;  %v13207_v32 = vld [vmem:[%s19189_s1 + $0x1534] ss:$52 sps:$4 sm:$0xff]   ;;  %v13202_v33 = vld [vmem:[%s19189_s1 + $0xeb0] ss:$52 sps:$4 sm:$0xff]  }
 0x127   :  { %5601 = vmatpush2.bf16.msra.mxu0 %v13142_v34  ;;  %v13205_v34 = vld [vmem:[%s19189_s1 + $0x1530] ss:$52 sps:$4 sm:$0xff]  }
 0x128   :  { %5642 = vmatpush2.bf16.msra.mxu1 %v13145_v38  ;;  %5602 = vmatprep.subr.bf16.mxu0 %v13150_v39  ;;  %v13210_v38 = vld [vmem:[%s19189_s1 + $0xe4c] ss:$52 sps:$4 sm:$0xff]  }
 0x129   :  { %5643 = vmatprep.subr.bf16.mxu1 %v13153_v41  ;;  %v13213_v39 = vld [vmem:[%s19189_s1 + $0x14cc] ss:$52 sps:$4 sm:$0xff]   ;;  %v13208_v41 = vld [vmem:[%s19189_s1 + $0xe48] ss:$52 sps:$4 sm:$0xff]  }
 0x12b   :  { %5603 = vmatpush2.bf16.msra.mxu0 %v13148_v42  ;;  %v13211_v42 = vld [vmem:[%s19189_s1 + $0x14c8] ss:$52 sps:$4 sm:$0xff]  }
 0x12c   :  { %5644 = vmatpush2.bf16.msra.mxu1 %v13151_v43  ;;  %5604 = vmatprep.subr.bf16.mxu0 %v13156_v44  ;;  %v13216_v43 = vld [vmem:[%s19189_s1 + $0xde4] ss:$52 sps:$4 sm:$0xff]  }
 0x12d   :  { %5645 = vmatprep.subr.bf16.mxu1 %v13159_v45  ;;  %v13219_v44 = vld [vmem:[%s19189_s1 + $0x1464] ss:$52 sps:$4 sm:$0xff]   ;;  %v13214_v45 = vld [vmem:[%s19189_s1 + $0xde0] ss:$52 sps:$4 sm:$0xff]  }
 0x12f   :  { %5605 = vmatpush2.bf16.msra.mxu0 %v13154_v46  ;;  %v13217_v46 = vld [vmem:[%s19189_s1 + $0x1460] ss:$52 sps:$4 sm:$0xff]  }
 0x130   :  { %5646 = vmatpush2.bf16.msra.mxu1 %v13157_v48  ;;  %5606 = vmatprep.subr.bf16.mxu0 %v13162_v49  ;;  %v13222_v48 = vld [vmem:[%s19189_s1 + $0xd7c] ss:$52 sps:$4 sm:$0xff]  }
 0x131   :  { %5647 = vmatprep.subr.bf16.mxu1 %v13165_v50  ;;  %v13225_v49 = vld [vmem:[%s19189_s1 + $0x13fc] ss:$52 sps:$4 sm:$0xff]   ;;  %v13220_v50 = vld [vmem:[%s19189_s1 + $0xd78] ss:$52 sps:$4 sm:$0xff]  }
 0x133   :  { %5607 = vmatpush2.bf16.msra.mxu0 %v13160_v52  ;;  %v13223_v52 = vld [vmem:[%s19189_s1 + $0x13f8] ss:$52 sps:$4 sm:$0xff]  }
 0x134   :  { %5648 = vmatpush2.bf16.msra.mxu1 %v13163_v53  ;;  %5608 = vmatprep.subr.bf16.mxu0 %v13168_v54  ;;  %v13228_v53 = vld [vmem:[%s19189_s1 + $0xd14] ss:$52 sps:$4 sm:$0xff]  }
 0x135   :  { %5649 = vmatprep.subr.bf16.mxu1 %v13171_v55  ;;  %v13231_v54 = vld [vmem:[%s19189_s1 + $0x1394] ss:$52 sps:$4 sm:$0xff]   ;;  %v13226_v55 = vld [vmem:[%s19189_s1 + $0xd10] ss:$52 sps:$4 sm:$0xff]  }
 0x137   :  { %5609 = vmatpush2.bf16.msra.mxu0 %v13166_v56  ;;  %v13229_v56 = vld [vmem:[%s19189_s1 + $0x1390] ss:$52 sps:$4 sm:$0xff]  }
 0x138   :  { %5650 = vmatpush2.bf16.msra.mxu1 %v13169_v57  ;;  %5610 = vmatprep.subr.bf16.mxu0 %v13174_v59  ;;  %v13234_v57 = vld [vmem:[%s19189_s1 + $0x132c] ss:$52 sps:$4 sm:$0xff]  }
 0x139   :  { %5651 = vmatprep.subr.bf16.mxu1 %v13177_v60  ;;  %v13237_v59 = vld [vmem:[%s19189_s1 + $0x19ac] ss:$52 sps:$4 sm:$0xff]   ;;  %v13232_v60 = vld [vmem:[%s19189_s1 + $0x1328] ss:$52 sps:$4 sm:$0xff]  }
 0x13b   :  { %5611 = vmatpush2.bf16.msra.mxu0 %v13172_v61  ;;  %v13235_v61 = vld [vmem:[%s19189_s1 + $0x19a8] ss:$52 sps:$4 sm:$0xff]  }
 0x13c   :  { %5652 = vmatpush2.bf16.msra.mxu1 %v13175_v62  ;;  %5612 = vmatprep.subr.bf16.mxu0 %v13180_v63  ;;  %v13240_v62 = vld [vmem:[%s19189_s1 + $0x12c4] ss:$52 sps:$4 sm:$0xff]  }
 0x13d   :  { %5653 = vmatprep.subr.bf16.mxu1 %v13183_v1  ;;  %v13243_v63 = vld [vmem:[%s19189_s1 + $0x1944] ss:$52 sps:$4 sm:$0xff]   ;;  %v13238_v1 = vld [vmem:[%s19189_s1 + $0x12c0] ss:$52 sps:$4 sm:$0xff]  }
 0x13f   :  { %5613 = vmatpush2.bf16.msra.mxu0 %v13178_v2  ;;  %v13241_v2 = vld [vmem:[%s19189_s1 + $0x1940] ss:$52 sps:$4 sm:$0xff]  }
 0x140   :  { %5654 = vmatpush2.bf16.msra.mxu1 %v13181_v3  ;;  %5664 = vmatprep.subr.bf16.mxu0 %v13186_v4  ;;  %v13246_v3 = vld [vmem:[%s19189_s1 + $0x125c] ss:$52 sps:$4 sm:$0xff]  }
 0x141   :  { %5705 = vmatprep.subr.bf16.mxu1 %v13189_v5  ;;  %v13249_v4 = vld [vmem:[%s19189_s1 + $0x18dc] ss:$52 sps:$4 sm:$0xff]   ;;  %v13244_v5 = vld [vmem:[%s19189_s1 + $0x1258] ss:$52 sps:$4 sm:$0xff]  }
 0x142   :  { %v5370_v14 = vpop.f32.mrf.mxu0  ;;  %5615 = vmatmul.mubr.bf16.vlgmr.msra.gmra.mxu0 %v14918_v6 }
 0x143   :  { %v5411_v15 = vpop.f32.mrf.mxu1  ;;  %5656 = vmatmul.mubr.bf16.vlgmr.msra.gmra.mxu1 %v14920_v7  ;;  %v5371_v18 = vadd.f32 %v5370_v14, %v15575_v58  ;;  %5665 = vmatpush1.bf16.msra.mxu0 %v13184_v8  ;;  %v13196_v58 = vld [vmem:[%s19189_s1 + $0xf18] ss:$52 sps:$4 sm:$0xff]  }
 0x144   :  { %5706 = vmatpush1.bf16.msra.mxu1 %v13187_v9  ;;  %v5372_v19 = vpop.f32.mrf.mxu0  ;;  %5666 = vmatprep.subr.bf16.mxu0 %v13192_v10  ;;  %v13247_v8 = vld [vmem:[%s19189_s1 + $0x18d8] ss:$52 sps:$4 sm:$0xff]   ;;  %v13252_v9 = vld [vmem:[%s19189_s1 + $0x11f4] ss:$52 sps:$4 sm:$0xff]  }
 0x145   :  { %v5413_v20 = vpop.f32.mrf.mxu1  ;;  %5707 = vmatprep.subr.bf16.mxu1 %v13195_v11  ;;  %v15776_v23 = vadd.f32 %v5411_v15, %v5371_v18  ;;  %v5373_v24 = vadd.f32 %v5372_v19, %v15585_v0  ;;  %5696 = vmatprep.mubr.bf16.mxu0 %v15014_v36  ;;  %v13255_v10 = vld [vmem:[%s19189_s1 + $0x1874] ss:$52 sps:$4 sm:$0xff]   ;;  %v13250_v11 = vld [vmem:[%s19189_s1 + $0x11f0] ss:$52 sps:$4 sm:$0xff]   ;;  %v13261_v14 = vld [vmem:[%s19189_s1 + $0x180c] ss:$52 sps:$4 sm:$0xff]  }
 0x146   :  { %5737 = vmatprep.mubr.bf16.mxu1 %v15018_v37  ;;  %v5374_v26 = vpop.f32.mrf.mxu0  ;;  %v13256_v15 = vld [vmem:[%s19189_s1 + $0x1188] ss:$52 sps:$4 sm:$0xff]   ;;  %v13264_v19 = vld [vmem:[%s19189_s1 + $0x1124] ss:$52 sps:$4 sm:$0xff]  }
 0x147   :  { %v5415_v27 = vpop.f32.mrf.mxu1  ;;  %v15787_v28 = vadd.f32 %v5413_v20, %v5373_v24  ;;  %5667 = vmatpush1.bf16.msra.mxu0 %v13190_v12  ;;  %v13253_v12 = vld [vmem:[%s19189_s1 + $0x1870] ss:$52 sps:$4 sm:$0xff]   ;;  %v13259_v18 = vld [vmem:[%s19189_s1 + $0x1808] ss:$52 sps:$4 sm:$0xff]   ;;  %v13271_v26 = vld [vmem:[%s19189_s1 + $0x1738] ss:$52 sps:$4 sm:$0xff]  }
 0x148   :  { %5708 = vmatpush1.bf16.msra.mxu1 %v13193_v13  ;;  %v5375_v30 = vpop.f32.mrf.mxu0  ;;  %5668 = vmatprep.subr.bf16.mxu0 %v13198_v21  ;;  %v13258_v13 = vld [vmem:[%s19189_s1 + $0x118c] ss:$52 sps:$4 sm:$0xff]   ;;  %v13267_v20 = vld [vmem:[%s19189_s1 + $0x17a4] ss:$52 sps:$4 sm:$0xff]   ;;  %v13270_v24 = vld [vmem:[%s19189_s1 + $0x10bc] ss:$52 sps:$4 sm:$0xff]  }
 0x149   :  { %v5416_v0 = vpop.f32.mrf.mxu1  ;;  %5709 = vmatprep.subr.bf16.mxu1 %v13201_v22  ;;  %v13262_v21 = vld [vmem:[%s19189_s1 + $0x1120] ss:$52 sps:$4 sm:$0xff]  }
 0x14a   :  { %v13265_v22 = vld [vmem:[%s19189_s1 + $0x17a0] ss:$52 sps:$4 sm:$0xff]   ;;  %v13274_v0 = vld [vmem:[%s19189_s1 + $0x1050] ss:$52 sps:$4 sm:$0xff]  }
 0x14b   :  { %5669 = vmatpush1.bf16.msra.mxu0 %v13196_v58  ;;  %v13273_v58 = vld [vmem:[%s19189_s1 + $0x173c] ss:$52 sps:$4 sm:$0xff]   ;;  %v13276_v27 = vld [vmem:[%s19189_s1 + $0x1054] ss:$52 sps:$4 sm:$0xff]  }
 0x14c   :  { %5710 = vmatpush1.bf16.msra.mxu1 %v13199_v25  ;;  %5670 = vmatprep.subr.bf16.mxu0 %v13204_v31  ;;  %v13268_v25 = vld [vmem:[%s19189_s1 + $0x10b8] ss:$52 sps:$4 sm:$0xff]   ;;  %v13279_v30 = vld [vmem:[%s19189_s1 + $0x16d4] ss:$52 sps:$4 sm:$0xff]   ;;  %v13277_v31 = vld [vmem:[%s19189_s1 + $0x16d0] ss:$52 sps:$4 sm:$0xff]  }
 0x14d   :  { %5711 = vmatprep.subr.bf16.mxu1 %v13207_v32  ;;  %v15946_v32 = vsub.s32 2, %v15518_v29 }
 0x14f   :  { %5671 = vmatpush1.bf16.msra.mxu0 %v13202_v33  ;;  %v13282_v33 = vld [vmem:[%s19189_s1 + $0x2f4] ss:$52 sps:$4 sm:$0xff]  }
 0x150   :  { %5712 = vmatpush1.bf16.msra.mxu1 %v13205_v34  ;;  %5672 = vmatprep.subr.bf16.mxu0 %v13210_v38  ;;  %v13285_v34 = vld [vmem:[%s19189_s1 + $0x974] ss:$52 sps:$4 sm:$0xff]   ;;  %v13280_v38 = vld [vmem:[%s19189_s1 + $0x2f0] ss:$52 sps:$4 sm:$0xff]  }
 0x151   :  { %5713 = vmatprep.subr.bf16.mxu1 %v13213_v39  ;;  %v13283_v39 = vld [vmem:[%s19189_s1 + $0x970] ss:$52 sps:$4 sm:$0xff]  }
 0x153   :  { %5673 = vmatpush1.bf16.msra.mxu0 %v13208_v41  ;;  %v15961_v41 = vsub.s32 3, %v15518_v29 }
 0x154   :  { %5714 = vmatpush1.bf16.msra.mxu1 %v13211_v42  ;;  %5674 = vmatprep.subr.bf16.mxu0 %v13216_v43  ;;  %v14650_v42 = vld [vmem:[%s19191_s2] sm:$0xff] }
 0x155   :  { %5715 = vmatprep.subr.bf16.mxu1 %v13219_v44  ;;  %v948_v43 = vrot.slane %v14650_v42, %v15946_v32  ;;  %v13288_v44 = vld [vmem:[%s19189_s1 + $0x28c] ss:$52 sps:$4 sm:$0xff]  }
 0x157   :  { %5675 = vmatpush1.bf16.msra.mxu0 %v13214_v45  ;;  %v13291_v45 = vld [vmem:[%s19189_s1 + $0x90c] ss:$52 sps:$4 sm:$0xff]  }
 0x158   :  { %5716 = vmatpush1.bf16.msra.mxu1 %v13217_v46  ;;  %5676 = vmatprep.subr.bf16.mxu0 %v13222_v48  ;;  %v952_v46 = vrot.slane %v14650_v42, %v15961_v41  ;;  %v13286_v48 = vld [vmem:[%s19189_s1 + $0x288] ss:$52 sps:$4 sm:$0xff]  }
 0x159   :  { %5717 = vmatprep.subr.bf16.mxu1 %v13225_v49  ;;  %v13289_v49 = vld [vmem:[%s19189_s1 + $0x908] ss:$52 sps:$4 sm:$0xff]  }
 0x15a   :  { %v13334_v42 = vld [vmem:[%s19189_s1 + $0x5c8] ss:$52 sps:$4 sm:$0xff]  }
 0x15b   :  { %5677 = vmatpush1.bf16.msra.mxu0 %v13220_v50 }
 0x15c   :  { %5718 = vmatpush1.bf16.msra.mxu1 %v13223_v52  ;;  %5678 = vmatprep.subr.bf16.mxu0 %v13228_v53 }
 0x15d   :  { %5719 = vmatprep.subr.bf16.mxu1 %v13231_v54 }
 0x15f   :  { %5679 = vmatpush1.bf16.msra.mxu0 %v13226_v55 }
 0x160   :  { %5720 = vmatpush1.bf16.msra.mxu1 %v13229_v56  ;;  %5680 = vmatprep.subr.bf16.mxu0 %v13234_v57  ;;  %v13294_v56 = vld [vmem:[%s19189_s1 + $0x224] ss:$52 sps:$4 sm:$0xff]  }
 0x161   :  { %5721 = vmatprep.subr.bf16.mxu1 %v13237_v59  ;;  %v13297_v57 = vld [vmem:[%s19189_s1 + $0x8a4] ss:$52 sps:$4 sm:$0xff]  }
 0x163   :  { %5681 = vmatpush2.bf16.msra.mxu0 %v13232_v60 }
 0x164   :  { %5722 = vmatpush2.bf16.msra.mxu1 %v13235_v61  ;;  %5682 = vmatprep.subr.bf16.mxu0 %v13240_v62  ;;  %v13292_v61 = vld [vmem:[%s19189_s1 + $0x220] ss:$52 sps:$4 sm:$0xff]  }
 0x165   :  { %5723 = vmatprep.subr.bf16.mxu1 %v13243_v63  ;;  %v13295_v62 = vld [vmem:[%s19189_s1 + $0x8a0] ss:$52 sps:$4 sm:$0xff]  }
 0x167   :  { %5683 = vmatpush2.bf16.msra.mxu0 %v13238_v1 }
 0x168   :  { %5724 = vmatpush2.bf16.msra.mxu1 %v13241_v2  ;;  %5684 = vmatprep.subr.bf16.mxu0 %v13246_v3 }
 0x169   :  { %5725 = vmatprep.subr.bf16.mxu1 %v13249_v4 }
 0x16b   :  { %5685 = vmatpush2.bf16.msra.mxu0 %v13244_v5  ;;  %v13300_v5 = vld [vmem:[%s19189_s1 + $0x1bc] ss:$52 sps:$4 sm:$0xff]  }
 0x16c   :  { %5726 = vmatpush2.bf16.msra.mxu1 %v13247_v8  ;;  %5686 = vmatprep.subr.bf16.mxu0 %v13252_v9  ;;  %v13303_v8 = vld [vmem:[%s19189_s1 + $0x83c] ss:$52 sps:$4 sm:$0xff]   ;;  %v13298_v9 = vld [vmem:[%s19189_s1 + $0x1b8] ss:$52 sps:$4 sm:$0xff]  }
 0x16d   :  { %5727 = vmatprep.subr.bf16.mxu1 %v13255_v10  ;;  %v13301_v10 = vld [vmem:[%s19189_s1 + $0x838] ss:$52 sps:$4 sm:$0xff]  }
 0x16f   :  { %5687 = vmatpush2.bf16.msra.mxu0 %v13250_v11  ;;  %v13306_v11 = vld [vmem:[%s19189_s1 + $0x154] ss:$52 sps:$4 sm:$0xff]  }
 0x170   :  { %5728 = vmatpush2.bf16.msra.mxu1 %v13253_v12  ;;  %5688 = vmatprep.subr.bf16.mxu0 %v13258_v13  ;;  %v13309_v12 = vld [vmem:[%s19189_s1 + $0x7d4] ss:$52 sps:$4 sm:$0xff]   ;;  %v13304_v13 = vld [vmem:[%s19189_s1 + $0x150] ss:$52 sps:$4 sm:$0xff]  }
 0x171   :  { %5729 = vmatprep.subr.bf16.mxu1 %v13261_v14  ;;  %v13307_v14 = vld [vmem:[%s19189_s1 + $0x7d0] ss:$52 sps:$4 sm:$0xff]  }
 0x173   :  { %5689 = vmatpush2.bf16.msra.mxu0 %v13256_v15  ;;  %v13312_v15 = vld [vmem:[%s19189_s1 + $0xec] ss:$52 sps:$4 sm:$0xff]  }
 0x174   :  { %5730 = vmatpush2.bf16.msra.mxu1 %v13259_v18  ;;  %5690 = vmatprep.subr.bf16.mxu0 %v13264_v19  ;;  %v13315_v18 = vld [vmem:[%s19189_s1 + $0x76c] ss:$52 sps:$4 sm:$0xff]   ;;  %v13310_v19 = vld [vmem:[%s19189_s1 + $0xe8] ss:$52 sps:$4 sm:$0xff]  }
 0x175   :  { %5731 = vmatprep.subr.bf16.mxu1 %v13267_v20  ;;  %v13313_v20 = vld [vmem:[%s19189_s1 + $0x768] ss:$52 sps:$4 sm:$0xff]  }
 0x177   :  { %5691 = vmatpush2.bf16.msra.mxu0 %v13262_v21  ;;  %v13318_v21 = vld [vmem:[%s19189_s1 + $0x84] ss:$52 sps:$4 sm:$0xff]  }
 0x178   :  { %5732 = vmatpush2.bf16.msra.mxu1 %v13265_v22  ;;  %5692 = vmatprep.subr.bf16.mxu0 %v13270_v24  ;;  %v13321_v22 = vld [vmem:[%s19189_s1 + $0x704] ss:$52 sps:$4 sm:$0xff]   ;;  %v13316_v24 = vld [vmem:[%s19189_s1 + $0x80] ss:$52 sps:$4 sm:$0xff]  }
 0x179   :  { %5733 = vmatprep.subr.bf16.mxu1 %v13273_v58  ;;  %v13319_v58 = vld [vmem:[%s19189_s1 + $0x700] ss:$52 sps:$4 sm:$0xff]  }
 0x17b   :  { %5693 = vmatpush2.bf16.msra.mxu0 %v13268_v25  ;;  %v13324_v25 = vld [vmem:[%s19189_s1 + $0x1c] ss:$52 sps:$4 sm:$0xff]  }
 0x17c   :  { %5734 = vmatpush2.bf16.msra.mxu1 %v13271_v26  ;;  %5694 = vmatprep.subr.bf16.mxu0 %v13276_v27  ;;  %v13327_v26 = vld [vmem:[%s19189_s1 + $0x69c] ss:$52 sps:$4 sm:$0xff]   ;;  %v13322_v27 = vld [vmem:[%s19189_s1 + $0x18] ss:$52 sps:$4 sm:$0xff]  }
 0x17d   :  { %5735 = vmatprep.subr.bf16.mxu1 %v13279_v30  ;;  %v13325_v30 = vld [vmem:[%s19189_s1 + $0x698] ss:$52 sps:$4 sm:$0xff]  }
 0x17f   :  { %5695 = vmatpush2.bf16.msra.mxu0 %v13274_v0  ;;  %v13330_v0 = vld [vmem:[%s19189_s1 + $0x634] ss:$52 sps:$4 sm:$0xff]  }
 0x180   :  { %5736 = vmatpush2.bf16.msra.mxu1 %v13277_v31  ;;  %5746 = vmatprep.subr.bf16.mxu0 %v13282_v33  ;;  %v13333_v31 = vld [vmem:[%s19189_s1 + $0xcb4] ss:$52 sps:$4 sm:$0xff]   ;;  %v13328_v33 = vld [vmem:[%s19189_s1 + $0x630] ss:$52 sps:$4 sm:$0xff]  }
 0x181   :  { %5787 = vmatprep.subr.bf16.mxu1 %v13285_v34  ;;  %v13331_v34 = vld [vmem:[%s19189_s1 + $0xcb0] ss:$52 sps:$4 sm:$0xff]  }
 0x182   :  { %v5452_v50 = vpop.f32.mrf.mxu0  ;;  %5697 = vmatmul.mubr.bf16.vlgmr.msra.gmra.mxu0 %v15138_v16 }
 0x183   :  { %v5493_v52 = vpop.f32.mrf.mxu1  ;;  %5738 = vmatmul.mubr.bf16.vlgmr.msra.gmra.mxu1 %v15142_v17  ;;  %v5453_v53 = vadd.f32 %v5452_v50, %v948_v43  ;;  %5747 = vmatpush1.bf16.msra.mxu0 %v13280_v38  ;;  %v13336_v38 = vld [vmem:[%s19189_s1 + $0x5cc] ss:$52 sps:$4 sm:$0xff]   ;;  %v13337_v43 = vld [vmem:[%s19189_s1 + $0xc48] ss:$52 sps:$4 sm:$0xff]  }
 0x184   :  { %5788 = vmatpush1.bf16.msra.mxu1 %v13283_v39  ;;  %v5454_v54 = vpop.f32.mrf.mxu0  ;;  %5748 = vmatprep.subr.bf16.mxu0 %v13288_v44  ;;  %v13339_v39 = vld [vmem:[%s19189_s1 + $0xc4c] ss:$52 sps:$4 sm:$0xff]   ;;  %v13342_v44 = vld [vmem:[%s19189_s1 + $0x564] ss:$52 sps:$4 sm:$0xff]   ;;  %v13351_v50 = vld [vmem:[%s19189_s1 + $0xb7c] ss:$52 sps:$4 sm:$0xff]  }
 0x185   :  { %v5495_v55 = vpop.f32.mrf.mxu1  ;;  %5789 = vmatprep.subr.bf16.mxu1 %v13291_v45  ;;  %v15988_v59 = vadd.f32 %v5493_v52, %v5453_v53  ;;  %v5455_v60 = vadd.f32 %v5454_v54, %v952_v46  ;;  %5778 = vmatprep.mubr.bf16.mxu0 %v14849_v47  ;;  %v13345_v45 = vld [vmem:[%s19189_s1 + $0xbe4] ss:$52 sps:$4 sm:$0xff]   ;;  %v13340_v46 = vld [vmem:[%s19189_s1 + $0x560] ss:$52 sps:$4 sm:$0xff]  }
 0x186   :  { %5819 = vmatprep.mubr.bf16.mxu1 %v14860_v51  ;;  %v5456_v63 = vpop.f32.mrf.mxu0  ;;  %v13346_v52 = vld [vmem:[%s19189_s1 + $0x4f8] ss:$52 sps:$4 sm:$0xff]   ;;  %v13354_v54 = vld [vmem:[%s19189_s1 + $0x494] ss:$52 sps:$4 sm:$0xff]  }
 0x187   :  { %v5497_v1 = vpop.f32.mrf.mxu1  ;;  %v15998_v2 = vadd.f32 %v5495_v55, %v5455_v60  ;;  %5749 = vmatpush1.bf16.msra.mxu0 %v13286_v48  ;;  %v13343_v48 = vld [vmem:[%s19189_s1 + $0xbe0] ss:$52 sps:$4 sm:$0xff]   ;;  %v13349_v53 = vld [vmem:[%s19189_s1 + $0xb78] ss:$52 sps:$4 sm:$0xff]   ;;  %v13361_v63 = vld [vmem:[%s19189_s1 + $0xaa8] ss:$52 sps:$4 sm:$0xff]  }
 0x188   :  { %5790 = vmatpush1.bf16.msra.mxu1 %v13289_v49  ;;  %v5457_v3 = vpop.f32.mrf.mxu0  ;;  %5750 = vmatprep.subr.bf16.mxu0 %v13294_v56  ;;  %v13348_v49 = vld [vmem:[%s19189_s1 + $0x4fc] ss:$52 sps:$4 sm:$0xff]   ;;  %v13357_v55 = vld [vmem:[%s19189_s1 + $0xb14] ss:$52 sps:$4 sm:$0xff]   ;;  %v13360_v60 = vld [vmem:[%s19189_s1 + $0x42c] ss:$52 sps:$4 sm:$0xff]  }
 0x189   :  { %v5498_v4 = vpop.f32.mrf.mxu1  ;;  %5791 = vmatprep.subr.bf16.mxu1 %v13297_v57  ;;  %v13352_v56 = vld [vmem:[%s19189_s1 + $0x490] ss:$52 sps:$4 sm:$0xff]  }
 0x18a   :  { %v13355_v57 = vld [vmem:[%s19189_s1 + $0xb10] ss:$52 sps:$4 sm:$0xff]   ;;  %v13364_v4 = vld [vmem:[%s19189_s1 + $0x3c0] ss:$52 sps:$4 sm:$0xff]  }
 0x18b   :  { %5751 = vmatpush1.bf16.msra.mxu0 %v13292_v61  ;;  %v13363_v61 = vld [vmem:[%s19189_s1 + $0xaac] ss:$52 sps:$4 sm:$0xff]   ;;  %v13366_v1 = vld [vmem:[%s19189_s1 + $0x3c4] ss:$52 sps:$4 sm:$0xff]  }
 0x18c   :  { %5792 = vmatpush1.bf16.msra.mxu1 %v13295_v62  ;;  %5752 = vmatprep.subr.bf16.mxu0 %v13300_v5  ;;  %v13358_v62 = vld [vmem:[%s19189_s1 + $0x428] ss:$52 sps:$4 sm:$0xff]   ;;  %v13369_v3 = vld [vmem:[%s19189_s1 + $0xa44] ss:$52 sps:$4 sm:$0xff]   ;;  %v13367_v5 = vld [vmem:[%s19189_s1 + $0xa40] ss:$52 sps:$4 sm:$0xff]  }
 0x18d   :  { %5793 = vmatprep.subr.bf16.mxu1 %v13303_v8  ;;  %v13372_v8 = vld [vmem:[%s19189_s1 + $0x35c] ss:$52 sps:$4 sm:$0xff]  }
 0x18f   :  { %5753 = vmatpush1.bf16.msra.mxu0 %v13298_v9  ;;  %v13375_v9 = vld [vmem:[%s19189_s1 + $0x9dc] ss:$52 sps:$4 sm:$0xff]  }
 0x190   :  { %5794 = vmatpush1.bf16.msra.mxu1 %v13301_v10  ;;  %5754 = vmatprep.subr.bf16.mxu0 %v13306_v11  ;;  %v13370_v10 = vld [vmem:[%s19189_s1 + $0x358] ss:$52 sps:$4 sm:$0xff]  }
 0x191   :  { %5795 = vmatprep.subr.bf16.mxu1 %v13309_v12  ;;  %v13373_v11 = vld [vmem:[%s19189_s1 + $0x9d8] ss:$52 sps:$4 sm:$0xff]   ;;  %v13378_v12 = vld [vmem:[%s19189_s1 + $0xff4] ss:$52 sps:$4 sm:$0xff]  }
 0x193   :  { %5755 = vmatpush1.bf16.msra.mxu0 %v13304_v13  ;;  %v13381_v13 = vld [vmem:[%s19189_s1 + $0x1674] ss:$52 sps:$4 sm:$0xff]  }
 0x194   :  { %5796 = vmatpush1.bf16.msra.mxu1 %v13307_v14  ;;  %5756 = vmatprep.subr.bf16.mxu0 %v13312_v15  ;;  %v13376_v14 = vld [vmem:[%s19189_s1 + $0xff0] ss:$52 sps:$4 sm:$0xff]  }
 0x195   :  { %5797 = vmatprep.subr.bf16.mxu1 %v13315_v18  ;;  %v13379_v15 = vld [vmem:[%s19189_s1 + $0x1670] ss:$52 sps:$4 sm:$0xff]   ;;  %v13384_v18 = vld [vmem:[%s19189_s1 + $0xf8c] ss:$52 sps:$4 sm:$0xff]  }
 0x197   :  { %5757 = vmatpush1.bf16.msra.mxu0 %v13310_v19  ;;  %v13387_v19 = vld [vmem:[%s19189_s1 + $0x160c] ss:$52 sps:$4 sm:$0xff]  }
 0x198   :  { %5798 = vmatpush1.bf16.msra.mxu1 %v13313_v20  ;;  %5758 = vmatprep.subr.bf16.mxu0 %v13318_v21  ;;  %v13382_v20 = vld [vmem:[%s19189_s1 + $0xf88] ss:$52 sps:$4 sm:$0xff]  }
 0x199   :  { %5799 = vmatprep.subr.bf16.mxu1 %v13321_v22  ;;  %v13385_v21 = vld [vmem:[%s19189_s1 + $0x1608] ss:$52 sps:$4 sm:$0xff]  }
 0x19b   :  { %5759 = vmatpush1.bf16.msra.mxu0 %v13316_v24 }
 0x19c   :  { %5800 = vmatpush1.bf16.msra.mxu1 %v13319_v58  ;;  %5760 = vmatprep.subr.bf16.mxu0 %v13324_v25 }
 0x19d   :  { %5801 = vmatprep.subr.bf16.mxu1 %v13327_v26 }
 0x19f   :  { %5761 = vmatpush1.bf16.msra.mxu0 %v13322_v27  ;;  %v13390_v27 = vld [vmem:[%s19189_s1 + $0xf24] ss:$52 sps:$4 sm:$0xff]  }
 0x1a0   :  { %5802 = vmatpush1.bf16.msra.mxu1 %v13325_v30  ;;  %5762 = vmatprep.subr.bf16.mxu0 %v13330_v0  ;;  %v13393_v30 = vld [vmem:[%s19189_s1 + $0x15a4] ss:$52 sps:$4 sm:$0xff]  }
 0x1a1   :  { %5803 = vmatprep.subr.bf16.mxu1 %v13333_v31 }
 0x1a3   :  { %5763 = vmatpush2.bf16.msra.mxu0 %v13328_v33 }
 0x1a4   :  { %5804 = vmatpush2.bf16.msra.mxu1 %v13331_v34  ;;  %5764 = vmatprep.subr.bf16.mxu0 %v13336_v38 }
 0x1a5   :  { %5805 = vmatprep.subr.bf16.mxu1 %v13339_v39  ;;  %v13391_v39 = vld [vmem:[%s19189_s1 + $0x15a0] ss:$52 sps:$4 sm:$0xff]  }
 0x1a7   :  { %5765 = vmatpush2.bf16.msra.mxu0 %v13334_v42 }
 0x1a8   :  { %5806 = vmatpush2.bf16.msra.mxu1 %v13337_v43  ;;  %5766 = vmatprep.subr.bf16.mxu0 %v13342_v44  ;;  %v13396_v43 = vld [vmem:[%s19189_s1 + $0xebc] ss:$52 sps:$4 sm:$0xff]  }
 0x1a9   :  { %5807 = vmatprep.subr.bf16.mxu1 %v13345_v45  ;;  %v13399_v44 = vld [vmem:[%s19189_s1 + $0x153c] ss:$52 sps:$4 sm:$0xff]   ;;  %v13394_v45 = vld [vmem:[%s19189_s1 + $0xeb8] ss:$52 sps:$4 sm:$0xff]  }
 0x1ab   :  { %5767 = vmatpush2.bf16.msra.mxu0 %v13340_v46  ;;  %v13397_v46 = vld [vmem:[%s19189_s1 + $0x1538] ss:$52 sps:$4 sm:$0xff]  }
 0x1ac   :  { %5808 = vmatpush2.bf16.msra.mxu1 %v13343_v48  ;;  %5768 = vmatprep.subr.bf16.mxu0 %v13348_v49  ;;  %v13402_v48 = vld [vmem:[%s19189_s1 + $0xe54] ss:$52 sps:$4 sm:$0xff]  }
 0x1ad   :  { %5809 = vmatprep.subr.bf16.mxu1 %v13351_v50  ;;  %v13405_v49 = vld [vmem:[%s19189_s1 + $0x14d4] ss:$52 sps:$4 sm:$0xff]   ;;  %v13400_v50 = vld [vmem:[%s19189_s1 + $0xe50] ss:$52 sps:$4 sm:$0xff]  }
 0x1af   :  { %5769 = vmatpush2.bf16.msra.mxu0 %v13346_v52  ;;  %v13403_v52 = vld [vmem:[%s19189_s1 + $0x14d0] ss:$52 sps:$4 sm:$0xff]  }
 0x1b0   :  { %5810 = vmatpush2.bf16.msra.mxu1 %v13349_v53  ;;  %5770 = vmatprep.subr.bf16.mxu0 %v13354_v54  ;;  %v13408_v53 = vld [vmem:[%s19189_s1 + $0xdec] ss:$52 sps:$4 sm:$0xff]  }
 0x1b1   :  { %5811 = vmatprep.subr.bf16.mxu1 %v13357_v55  ;;  %v13411_v54 = vld [vmem:[%s19189_s1 + $0x146c] ss:$52 sps:$4 sm:$0xff]   ;;  %v13406_v55 = vld [vmem:[%s19189_s1 + $0xde8] ss:$52 sps:$4 sm:$0xff]  }
 0x1b3   :  { %5771 = vmatpush2.bf16.msra.mxu0 %v13352_v56  ;;  %v13409_v56 = vld [vmem:[%s19189_s1 + $0x1468] ss:$52 sps:$4 sm:$0xff]  }
 0x1b4   :  { %5812 = vmatpush2.bf16.msra.mxu1 %v13355_v57  ;;  %5772 = vmatprep.subr.bf16.mxu0 %v13360_v60  ;;  %v13414_v57 = vld [vmem:[%s19189_s1 + $0xd84] ss:$52 sps:$4 sm:$0xff]  }
 0x1b5   :  { %5813 = vmatprep.subr.bf16.mxu1 %v13363_v61  ;;  %v13417_v60 = vld [vmem:[%s19189_s1 + $0x1404] ss:$52 sps:$4 sm:$0xff]   ;;  %v13412_v61 = vld [vmem:[%s19189_s1 + $0xd80] ss:$52 sps:$4 sm:$0xff]  }
 0x1b7   :  { %5773 = vmatpush2.bf16.msra.mxu0 %v13358_v62  ;;  %v13415_v62 = vld [vmem:[%s19189_s1 + $0x1400] ss:$52 sps:$4 sm:$0xff]  }
 0x1b8   :  { %5814 = vmatpush2.bf16.msra.mxu1 %v13361_v63  ;;  %5774 = vmatprep.subr.bf16.mxu0 %v13366_v1  ;;  %v13420_v63 = vld [vmem:[%s19189_s1 + $0xd1c] ss:$52 sps:$4 sm:$0xff]  }
 0x1b9   :  { %5815 = vmatprep.subr.bf16.mxu1 %v13369_v3  ;;  %v13423_v1 = vld [vmem:[%s19189_s1 + $0x139c] ss:$52 sps:$4 sm:$0xff]   ;;  %v13418_v3 = vld [vmem:[%s19189_s1 + $0xd18] ss:$52 sps:$4 sm:$0xff]  }
 0x1bb   :  { %5775 = vmatpush2.bf16.msra.mxu0 %v13364_v4  ;;  %v13421_v4 = vld [vmem:[%s19189_s1 + $0x1398] ss:$52 sps:$4 sm:$0xff]  }
 0x1bc   :  { %5816 = vmatpush2.bf16.msra.mxu1 %v13367_v5  ;;  %5776 = vmatprep.subr.bf16.mxu0 %v13372_v8  ;;  %v13426_v5 = vld [vmem:[%s19189_s1 + $0x1334] ss:$52 sps:$4 sm:$0xff]  }
 0x1bd   :  { %5817 = vmatprep.subr.bf16.mxu1 %v13375_v9  ;;  %v13429_v8 = vld [vmem:[%s19189_s1 + $0x19b4] ss:$52 sps:$4 sm:$0xff]   ;;  %v13424_v9 = vld [vmem:[%s19189_s1 + $0x1330] ss:$52 sps:$4 sm:$0xff]  }
 0x1bf   :  { %5777 = vmatpush2.bf16.msra.mxu0 %v13370_v10  ;;  %v13427_v10 = vld [vmem:[%s19189_s1 + $0x19b0] ss:$52 sps:$4 sm:$0xff]  }
 0x1c0   :  { %5818 = vmatpush2.bf16.msra.mxu1 %v13373_v11  ;;  %5828 = vmatprep.subr.bf16.mxu0 %v13378_v12  ;;  %v13432_v11 = vld [vmem:[%s19189_s1 + $0x12cc] ss:$52 sps:$4 sm:$0xff]  }
 0x1c1   :  { %5869 = vmatprep.subr.bf16.mxu1 %v13381_v13  ;;  %v13435_v12 = vld [vmem:[%s19189_s1 + $0x194c] ss:$52 sps:$4 sm:$0xff]   ;;  %v13430_v13 = vld [vmem:[%s19189_s1 + $0x12c8] ss:$52 sps:$4 sm:$0xff]  }
 0x1c2   :  { %v5534_v22 = vpop.f32.mrf.mxu0  ;;  %5779 = vmatmul.mubr.bf16.vlgmr.msra.gmra.mxu0 %v14918_v6 }
 0x1c3   :  { %v5575_v24 = vpop.f32.mrf.mxu1  ;;  %5820 = vmatmul.mubr.bf16.vlgmr.msra.gmra.mxu1 %v14920_v7  ;;  %v5535_v58 = vadd.f32 %v5534_v22, %v15988_v59  ;;  %5829 = vmatpush1.bf16.msra.mxu0 %v13376_v14  ;;  %v13388_v59 = vld [vmem:[%s19189_s1 + $0xf20] ss:$52 sps:$4 sm:$0xff]   ;;  %v13433_v14 = vld [vmem:[%s19189_s1 + $0x1948] ss:$52 sps:$4 sm:$0xff]  }
 0x1c4   :  { %5870 = vmatpush1.bf16.msra.mxu1 %v13379_v15  ;;  %v5536_v25 = vpop.f32.mrf.mxu0  ;;  %5830 = vmatprep.subr.bf16.mxu0 %v13384_v18  ;;  %v13438_v15 = vld [vmem:[%s19189_s1 + $0x1264] ss:$52 sps:$4 sm:$0xff]   ;;  %v13447_v22 = vld [vmem:[%s19189_s1 + $0x187c] ss:$52 sps:$4 sm:$0xff]  }
 0x1c5   :  { %v5577_v26 = vpop.f32.mrf.mxu1  ;;  %5871 = vmatprep.subr.bf16.mxu1 %v13387_v19  ;;  %v16189_v0 = vadd.f32 %v5575_v24, %v5535_v58  ;;  %v5537_v31 = vadd.f32 %v5536_v25, %v15998_v2  ;;  %5860 = vmatprep.mubr.bf16.mxu0 %v15014_v36  ;;  %v13441_v18 = vld [vmem:[%s19189_s1 + $0x18e4] ss:$52 sps:$4 sm:$0xff]   ;;  %v13436_v19 = vld [vmem:[%s19189_s1 + $0x1260] ss:$52 sps:$4 sm:$0xff]  }
 0x1c6   :  { %5901 = vmatprep.mubr.bf16.mxu1 %v15018_v37  ;;  %v5538_v33 = vpop.f32.mrf.mxu0  ;;  %v13442_v24 = vld [vmem:[%s19189_s1 + $0x11f8] ss:$52 sps:$4 sm:$0xff]   ;;  %v13450_v25 = vld [vmem:[%s19189_s1 + $0x1194] ss:$52 sps:$4 sm:$0xff]  }
 0x1c7   :  { %v5579_v34 = vpop.f32.mrf.mxu1  ;;  %v16197_v38 = vadd.f32 %v5577_v26, %v5537_v31  ;;  %5831 = vmatpush1.bf16.msra.mxu0 %v13382_v20  ;;  %v13439_v20 = vld [vmem:[%s19189_s1 + $0x18e0] ss:$52 sps:$4 sm:$0xff]   ;;  %v13445_v58 = vld [vmem:[%s19189_s1 + $0x1878] ss:$52 sps:$4 sm:$0xff]   ;;  %v13454_v33 = vld [vmem:[%s19189_s1 + $0x1128] ss:$52 sps:$4 sm:$0xff]  }
 0x1c8   :  { %5872 = vmatpush1.bf16.msra.mxu1 %v13385_v21  ;;  %v5539_v42 = vpop.f32.mrf.mxu0  ;;  %5832 = vmatprep.subr.bf16.mxu0 %v13390_v27  ;;  %v13444_v21 = vld [vmem:[%s19189_s1 + $0x11fc] ss:$52 sps:$4 sm:$0xff]   ;;  %v13453_v26 = vld [vmem:[%s19189_s1 + $0x1814] ss:$52 sps:$4 sm:$0xff]   ;;  %v13456_v31 = vld [vmem:[%s19189_s1 + $0x112c] ss:$52 sps:$4 sm:$0xff]  }
 0x1c9   :  { %v5580_v2 = vpop.f32.mrf.mxu1  ;;  %5873 = vmatprep.subr.bf16.mxu1 %v13393_v30  ;;  %v13448_v27 = vld [vmem:[%s19189_s1 + $0x1190] ss:$52 sps:$4 sm:$0xff]   ;;  %v13457_v34 = vld [vmem:[%s19189_s1 + $0x17a8] ss:$52 sps:$4 sm:$0xff]  }
 0x1ca   :  { %v13451_v30 = vld [vmem:[%s19189_s1 + $0x1810] ss:$52 sps:$4 sm:$0xff]   ;;  %v13460_v2 = vld [vmem:[%s19189_s1 + $0x10c0] ss:$52 sps:$4 sm:$0xff]  }
 0x1cb   :  { %5833 = vmatpush1.bf16.msra.mxu0 %v13388_v59  ;;  %v13459_v59 = vld [vmem:[%s19189_s1 + $0x17ac] ss:$52 sps:$4 sm:$0xff]   ;;  %v13465_v42 = vld [vmem:[%s19189_s1 + $0x1744] ss:$52 sps:$4 sm:$0xff]  }
 0x1cc   :  { %5874 = vmatpush1.bf16.msra.mxu1 %v13391_v39  ;;  %5834 = vmatprep.subr.bf16.mxu0 %v13396_v43  ;;  %v13462_v39 = vld [vmem:[%s19189_s1 + $0x10c4] ss:$52 sps:$4 sm:$0xff]   ;;  %v13463_v43 = vld [vmem:[%s19189_s1 + $0x1740] ss:$52 sps:$4 sm:$0xff]  }
 0x1cd   :  { %5875 = vmatprep.subr.bf16.mxu1 %v13399_v44  ;;  %v13468_v44 = vld [vmem:[%s19189_s1 + $0x105c] ss:$52 sps:$4 sm:$0xff]  }
 0x1cf   :  { %5835 = vmatpush1.bf16.msra.mxu0 %v13394_v45  ;;  %v13471_v45 = vld [vmem:[%s19189_s1 + $0x16dc] ss:$52 sps:$4 sm:$0xff]  }
 0x1d0   :  { %5876 = vmatpush1.bf16.msra.mxu1 %v13397_v46  ;;  %5836 = vmatprep.subr.bf16.mxu0 %v13402_v48  ;;  %v13466_v46 = vld [vmem:[%s19189_s1 + $0x1058] ss:$52 sps:$4 sm:$0xff]  }
 0x1d1   :  { %5877 = vmatprep.subr.bf16.mxu1 %v13405_v49  ;;  %v13469_v48 = vld [vmem:[%s19189_s1 + $0x16d8] ss:$52 sps:$4 sm:$0xff]   ;;  %v16359_v49 = vsub.s32 4, %v15518_v29 }
 0x1d3   :  { %5837 = vmatpush1.bf16.msra.mxu0 %v13400_v50  ;;  %v13474_v50 = vld [vmem:[%s19189_s1 + $0x2fc] ss:$52 sps:$4 sm:$0xff]  }
 0x1d4   :  { %5878 = vmatpush1.bf16.msra.mxu1 %v13403_v52  ;;  %5838 = vmatprep.subr.bf16.mxu0 %v13408_v53  ;;  %v13477_v52 = vld [vmem:[%s19189_s1 + $0x97c] ss:$52 sps:$4 sm:$0xff]   ;;  %v959_v53 = vsub.s32 5, %v15518_v29 }
 0x1d5   :  { %5879 = vmatprep.subr.bf16.mxu1 %v13411_v54  ;;  %v13472_v54 = vld [vmem:[%s19189_s1 + $0x2f8] ss:$52 sps:$4 sm:$0xff]  }
 0x1d7   :  { %5839 = vmatpush1.bf16.msra.mxu0 %v13406_v55  ;;  %v16374_v55 = vld [vmem:[%s19191_s2] sm:$0xff] }
 0x1d8   :  { %5880 = vmatpush1.bf16.msra.mxu1 %v13409_v56  ;;  %5840 = vmatprep.subr.bf16.mxu0 %v13414_v57  ;;  %v956_v56 = vrot.slane %v16374_v55, %v16359_v49  ;;  %v13475_v57 = vld [vmem:[%s19189_s1 + $0x978] ss:$52 sps:$4 sm:$0xff]  }
 0x1d9   :  { %5881 = vmatprep.subr.bf16.mxu1 %v13417_v60  ;;  %v13480_v60 = vld [vmem:[%s19189_s1 + $0x294] ss:$52 sps:$4 sm:$0xff]  }
 0x1db   :  { %5841 = vmatpush1.bf16.msra.mxu0 %v13412_v61  ;;  %v13483_v61 = vld [vmem:[%s19189_s1 + $0x914] ss:$52 sps:$4 sm:$0xff]  }
 0x1dc   :  { %5882 = vmatpush1.bf16.msra.mxu1 %v13415_v62  ;;  %5842 = vmatprep.subr.bf16.mxu0 %v13420_v63  ;;  %v960_v62 = vrot.slane %v16374_v55, %v959_v53  ;;  %v13522_v53 = vld [vmem:[%s19189_s1 + $0x63c] ss:$52 sps:$4 sm:$0xff]  }
 0x1dd   :  { %5883 = vmatprep.subr.bf16.mxu1 %v13423_v1 }
 0x1df   :  { %5843 = vmatpush1.bf16.msra.mxu0 %v13418_v3 }
 0x1e0   :  { %5884 = vmatpush1.bf16.msra.mxu1 %v13421_v4  ;;  %5844 = vmatprep.subr.bf16.mxu0 %v13426_v5  ;;  %v13478_v4 = vld [vmem:[%s19189_s1 + $0x290] ss:$52 sps:$4 sm:$0xff]  }
 0x1e1   :  { %5885 = vmatprep.subr.bf16.mxu1 %v13429_v8  ;;  %v13481_v5 = vld [vmem:[%s19189_s1 + $0x910] ss:$52 sps:$4 sm:$0xff]  }
 0x1e3   :  { %5845 = vmatpush2.bf16.msra.mxu0 %v13424_v9 }
 0x1e4   :  { %5886 = vmatpush2.bf16.msra.mxu1 %v13427_v10  ;;  %5846 = vmatprep.subr.bf16.mxu0 %v13432_v11  ;;  %v13486_v10 = vld [vmem:[%s19189_s1 + $0x22c] ss:$52 sps:$4 sm:$0xff]  }
 0x1e5   :  { %5887 = vmatprep.subr.bf16.mxu1 %v13435_v12  ;;  %v13489_v11 = vld [vmem:[%s19189_s1 + $0x8ac] ss:$52 sps:$4 sm:$0xff]  }
 0x1e7   :  { %5847 = vmatpush2.bf16.msra.mxu0 %v13430_v13 }
 0x1e8   :  { %5888 = vmatpush2.bf16.msra.mxu1 %v13433_v14  ;;  %5848 = vmatprep.subr.bf16.mxu0 %v13438_v15 }
 0x1e9   :  { %5889 = vmatprep.subr.bf16.mxu1 %v13441_v18 }
 0x1eb   :  { %5849 = vmatpush2.bf16.msra.mxu0 %v13436_v19  ;;  %v13484_v19 = vld [vmem:[%s19189_s1 + $0x228] ss:$52 sps:$4 sm:$0xff]  }
 0x1ec   :  { %5890 = vmatpush2.bf16.msra.mxu1 %v13439_v20  ;;  %5850 = vmatprep.subr.bf16.mxu0 %v13444_v21  ;;  %v13487_v20 = vld [vmem:[%s19189_s1 + $0x8a8] ss:$52 sps:$4 sm:$0xff]  }
 0x1ed   :  { %5891 = vmatprep.subr.bf16.mxu1 %v13447_v22 }
 0x1ef   :  { %5851 = vmatpush2.bf16.msra.mxu0 %v13442_v24  ;;  %v13492_v24 = vld [vmem:[%s19189_s1 + $0x1c4] ss:$52 sps:$4 sm:$0xff]  }
 0x1f0   :  { %5892 = vmatpush2.bf16.msra.mxu1 %v13445_v58  ;;  %5852 = vmatprep.subr.bf16.mxu0 %v13450_v25  ;;  %v13495_v58 = vld [vmem:[%s19189_s1 + $0x844] ss:$52 sps:$4 sm:$0xff]   ;;  %v13490_v25 = vld [vmem:[%s19189_s1 + $0x1c0] ss:$52 sps:$4 sm:$0xff]  }
 0x1f1   :  { %5893 = vmatprep.subr.bf16.mxu1 %v13453_v26  ;;  %v13493_v26 = vld [vmem:[%s19189_s1 + $0x840] ss:$52 sps:$4 sm:$0xff]  }
 0x1f3   :  { %5853 = vmatpush2.bf16.msra.mxu0 %v13448_v27  ;;  %v13498_v27 = vld [vmem:[%s19189_s1 + $0x15c] ss:$52 sps:$4 sm:$0xff]  }
 0x1f4   :  { %5894 = vmatpush2.bf16.msra.mxu1 %v13451_v30  ;;  %5854 = vmatprep.subr.bf16.mxu0 %v13456_v31  ;;  %v13501_v30 = vld [vmem:[%s19189_s1 + $0x7dc] ss:$52 sps:$4 sm:$0xff]   ;;  %v13496_v31 = vld [vmem:[%s19189_s1 + $0x158] ss:$52 sps:$4 sm:$0xff]  }
 0x1f5   :  { %5895 = vmatprep.subr.bf16.mxu1 %v13459_v59  ;;  %v13499_v59 = vld [vmem:[%s19189_s1 + $0x7d8] ss:$52 sps:$4 sm:$0xff]  }
 0x1f7   :  { %5855 = vmatpush2.bf16.msra.mxu0 %v13454_v33  ;;  %v13504_v33 = vld [vmem:[%s19189_s1 + $0xf4] ss:$52 sps:$4 sm:$0xff]  }
 0x1f8   :  { %5896 = vmatpush2.bf16.msra.mxu1 %v13457_v34  ;;  %5856 = vmatprep.subr.bf16.mxu0 %v13462_v39  ;;  %v13507_v34 = vld [vmem:[%s19189_s1 + $0x774] ss:$52 sps:$4 sm:$0xff]   ;;  %v13502_v39 = vld [vmem:[%s19189_s1 + $0xf0] ss:$52 sps:$4 sm:$0xff]  }
 0x1f9   :  { %5897 = vmatprep.subr.bf16.mxu1 %v13465_v42  ;;  %v13505_v42 = vld [vmem:[%s19189_s1 + $0x770] ss:$52 sps:$4 sm:$0xff]  }
 0x1fb   :  { %5857 = vmatpush2.bf16.msra.mxu0 %v13460_v2  ;;  %v13510_v2 = vld [vmem:[%s19189_s1 + $0x8c] ss:$52 sps:$4 sm:$0xff]  }
 0x1fc   :  { %5898 = vmatpush2.bf16.msra.mxu1 %v13463_v43  ;;  %5858 = vmatprep.subr.bf16.mxu0 %v13468_v44  ;;  %v13513_v43 = vld [vmem:[%s19189_s1 + $0x70c] ss:$52 sps:$4 sm:$0xff]   ;;  %v13508_v44 = vld [vmem:[%s19189_s1 + $0x88] ss:$52 sps:$4 sm:$0xff]  }
 0x1fd   :  { %5899 = vmatprep.subr.bf16.mxu1 %v13471_v45  ;;  %v13511_v45 = vld [vmem:[%s19189_s1 + $0x708] ss:$52 sps:$4 sm:$0xff]  }
 0x1ff   :  { %5859 = vmatpush2.bf16.msra.mxu0 %v13466_v46  ;;  %v13516_v46 = vld [vmem:[%s19189_s1 + $0x24] ss:$52 sps:$4 sm:$0xff]  }
 0x200   :  { %5900 = vmatpush2.bf16.msra.mxu1 %v13469_v48  ;;  %5910 = vmatprep.subr.bf16.mxu0 %v13474_v50  ;;  %v13519_v48 = vld [vmem:[%s19189_s1 + $0x6a4] ss:$52 sps:$4 sm:$0xff]   ;;  %v13514_v50 = vld [vmem:[%s19189_s1 + $0x20] ss:$52 sps:$4 sm:$0xff]  }
 0x201   :  { %5951 = vmatprep.subr.bf16.mxu1 %v13477_v52  ;;  %v13517_v52 = vld [vmem:[%s19189_s1 + $0x6a0] ss:$52 sps:$4 sm:$0xff]  }
 0x202   :  { %v5616_v63 = vpop.f32.mrf.mxu0  ;;  %5861 = vmatmul.mubr.bf16.vlgmr.msra.gmra.mxu0 %v15138_v16 }
 0x203   :  { %v5657_v1 = vpop.f32.mrf.mxu1  ;;  %5902 = vmatmul.mubr.bf16.vlgmr.msra.gmra.mxu1 %v15142_v17  ;;  %v5617_v3 = vadd.f32 %v5616_v63, %v956_v56  ;;  %5911 = vmatpush1.bf16.msra.mxu0 %v13472_v54  ;;  %v13525_v54 = vld [vmem:[%s19189_s1 + $0xcbc] ss:$52 sps:$4 sm:$0xff]   ;;  %v13520_v56 = vld [vmem:[%s19189_s1 + $0x638] ss:$52 sps:$4 sm:$0xff]  }
 0x204   :  { %5952 = vmatpush1.bf16.msra.mxu1 %v13475_v57  ;;  %v5618_v8 = vpop.f32.mrf.mxu0  ;;  %5912 = vmatprep.subr.bf16.mxu0 %v13480_v60  ;;  %v13523_v57 = vld [vmem:[%s19189_s1 + $0xcb8] ss:$52 sps:$4 sm:$0xff]   ;;  %v13528_v60 = vld [vmem:[%s19189_s1 + $0x5d4] ss:$52 sps:$4 sm:$0xff]   ;;  %v13529_v63 = vld [vmem:[%s19189_s1 + $0xc50] ss:$52 sps:$4 sm:$0xff]  }
 0x205   :  { %v5659_v9 = vpop.f32.mrf.mxu1  ;;  %5953 = vmatprep.subr.bf16.mxu1 %v13483_v61  ;;  %v16402_v12 = vadd.f32 %v5657_v1, %v5617_v3  ;;  %v5619_v13 = vadd.f32 %v5618_v8, %v960_v62  ;;  %5942 = vmatprep.mubr.bf16.mxu0 %v14849_v47  ;;  %v13531_v61 = vld [vmem:[%s19189_s1 + $0xc54] ss:$52 sps:$4 sm:$0xff]   ;;  %v13526_v62 = vld [vmem:[%s19189_s1 + $0x5d0] ss:$52 sps:$4 sm:$0xff]   ;;  %v13534_v1 = vld [vmem:[%s19189_s1 + $0x56c] ss:$52 sps:$4 sm:$0xff]  }
 0x206   :  { %5983 = vmatprep.mubr.bf16.mxu1 %v14860_v51  ;;  %v5620_v14 = vpop.f32.mrf.mxu0  ;;  %v13537_v3 = vld [vmem:[%s19189_s1 + $0xbec] ss:$52 sps:$4 sm:$0xff]   ;;  %v13540_v8 = vld [vmem:[%s19189_s1 + $0x504] ss:$52 sps:$4 sm:$0xff]  }
 0x207   :  { %v5661_v15 = vpop.f32.mrf.mxu1  ;;  %v16406_v18 = vadd.f32 %v5659_v9, %v5619_v13  ;;  %5913 = vmatpush1.bf16.msra.mxu0 %v13478_v4  ;;  %v13532_v4 = vld [vmem:[%s19189_s1 + $0x568] ss:$52 sps:$4 sm:$0xff]   ;;  %v13543_v9 = vld [vmem:[%s19189_s1 + $0xb84] ss:$52 sps:$4 sm:$0xff]  }
 0x208   :  { %5954 = vmatpush1.bf16.msra.mxu1 %v13481_v5  ;;  %v5621_v21 = vpop.f32.mrf.mxu0  ;;  %5914 = vmatprep.subr.bf16.mxu0 %v13486_v10  ;;  %v13535_v5 = vld [vmem:[%s19189_s1 + $0xbe8] ss:$52 sps:$4 sm:$0xff]   ;;  %v13538_v10 = vld [vmem:[%s19189_s1 + $0x500] ss:$52 sps:$4 sm:$0xff]   ;;  %v13544_v15 = vld [vmem:[%s19189_s1 + $0x498] ss:$52 sps:$4 sm:$0xff]  }
 0x209   :  { %v5662_v22 = vpop.f32.mrf.mxu1  ;;  %5955 = vmatprep.subr.bf16.mxu1 %v13489_v11  ;;  %v13541_v11 = vld [vmem:[%s19189_s1 + $0xb80] ss:$52 sps:$4 sm:$0xff]   ;;  %v13546_v13 = vld [vmem:[%s19189_s1 + $0x49c] ss:$52 sps:$4 sm:$0xff]  }
 0x20a   :  { %v13549_v14 = vld [vmem:[%s19189_s1 + $0xb1c] ss:$52 sps:$4 sm:$0xff]   ;;  %v13555_v21 = vld [vmem:[%s19189_s1 + $0xab4] ss:$52 sps:$4 sm:$0xff]  }
 0x20b   :  { %5915 = vmatpush1.bf16.msra.mxu0 %v13484_v19  ;;  %v13547_v19 = vld [vmem:[%s19189_s1 + $0xb18] ss:$52 sps:$4 sm:$0xff]   ;;  %v13550_v22 = vld [vmem:[%s19189_s1 + $0x430] ss:$52 sps:$4 sm:$0xff]  }
 0x20c   :  { %5956 = vmatpush1.bf16.msra.mxu1 %v13487_v20  ;;  %5916 = vmatprep.subr.bf16.mxu0 %v13492_v24  ;;  %v13552_v20 = vld [vmem:[%s19189_s1 + $0x434] ss:$52 sps:$4 sm:$0xff]   ;;  %v13553_v24 = vld [vmem:[%s19189_s1 + $0xab0] ss:$52 sps:$4 sm:$0xff]  }
 0x20d   :  { %5957 = vmatprep.subr.bf16.mxu1 %v13495_v58  ;;  %v13558_v58 = vld [vmem:[%s19189_s1 + $0x3cc] ss:$52 sps:$4 sm:$0xff]  }
 0x20f   :  { %5917 = vmatpush1.bf16.msra.mxu0 %v13490_v25  ;;  %v13561_v25 = vld [vmem:[%s19189_s1 + $0xa4c] ss:$52 sps:$4 sm:$0xff]  }
 0x210   :  { %5958 = vmatpush1.bf16.msra.mxu1 %v13493_v26  ;;  %5918 = vmatprep.subr.bf16.mxu0 %v13498_v27  ;;  %v13556_v26 = vld [vmem:[%s19189_s1 + $0x3c8] ss:$52 sps:$4 sm:$0xff]  }
 0x211   :  { %5959 = vmatprep.subr.bf16.mxu1 %v13501_v30  ;;  %v13559_v27 = vld [vmem:[%s19189_s1 + $0xa48] ss:$52 sps:$4 sm:$0xff]   ;;  %v13564_v30 = vld [vmem:[%s19189_s1 + $0x364] ss:$52 sps:$4 sm:$0xff]  }
 0x213   :  { %5919 = vmatpush1.bf16.msra.mxu0 %v13496_v31  ;;  %v13567_v31 = vld [vmem:[%s19189_s1 + $0x9e4] ss:$52 sps:$4 sm:$0xff]  }
 0x214   :  { %5960 = vmatpush1.bf16.msra.mxu1 %v13499_v59  ;;  %5920 = vmatprep.subr.bf16.mxu0 %v13504_v33  ;;  %v13562_v59 = vld [vmem:[%s19189_s1 + $0x360] ss:$52 sps:$4 sm:$0xff]  }
 0x215   :  { %5961 = vmatprep.subr.bf16.mxu1 %v13507_v34  ;;  %v13565_v33 = vld [vmem:[%s19189_s1 + $0x9e0] ss:$52 sps:$4 sm:$0xff]   ;;  %v13570_v34 = vld [vmem:[%s19189_s1 + $0xffc] ss:$52 sps:$4 sm:$0xff]  }
 0x217   :  { %5921 = vmatpush1.bf16.msra.mxu0 %v13502_v39  ;;  %v13573_v39 = vld [vmem:[%s19189_s1 + $0x167c] ss:$52 sps:$4 sm:$0xff]  }
 0x218   :  { %5962 = vmatpush1.bf16.msra.mxu1 %v13505_v42  ;;  %5922 = vmatprep.subr.bf16.mxu0 %v13510_v2  ;;  %v13568_v42 = vld [vmem:[%s19189_s1 + $0xff8] ss:$52 sps:$4 sm:$0xff]  }
 0x219   :  { %5963 = vmatprep.subr.bf16.mxu1 %v13513_v43  ;;  %v13571_v2 = vld [vmem:[%s19189_s1 + $0x1678] ss:$52 sps:$4 sm:$0xff]   ;;  %v13576_v43 = vld [vmem:[%s19189_s1 + $0xf94] ss:$52 sps:$4 sm:$0xff]  }
 0x21b   :  { %5923 = vmatpush1.bf16.msra.mxu0 %v13508_v44  ;;  %v13579_v44 = vld [vmem:[%s19189_s1 + $0x1614] ss:$52 sps:$4 sm:$0xff]  }
 0x21c   :  { %5964 = vmatpush1.bf16.msra.mxu1 %v13511_v45  ;;  %5924 = vmatprep.subr.bf16.mxu0 %v13516_v46 }
 0x21d   :  { %5965 = vmatprep.subr.bf16.mxu1 %v13519_v48 }
 0x21f   :  { %5925 = vmatpush1.bf16.msra.mxu0 %v13514_v50  ;;  %v13574_v50 = vld [vmem:[%s19189_s1 + $0xf90] ss:$52 sps:$4 sm:$0xff]  }
 0x220   :  { %5966 = vmatpush1.bf16.msra.mxu1 %v13517_v52  ;;  %5926 = vmatprep.subr.bf16.mxu0 %v13522_v53  ;;  %v13577_v52 = vld [vmem:[%s19189_s1 + $0x1610] ss:$52 sps:$4 sm:$0xff]  }
 0x221   :  { %5967 = vmatprep.subr.bf16.mxu1 %v13525_v54 }
 0x223   :  { %5927 = vmatpush2.bf16.msra.mxu0 %v13520_v56  ;;  %v13582_v56 = vld [vmem:[%s19189_s1 + $0xf2c] ss:$52 sps:$4 sm:$0xff]  }
 0x224   :  { %5968 = vmatpush2.bf16.msra.mxu1 %v13523_v57  ;;  %5928 = vmatprep.subr.bf16.mxu0 %v13528_v60 }
 0x225   :  { %5969 = vmatprep.subr.bf16.mxu1 %v13531_v61 }
 0x227   :  { %5929 = vmatpush2.bf16.msra.mxu0 %v13526_v62 }
 0x228   :  { %5970 = vmatpush2.bf16.msra.mxu1 %v13529_v63  ;;  %5930 = vmatprep.subr.bf16.mxu0 %v13534_v1  ;;  %v13580_v1 = vld [vmem:[%s19189_s1 + $0xf28] ss:$52 sps:$4 sm:$0xff]  }
 0x229   :  { %5971 = vmatprep.subr.bf16.mxu1 %v13537_v3  ;;  %v13583_v3 = vld [vmem:[%s19189_s1 + $0x15a8] ss:$52 sps:$4 sm:$0xff]  }
 0x22b   :  { %5931 = vmatpush2.bf16.msra.mxu0 %v13532_v4 }
 0x22c   :  { %5972 = vmatpush2.bf16.msra.mxu1 %v13535_v5  ;;  %5932 = vmatprep.subr.bf16.mxu0 %v13540_v8  ;;  %v13588_v5 = vld [vmem:[%s19189_s1 + $0xec4] ss:$52 sps:$4 sm:$0xff]  }
 0x22d   :  { %5973 = vmatprep.subr.bf16.mxu1 %v13543_v9  ;;  %v13591_v8 = vld [vmem:[%s19189_s1 + $0x1544] ss:$52 sps:$4 sm:$0xff]   ;;  %v13586_v9 = vld [vmem:[%s19189_s1 + $0xec0] ss:$52 sps:$4 sm:$0xff]  }
 0x22f   :  { %5933 = vmatpush2.bf16.msra.mxu0 %v13538_v10  ;;  %v13589_v10 = vld [vmem:[%s19189_s1 + $0x1540] ss:$52 sps:$4 sm:$0xff]  }
 0x230   :  { %5974 = vmatpush2.bf16.msra.mxu1 %v13541_v11  ;;  %5934 = vmatprep.subr.bf16.mxu0 %v13546_v13  ;;  %v13594_v11 = vld [vmem:[%s19189_s1 + $0xe5c] ss:$52 sps:$4 sm:$0xff]  }
 0x231   :  { %5975 = vmatprep.subr.bf16.mxu1 %v13549_v14  ;;  %v13597_v13 = vld [vmem:[%s19189_s1 + $0x14dc] ss:$52 sps:$4 sm:$0xff]   ;;  %v13592_v14 = vld [vmem:[%s19189_s1 + $0xe58] ss:$52 sps:$4 sm:$0xff]  }
 0x233   :  { %5935 = vmatpush2.bf16.msra.mxu0 %v13544_v15  ;;  %v13595_v15 = vld [vmem:[%s19189_s1 + $0x14d8] ss:$52 sps:$4 sm:$0xff]  }
 0x234   :  { %5976 = vmatpush2.bf16.msra.mxu1 %v13547_v19  ;;  %5936 = vmatprep.subr.bf16.mxu0 %v13552_v20  ;;  %v13600_v19 = vld [vmem:[%s19189_s1 + $0xdf4] ss:$52 sps:$4 sm:$0xff]  }
 0x235   :  { %5977 = vmatprep.subr.bf16.mxu1 %v13555_v21  ;;  %v13603_v20 = vld [vmem:[%s19189_s1 + $0x1474] ss:$52 sps:$4 sm:$0xff]   ;;  %v13598_v21 = vld [vmem:[%s19189_s1 + $0xdf0] ss:$52 sps:$4 sm:$0xff]  }
 0x237   :  { %5937 = vmatpush2.bf16.msra.mxu0 %v13550_v22  ;;  %v13601_v22 = vld [vmem:[%s19189_s1 + $0x1470] ss:$52 sps:$4 sm:$0xff]  }
 0x238   :  { %5978 = vmatpush2.bf16.msra.mxu1 %v13553_v24  ;;  %5938 = vmatprep.subr.bf16.mxu0 %v13558_v58  ;;  %v13606_v24 = vld [vmem:[%s19189_s1 + $0xd8c] ss:$52 sps:$4 sm:$0xff]  }
 0x239   :  { %5979 = vmatprep.subr.bf16.mxu1 %v13561_v25  ;;  %v13609_v58 = vld [vmem:[%s19189_s1 + $0x140c] ss:$52 sps:$4 sm:$0xff]   ;;  %v13604_v25 = vld [vmem:[%s19189_s1 + $0xd88] ss:$52 sps:$4 sm:$0xff]  }
 0x23b   :  { %5939 = vmatpush2.bf16.msra.mxu0 %v13556_v26  ;;  %v13607_v26 = vld [vmem:[%s19189_s1 + $0x1408] ss:$52 sps:$4 sm:$0xff]  }
 0x23c   :  { %5980 = vmatpush2.bf16.msra.mxu1 %v13559_v27  ;;  %5940 = vmatprep.subr.bf16.mxu0 %v13564_v30  ;;  %v13612_v27 = vld [vmem:[%s19189_s1 + $0xd24] ss:$52 sps:$4 sm:$0xff]  }
 0x23d   :  { %5981 = vmatprep.subr.bf16.mxu1 %v13567_v31  ;;  %v13615_v30 = vld [vmem:[%s19189_s1 + $0x13a4] ss:$52 sps:$4 sm:$0xff]   ;;  %v13610_v31 = vld [vmem:[%s19189_s1 + $0xd20] ss:$52 sps:$4 sm:$0xff]  }
 0x23f   :  { %5941 = vmatpush2.bf16.msra.mxu0 %v13562_v59  ;;  %v13613_v59 = vld [vmem:[%s19189_s1 + $0x13a0] ss:$52 sps:$4 sm:$0xff]  }
 0x240   :  { %5982 = vmatpush2.bf16.msra.mxu1 %v13565_v33  ;;  %5992 = vmatprep.subr.bf16.mxu0 %v13570_v34  ;;  %v13618_v33 = vld [vmem:[%s19189_s1 + $0x133c] ss:$52 sps:$4 sm:$0xff]  }
 0x241   :  { %6033 = vmatprep.subr.bf16.mxu1 %v13573_v39  ;;  %v13621_v34 = vld [vmem:[%s19189_s1 + $0x19bc] ss:$52 sps:$4 sm:$0xff]   ;;  %v13616_v39 = vld [vmem:[%s19189_s1 + $0x1338] ss:$52 sps:$4 sm:$0xff]  }
 0x242   :  { %v5698_v45 = vpop.f32.mrf.mxu0  ;;  %5943 = vmatmul.mubr.bf16.vlgmr.msra.gmra.mxu0 %v14918_v6 }
 0x243   :  { %v5739_v46 = vpop.f32.mrf.mxu1  ;;  %5984 = vmatmul.mubr.bf16.vlgmr.msra.gmra.mxu1 %v14920_v7  ;;  %v5699_v48 = vadd.f32 %v5698_v45, %v16402_v12  ;;  %5993 = vmatpush1.bf16.msra.mxu0 %v13568_v42  ;;  %v13585_v12 = vld [vmem:[%s19189_s1 + $0x15ac] ss:$52 sps:$4 sm:$0xff]   ;;  %v13625_v45 = vld [vmem:[%s19189_s1 + $0x1950] ss:$52 sps:$4 sm:$0xff]  }
 0x244   :  { %6034 = vmatpush1.bf16.msra.mxu1 %v13571_v2  ;;  %v5700_v53 = vpop.f32.mrf.mxu0  ;;  %5994 = vmatprep.subr.bf16.mxu0 %v13576_v43  ;;  %v13619_v42 = vld [vmem:[%s19189_s1 + $0x19b8] ss:$52 sps:$4 sm:$0xff]   ;;  %v13624_v2 = vld [vmem:[%s19189_s1 + $0x12d4] ss:$52 sps:$4 sm:$0xff]  }
 0x245   :  { %v5741_v54 = vpop.f32.mrf.mxu1  ;;  %6035 = vmatprep.subr.bf16.mxu1 %v13579_v44  ;;  %v16603_v57 = vadd.f32 %v5739_v46, %v5699_v48  ;;  %v5701_v60 = vadd.f32 %v5700_v53, %v16406_v18  ;;  %6024 = vmatprep.mubr.bf16.mxu0 %v15014_v36  ;;  %v13627_v43 = vld [vmem:[%s19189_s1 + $0x1954] ss:$52 sps:$4 sm:$0xff]   ;;  %v13622_v44 = vld [vmem:[%s19189_s1 + $0x12d0] ss:$52 sps:$4 sm:$0xff]   ;;  %v13630_v46 = vld [vmem:[%s19189_s1 + $0x126c] ss:$52 sps:$4 sm:$0xff]  }
 0x246   :  { %6065 = vmatprep.mubr.bf16.mxu1 %v15018_v37  ;;  %v5702_v61 = vpop.f32.mrf.mxu0  ;;  %v13633_v48 = vld [vmem:[%s19189_s1 + $0x18ec] ss:$52 sps:$4 sm:$0xff]   ;;  %v13636_v53 = vld [vmem:[%s19189_s1 + $0x1204] ss:$52 sps:$4 sm:$0xff]  }
 0x247   :  { %v5743_v62 = vpop.f32.mrf.mxu1  ;;  %v16608_v63 = vadd.f32 %v5741_v54, %v5701_v60  ;;  %5995 = vmatpush1.bf16.msra.mxu0 %v13574_v50  ;;  %v13628_v50 = vld [vmem:[%s19189_s1 + $0x1268] ss:$52 sps:$4 sm:$0xff]   ;;  %v13639_v54 = vld [vmem:[%s19189_s1 + $0x1884] ss:$52 sps:$4 sm:$0xff]  }
 0x248   :  { %6036 = vmatpush1.bf16.msra.mxu1 %v13577_v52  ;;  %v5703_v4 = vpop.f32.mrf.mxu0  ;;  %5996 = vmatprep.subr.bf16.mxu0 %v13582_v56  ;;  %v13631_v52 = vld [vmem:[%s19189_s1 + $0x18e8] ss:$52 sps:$4 sm:$0xff]   ;;  %v13634_v56 = vld [vmem:[%s19189_s1 + $0x1200] ss:$52 sps:$4 sm:$0xff]   ;;  %v13640_v62 = vld [vmem:[%s19189_s1 + $0x1198] ss:$52 sps:$4 sm:$0xff]  }
 0x249   :  { %v5744_v18 = vpop.f32.mrf.mxu1  ;;  %6037 = vmatprep.subr.bf16.mxu1 %v13585_v12  ;;  %v13637_v12 = vld [vmem:[%s19189_s1 + $0x1880] ss:$52 sps:$4 sm:$0xff]   ;;  %v13642_v60 = vld [vmem:[%s19189_s1 + $0x119c] ss:$52 sps:$4 sm:$0xff]  }
 0x24a   :  { %v13645_v61 = vld [vmem:[%s19189_s1 + $0x181c] ss:$52 sps:$4 sm:$0xff]   ;;  %v13651_v4 = vld [vmem:[%s19189_s1 + $0x17b4] ss:$52 sps:$4 sm:$0xff]  }
 0x24b   :  { %5997 = vmatpush1.bf16.msra.mxu0 %v13580_v1  ;;  %v13643_v1 = vld [vmem:[%s19189_s1 + $0x1818] ss:$52 sps:$4 sm:$0xff]   ;;  %v13646_v18 = vld [vmem:[%s19189_s1 + $0x1130] ss:$52 sps:$4 sm:$0xff]  }
 0x24c   :  { %6038 = vmatpush1.bf16.msra.mxu1 %v13583_v3  ;;  %5998 = vmatprep.subr.bf16.mxu0 %v13588_v5  ;;  %v13648_v3 = vld [vmem:[%s19189_s1 + $0x1134] ss:$52 sps:$4 sm:$0xff]   ;;  %v13649_v5 = vld [vmem:[%s19189_s1 + $0x17b0] ss:$52 sps:$4 sm:$0xff]  }
 0x24d   :  { %6039 = vmatprep.subr.bf16.mxu1 %v13591_v8  ;;  %v13654_v8 = vld [vmem:[%s19189_s1 + $0x10cc] ss:$52 sps:$4 sm:$0xff]  }
 0x24f   :  { %5999 = vmatpush1.bf16.msra.mxu0 %v13586_v9  ;;  %v13657_v9 = vld [vmem:[%s19189_s1 + $0x174c] ss:$52 sps:$4 sm:$0xff]  }
 0x250   :  { %6040 = vmatpush1.bf16.msra.mxu1 %v13589_v10  ;;  %6000 = vmatprep.subr.bf16.mxu0 %v13594_v11  ;;  %v13652_v10 = vld [vmem:[%s19189_s1 + $0x10c8] ss:$52 sps:$4 sm:$0xff]  }
 0x251   :  { %6041 = vmatprep.subr.bf16.mxu1 %v13597_v13  ;;  %v13655_v11 = vld [vmem:[%s19189_s1 + $0x1748] ss:$52 sps:$4 sm:$0xff]   ;;  %v13660_v13 = vld [vmem:[%s19189_s1 + $0x1064] ss:$52 sps:$4 sm:$0xff]  }
 0x253   :  { %6001 = vmatpush1.bf16.msra.mxu0 %v13592_v14  ;;  %v13663_v14 = vld [vmem:[%s19189_s1 + $0x16e4] ss:$52 sps:$4 sm:$0xff]  }
 0x254   :  { %6042 = vmatpush1.bf16.msra.mxu1 %v13595_v15  ;;  %6002 = vmatprep.subr.bf16.mxu0 %v13600_v19  ;;  %v13658_v15 = vld [vmem:[%s19189_s1 + $0x1060] ss:$52 sps:$4 sm:$0xff]  }
 0x255   :  { %6043 = vmatprep.subr.bf16.mxu1 %v13603_v20  ;;  %v13661_v19 = vld [vmem:[%s19189_s1 + $0x16e0] ss:$52 sps:$4 sm:$0xff]   ;;  %v963_v20 = vsub.s32 6, %v15518_v29 }
 0x257   :  { %6003 = vmatpush1.bf16.msra.mxu0 %v13598_v21  ;;  %v13666_v21 = vld [vmem:[%s19189_s1 + $0x304] ss:$52 sps:$4 sm:$0xff]  }
 0x258   :  { %6044 = vmatpush1.bf16.msra.mxu1 %v13601_v22  ;;  %6004 = vmatprep.subr.bf16.mxu0 %v13606_v24  ;;  %v13669_v22 = vld [vmem:[%s19189_s1 + $0x984] ss:$52 sps:$4 sm:$0xff]   ;;  %v967_v24 = vsub.s32 7, %v15518_v29  ;;  %v13675_v29 = vld [vmem:[%s19189_s1 + $0x91c] ss:$52 sps:$4 sm:$0xff]  }
 0x259   :  { %6045 = vmatprep.subr.bf16.mxu1 %v13609_v58  ;;  %v964_v58 = vrot.slane %v16374_v55, %v963_v20  ;;  %v13711_v20 = vld [vmem:[%s19189_s1 + $0x6ac] ss:$52 sps:$4 sm:$0xff]  }
 0x25b   :  { %6005 = vmatpush1.bf16.msra.mxu0 %v13604_v25  ;;  %v13664_v25 = vld [vmem:[%s19189_s1 + $0x300] ss:$52 sps:$4 sm:$0xff]  }
 0x25c   :  { %6046 = vmatpush1.bf16.msra.mxu1 %v13607_v26  ;;  %6006 = vmatprep.subr.bf16.mxu0 %v13612_v27  ;;  %v13667_v26 = vld [vmem:[%s19189_s1 + $0x980] ss:$52 sps:$4 sm:$0xff]   ;;  %v13672_v27 = vld [vmem:[%s19189_s1 + $0x29c] ss:$52 sps:$4 sm:$0xff]  }
 0x25d   :  { %6047 = vmatprep.subr.bf16.mxu1 %v13615_v30  ;;  %v968_v30 = vrot.slane %v16374_v55, %v967_v24  ;;  %v13678_v55 = vld [vmem:[%s19189_s1 + $0x234] ss:$52 sps:$4 sm:$0xff]   ;;  %v13714_v24 = vld [vmem:[%s19189_s1 + $0x644] ss:$52 sps:$4 sm:$0xff]  }
 0x25f   :  { %6007 = vmatpush1.bf16.msra.mxu0 %v13610_v31 }
 0x260   :  { %6048 = vmatpush1.bf16.msra.mxu1 %v13613_v59  ;;  %6008 = vmatprep.subr.bf16.mxu0 %v13618_v33 }
 0x261   :  { %6049 = vmatprep.subr.bf16.mxu1 %v13621_v34  ;;  %v13670_v34 = vld [vmem:[%s19189_s1 + $0x298] ss:$52 sps:$4 sm:$0xff]  }
 0x263   :  { %6009 = vmatpush2.bf16.msra.mxu0 %v13616_v39  ;;  %v13673_v39 = vld [vmem:[%s19189_s1 + $0x918] ss:$52 sps:$4 sm:$0xff]  }
 0x264   :  { %6050 = vmatpush2.bf16.msra.mxu1 %v13619_v42  ;;  %6010 = vmatprep.subr.bf16.mxu0 %v13624_v2 }
 0x265   :  { %6051 = vmatprep.subr.bf16.mxu1 %v13627_v43  ;;  %v13681_v43 = vld [vmem:[%s19189_s1 + $0x8b4] ss:$52 sps:$4 sm:$0xff]  }
 0x267   :  { %6011 = vmatpush2.bf16.msra.mxu0 %v13622_v44 }
 0x268   :  { %6052 = vmatpush2.bf16.msra.mxu1 %v13625_v45  ;;  %6012 = vmatprep.subr.bf16.mxu0 %v13630_v46 }
 0x269   :  { %6053 = vmatprep.subr.bf16.mxu1 %v13633_v48 }
 0x26b   :  { %6013 = vmatpush2.bf16.msra.mxu0 %v13628_v50 }
 0x26c   :  { %6054 = vmatpush2.bf16.msra.mxu1 %v13631_v52  ;;  %6014 = vmatprep.subr.bf16.mxu0 %v13636_v53  ;;  %v13676_v52 = vld [vmem:[%s19189_s1 + $0x230] ss:$52 sps:$4 sm:$0xff]  }
 0x26d   :  { %6055 = vmatprep.subr.bf16.mxu1 %v13639_v54  ;;  %v13679_v53 = vld [vmem:[%s19189_s1 + $0x8b0] ss:$52 sps:$4 sm:$0xff]  }
 0x26f   :  { %6015 = vmatpush2.bf16.msra.mxu0 %v13634_v56 }
 0x270   :  { %6056 = vmatpush2.bf16.msra.mxu1 %v13637_v12  ;;  %6016 = vmatprep.subr.bf16.mxu0 %v13642_v60  ;;  %v13684_v12 = vld [vmem:[%s19189_s1 + $0x1cc] ss:$52 sps:$4 sm:$0xff]  }
 0x271   :  { %6057 = vmatprep.subr.bf16.mxu1 %v13645_v61  ;;  %v13687_v60 = vld [vmem:[%s19189_s1 + $0x84c] ss:$52 sps:$4 sm:$0xff]   ;;  %v13682_v61 = vld [vmem:[%s19189_s1 + $0x1c8] ss:$52 sps:$4 sm:$0xff]  }
 0x273   :  { %6017 = vmatpush2.bf16.msra.mxu0 %v13640_v62  ;;  %v13685_v62 = vld [vmem:[%s19189_s1 + $0x848] ss:$52 sps:$4 sm:$0xff]  }
 0x274   :  { %6058 = vmatpush2.bf16.msra.mxu1 %v13643_v1  ;;  %6018 = vmatprep.subr.bf16.mxu0 %v13648_v3  ;;  %v13690_v1 = vld [vmem:[%s19189_s1 + $0x164] ss:$52 sps:$4 sm:$0xff]  }
 0x275   :  { %6059 = vmatprep.subr.bf16.mxu1 %v13651_v4  ;;  %v13693_v3 = vld [vmem:[%s19189_s1 + $0x7e4] ss:$52 sps:$4 sm:$0xff]   ;;  %v13688_v4 = vld [vmem:[%s19189_s1 + $0x160] ss:$52 sps:$4 sm:$0xff]  }
 0x277   :  { %6019 = vmatpush2.bf16.msra.mxu0 %v13646_v18  ;;  %v13691_v18 = vld [vmem:[%s19189_s1 + $0x7e0] ss:$52 sps:$4 sm:$0xff]  }
 0x278   :  { %6060 = vmatpush2.bf16.msra.mxu1 %v13649_v5  ;;  %6020 = vmatprep.subr.bf16.mxu0 %v13654_v8  ;;  %v13696_v5 = vld [vmem:[%s19189_s1 + $0xfc] ss:$52 sps:$4 sm:$0xff]  }
 0x279   :  { %6061 = vmatprep.subr.bf16.mxu1 %v13657_v9  ;;  %v13699_v8 = vld [vmem:[%s19189_s1 + $0x77c] ss:$52 sps:$4 sm:$0xff]   ;;  %v13694_v9 = vld [vmem:[%s19189_s1 + $0xf8] ss:$52 sps:$4 sm:$0xff]  }
 0x27b   :  { %6021 = vmatpush2.bf16.msra.mxu0 %v13652_v10  ;;  %v13697_v10 = vld [vmem:[%s19189_s1 + $0x778] ss:$52 sps:$4 sm:$0xff]  }
 0x27c   :  { %6062 = vmatpush2.bf16.msra.mxu1 %v13655_v11  ;;  %6022 = vmatprep.subr.bf16.mxu0 %v13660_v13  ;;  %v13702_v11 = vld [vmem:[%s19189_s1 + $0x94] ss:$52 sps:$4 sm:$0xff]  }
 0x27d   :  { %6063 = vmatprep.subr.bf16.mxu1 %v13663_v14  ;;  %v13705_v13 = vld [vmem:[%s19189_s1 + $0x714] ss:$52 sps:$4 sm:$0xff]   ;;  %v13700_v14 = vld [vmem:[%s19189_s1 + $0x90] ss:$52 sps:$4 sm:$0xff]  }
 0x27f   :  { %6023 = vmatpush2.bf16.msra.mxu0 %v13658_v15  ;;  %v13703_v15 = vld [vmem:[%s19189_s1 + $0x710] ss:$52 sps:$4 sm:$0xff]  }
 0x280   :  { %6064 = vmatpush2.bf16.msra.mxu1 %v13661_v19  ;;  %6074 = vmatprep.subr.bf16.mxu0 %v13666_v21  ;;  %v13708_v19 = vld [vmem:[%s19189_s1 + $0x2c] ss:$52 sps:$4 sm:$0xff]   ;;  %v13706_v21 = vld [vmem:[%s19189_s1 + $0x28] ss:$52 sps:$4 sm:$0xff]  }
 0x281   :  { %6115 = vmatprep.subr.bf16.mxu1 %v13669_v22  ;;  %v13709_v22 = vld [vmem:[%s19189_s1 + $0x6a8] ss:$52 sps:$4 sm:$0xff]  }
 0x282   :  { %v5780_v31 = vpop.f32.mrf.mxu0  ;;  %6025 = vmatmul.mubr.bf16.vlgmr.msra.gmra.mxu0 %v15138_v16 }
 0x283   :  { %v5821_v59 = vpop.f32.mrf.mxu1  ;;  %6066 = vmatmul.mubr.bf16.vlgmr.msra.gmra.mxu1 %v15142_v17  ;;  %v5781_v33 = vadd.f32 %v5780_v31, %v964_v58  ;;  %6075 = vmatpush1.bf16.msra.mxu0 %v13664_v25  ;;  %v13717_v58 = vld [vmem:[%s19189_s1 + $0xcc4] ss:$52 sps:$4 sm:$0xff]   ;;  %v13712_v25 = vld [vmem:[%s19189_s1 + $0x640] ss:$52 sps:$4 sm:$0xff]  }
 0x284   :  { %6116 = vmatpush1.bf16.msra.mxu1 %v13667_v26  ;;  %v5782_v42 = vpop.f32.mrf.mxu0  ;;  %6076 = vmatprep.subr.bf16.mxu0 %v13672_v27  ;;  %v13715_v26 = vld [vmem:[%s19189_s1 + $0xcc0] ss:$52 sps:$4 sm:$0xff]   ;;  %v13720_v27 = vld [vmem:[%s19189_s1 + $0x5dc] ss:$52 sps:$4 sm:$0xff]   ;;  %v13721_v31 = vld [vmem:[%s19189_s1 + $0xc58] ss:$52 sps:$4 sm:$0xff]  }
 0x285   :  { %v5823_v2 = vpop.f32.mrf.mxu1  ;;  %6117 = vmatprep.subr.bf16.mxu1 %v13675_v29  ;;  %v16808_v44 = vadd.f32 %v5821_v59, %v5781_v33  ;;  %v5783_v45 = vadd.f32 %v5782_v42, %v968_v30  ;;  %6106 = vmatprep.mubr.bf16.mxu0 %v14849_v47  ;;  %v13723_v29 = vld [vmem:[%s19189_s1 + $0xc5c] ss:$52 sps:$4 sm:$0xff]   ;;  %v13718_v30 = vld [vmem:[%s19189_s1 + $0x5d8] ss:$52 sps:$4 sm:$0xff]   ;;  %v13726_v59 = vld [vmem:[%s19189_s1 + $0x574] ss:$52 sps:$4 sm:$0xff]  }
 0x286   :  { %6147 = vmatprep.mubr.bf16.mxu1 %v14860_v51  ;;  %v5784_v46 = vpop.f32.mrf.mxu0  ;;  %v13729_v33 = vld [vmem:[%s19189_s1 + $0xbf4] ss:$52 sps:$4 sm:$0xff]   ;;  %v13732_v42 = vld [vmem:[%s19189_s1 + $0x50c] ss:$52 sps:$4 sm:$0xff]  }
 0x287   :  { %v5825_v48 = vpop.f32.mrf.mxu1  ;;  %v16812_v50 = vadd.f32 %v5823_v2, %v5783_v45  ;;  %6077 = vmatpush1.bf16.msra.mxu0 %v13670_v34  ;;  %v13724_v34 = vld [vmem:[%s19189_s1 + $0x570] ss:$52 sps:$4 sm:$0xff]   ;;  %v13735_v2 = vld [vmem:[%s19189_s1 + $0xb8c] ss:$52 sps:$4 sm:$0xff]  }
 0x288   :  { %6118 = vmatpush1.bf16.msra.mxu1 %v13673_v39  ;;  %v5785_v54 = vpop.f32.mrf.mxu0  ;;  %6078 = vmatprep.subr.bf16.mxu0 %v13678_v55  ;;  %v13727_v39 = vld [vmem:[%s19189_s1 + $0xbf0] ss:$52 sps:$4 sm:$0xff]   ;;  %v13730_v55 = vld [vmem:[%s19189_s1 + $0x508] ss:$52 sps:$4 sm:$0xff]   ;;  %v13736_v48 = vld [vmem:[%s19189_s1 + $0x4a0] ss:$52 sps:$4 sm:$0xff]  }
 0x289   :  { %v5826_v56 = vpop.f32.mrf.mxu1  ;;  %6119 = vmatprep.subr.bf16.mxu1 %v13681_v43  ;;  %v13733_v43 = vld [vmem:[%s19189_s1 + $0xb88] ss:$52 sps:$4 sm:$0xff]   ;;  %v13738_v45 = vld [vmem:[%s19189_s1 + $0x4a4] ss:$52 sps:$4 sm:$0xff]  }
 0x28a   :  { %v13741_v46 = vld [vmem:[%s19189_s1 + $0xb24] ss:$52 sps:$4 sm:$0xff]   ;;  %v13747_v54 = vld [vmem:[%s19189_s1 + $0xabc] ss:$52 sps:$4 sm:$0xff]  }
 0x28b   :  { %6079 = vmatpush1.bf16.msra.mxu0 %v13676_v52  ;;  %v13739_v52 = vld [vmem:[%s19189_s1 + $0xb20] ss:$52 sps:$4 sm:$0xff]   ;;  %v13742_v56 = vld [vmem:[%s19189_s1 + $0x438] ss:$52 sps:$4 sm:$0xff]  }
 0x28c   :  { %6120 = vmatpush1.bf16.msra.mxu1 %v13679_v53  ;;  %6080 = vmatprep.subr.bf16.mxu0 %v13684_v12  ;;  %v13744_v53 = vld [vmem:[%s19189_s1 + $0x43c] ss:$52 sps:$4 sm:$0xff]   ;;  %v13745_v12 = vld [vmem:[%s19189_s1 + $0xab8] ss:$52 sps:$4 sm:$0xff]  }
 0x28d   :  { %6121 = vmatprep.subr.bf16.mxu1 %v13687_v60  ;;  %v13750_v60 = vld [vmem:[%s19189_s1 + $0x3d4] ss:$52 sps:$4 sm:$0xff]  }
 0x28f   :  { %6081 = vmatpush1.bf16.msra.mxu0 %v13682_v61  ;;  %v13753_v61 = vld [vmem:[%s19189_s1 + $0xa54] ss:$52 sps:$4 sm:$0xff]  }
 0x290   :  { %6122 = vmatpush1.bf16.msra.mxu1 %v13685_v62  ;;  %6082 = vmatprep.subr.bf16.mxu0 %v13690_v1  ;;  %v13748_v62 = vld [vmem:[%s19189_s1 + $0x3d0] ss:$52 sps:$4 sm:$0xff]  }
 0x291   :  { %6123 = vmatprep.subr.bf16.mxu1 %v13693_v3  ;;  %v13751_v1 = vld [vmem:[%s19189_s1 + $0xa50] ss:$52 sps:$4 sm:$0xff]   ;;  %v13756_v3 = vld [vmem:[%s19189_s1 + $0x36c] ss:$52 sps:$4 sm:$0xff]  }
 0x293   :  { %6083 = vmatpush1.bf16.msra.mxu0 %v13688_v4  ;;  %v13759_v4 = vld [vmem:[%s19189_s1 + $0x9ec] ss:$52 sps:$4 sm:$0xff]  }
 0x294   :  { %6124 = vmatpush1.bf16.msra.mxu1 %v13691_v18  ;;  %6084 = vmatprep.subr.bf16.mxu0 %v13696_v5  ;;  %v13754_v18 = vld [vmem:[%s19189_s1 + $0x368] ss:$52 sps:$4 sm:$0xff]  }
 0x295   :  { %6125 = vmatprep.subr.bf16.mxu1 %v13699_v8  ;;  %v13757_v5 = vld [vmem:[%s19189_s1 + $0x9e8] ss:$52 sps:$4 sm:$0xff]   ;;  %v13762_v8 = vld [vmem:[%s19189_s1 + $0x1004] ss:$52 sps:$4 sm:$0xff]  }
 0x297   :  { %6085 = vmatpush1.bf16.msra.mxu0 %v13694_v9  ;;  %v13765_v9 = vld [vmem:[%s19189_s1 + $0x1684] ss:$52 sps:$4 sm:$0xff]  }
 0x298   :  { %6126 = vmatpush1.bf16.msra.mxu1 %v13697_v10  ;;  %6086 = vmatprep.subr.bf16.mxu0 %v13702_v11  ;;  %v13760_v10 = vld [vmem:[%s19189_s1 + $0x1000] ss:$52 sps:$4 sm:$0xff]  }
 0x299   :  { %6127 = vmatprep.subr.bf16.mxu1 %v13705_v13  ;;  %v13763_v11 = vld [vmem:[%s19189_s1 + $0x1680] ss:$52 sps:$4 sm:$0xff]   ;;  %v13768_v13 = vld [vmem:[%s19189_s1 + $0xf9c] ss:$52 sps:$4 sm:$0xff]  }
 0x29b   :  { %6087 = vmatpush1.bf16.msra.mxu0 %v13700_v14  ;;  %v13771_v14 = vld [vmem:[%s19189_s1 + $0x161c] ss:$52 sps:$4 sm:$0xff]  }
 0x29c   :  { %6128 = vmatpush1.bf16.msra.mxu1 %v13703_v15  ;;  %6088 = vmatprep.subr.bf16.mxu0 %v13708_v19  ;;  %v13766_v15 = vld [vmem:[%s19189_s1 + $0xf98] ss:$52 sps:$4 sm:$0xff]  }
 0x29d   :  { %6129 = vmatprep.subr.bf16.mxu1 %v13711_v20  ;;  %v13769_v19 = vld [vmem:[%s19189_s1 + $0x1618] ss:$52 sps:$4 sm:$0xff]  }
 0x29f   :  { %6089 = vmatpush1.bf16.msra.mxu0 %v13706_v21 }
 0x2a0   :  { %6130 = vmatpush1.bf16.msra.mxu1 %v13709_v22  ;;  %6090 = vmatprep.subr.bf16.mxu0 %v13714_v24  ;;  %v13774_v22 = vld [vmem:[%s19189_s1 + $0xf34] ss:$52 sps:$4 sm:$0xff]  }
 0x2a1   :  { %6131 = vmatprep.subr.bf16.mxu1 %v13717_v58  ;;  %v13777_v24 = vld [vmem:[%s19189_s1 + $0x15b4] ss:$52 sps:$4 sm:$0xff]  }
 0x2a3   :  { %6091 = vmatpush2.bf16.msra.mxu0 %v13712_v25 }
 0x2a4   :  { %6132 = vmatpush2.bf16.msra.mxu1 %v13715_v26  ;;  %6092 = vmatprep.subr.bf16.mxu0 %v13720_v27 }
 0x2a5   :  { %6133 = vmatprep.subr.bf16.mxu1 %v13723_v29 }
 0x2a7   :  { %6093 = vmatpush2.bf16.msra.mxu0 %v13718_v30  ;;  %v13772_v30 = vld [vmem:[%s19189_s1 + $0xf30] ss:$52 sps:$4 sm:$0xff]  }
 0x2a8   :  { %6134 = vmatpush2.bf16.msra.mxu1 %v13721_v31  ;;  %6094 = vmatprep.subr.bf16.mxu0 %v13726_v59  ;;  %v13775_v31 = vld [vmem:[%s19189_s1 + $0x15b0] ss:$52 sps:$4 sm:$0xff]  }
 0x2a9   :  { %6135 = vmatprep.subr.bf16.mxu1 %v13729_v33  ;;  %v13780_v33 = vld [vmem:[%s19189_s1 + $0xecc] ss:$52 sps:$4 sm:$0xff]  }
 0x2ab   :  { %6095 = vmatpush2.bf16.msra.mxu0 %v13724_v34 }
 0x2ac   :  { %6136 = vmatpush2.bf16.msra.mxu1 %v13727_v39  ;;  %6096 = vmatprep.subr.bf16.mxu0 %v13732_v42 }
 0x2ad   :  { %6137 = vmatprep.subr.bf16.mxu1 %v13735_v2  ;;  %v13778_v2 = vld [vmem:[%s19189_s1 + $0xec8] ss:$52 sps:$4 sm:$0xff]  }
 0x2af   :  { %6097 = vmatpush2.bf16.msra.mxu0 %v13730_v55  ;;  %v13781_v55 = vld [vmem:[%s19189_s1 + $0x1548] ss:$52 sps:$4 sm:$0xff]  }
 0x2b0   :  { %6138 = vmatpush2.bf16.msra.mxu1 %v13733_v43  ;;  %6098 = vmatprep.subr.bf16.mxu0 %v13738_v45  ;;  %v13786_v43 = vld [vmem:[%s19189_s1 + $0xe64] ss:$52 sps:$4 sm:$0xff]  }
 0x2b1   :  { %6139 = vmatprep.subr.bf16.mxu1 %v13741_v46  ;;  %v13789_v45 = vld [vmem:[%s19189_s1 + $0x14e4] ss:$52 sps:$4 sm:$0xff]   ;;  %v13784_v46 = vld [vmem:[%s19189_s1 + $0xe60] ss:$52 sps:$4 sm:$0xff]  }
 0x2b3   :  { %6099 = vmatpush2.bf16.msra.mxu0 %v13736_v48  ;;  %v13787_v48 = vld [vmem:[%s19189_s1 + $0x14e0] ss:$52 sps:$4 sm:$0xff]  }
 0x2b4   :  { %6140 = vmatpush2.bf16.msra.mxu1 %v13739_v52  ;;  %6100 = vmatprep.subr.bf16.mxu0 %v13744_v53  ;;  %v13792_v52 = vld [vmem:[%s19189_s1 + $0xdfc] ss:$52 sps:$4 sm:$0xff]  }
 0x2b5   :  { %6141 = vmatprep.subr.bf16.mxu1 %v13747_v54  ;;  %v13795_v53 = vld [vmem:[%s19189_s1 + $0x147c] ss:$52 sps:$4 sm:$0xff]   ;;  %v13790_v54 = vld [vmem:[%s19189_s1 + $0xdf8] ss:$52 sps:$4 sm:$0xff]  }
 0x2b7   :  { %6101 = vmatpush2.bf16.msra.mxu0 %v13742_v56  ;;  %v13793_v56 = vld [vmem:[%s19189_s1 + $0x1478] ss:$52 sps:$4 sm:$0xff]  }
 0x2b8   :  { %6142 = vmatpush2.bf16.msra.mxu1 %v13745_v12  ;;  %6102 = vmatprep.subr.bf16.mxu0 %v13750_v60  ;;  %v13798_v12 = vld [vmem:[%s19189_s1 + $0xd94] ss:$52 sps:$4 sm:$0xff]  }
 0x2b9   :  { %6143 = vmatprep.subr.bf16.mxu1 %v13753_v61  ;;  %v13801_v60 = vld [vmem:[%s19189_s1 + $0x1414] ss:$52 sps:$4 sm:$0xff]   ;;  %v13796_v61 = vld [vmem:[%s19189_s1 + $0xd90] ss:$52 sps:$4 sm:$0xff]  }
 0x2bb   :  { %6103 = vmatpush2.bf16.msra.mxu0 %v13748_v62  ;;  %v13799_v62 = vld [vmem:[%s19189_s1 + $0x1410] ss:$52 sps:$4 sm:$0xff]  }
 0x2bc   :  { %6144 = vmatpush2.bf16.msra.mxu1 %v13751_v1  ;;  %6104 = vmatprep.subr.bf16.mxu0 %v13756_v3  ;;  %v13804_v1 = vld [vmem:[%s19189_s1 + $0xd2c] ss:$52 sps:$4 sm:$0xff]  }
 0x2bd   :  { %6145 = vmatprep.subr.bf16.mxu1 %v13759_v4  ;;  %v13807_v3 = vld [vmem:[%s19189_s1 + $0x13ac] ss:$52 sps:$4 sm:$0xff]   ;;  %v13802_v4 = vld [vmem:[%s19189_s1 + $0xd28] ss:$52 sps:$4 sm:$0xff]  }
 0x2bf   :  { %6105 = vmatpush2.bf16.msra.mxu0 %v13754_v18  ;;  %v13805_v18 = vld [vmem:[%s19189_s1 + $0x13a8] ss:$52 sps:$4 sm:$0xff]  }
 0x2c0   :  { %6146 = vmatpush2.bf16.msra.mxu1 %v13757_v5  ;;  %6156 = vmatprep.subr.bf16.mxu0 %v13762_v8  ;;  %v13810_v5 = vld [vmem:[%s19189_s1 + $0x1344] ss:$52 sps:$4 sm:$0xff]  }
 0x2c1   :  { %6197 = vmatprep.subr.bf16.mxu1 %v13765_v9  ;;  %v13813_v8 = vld [vmem:[%s19189_s1 + $0x19c4] ss:$52 sps:$4 sm:$0xff]   ;;  %v13808_v9 = vld [vmem:[%s19189_s1 + $0x1340] ss:$52 sps:$4 sm:$0xff]  }
 0x2c2   :  { %v5862_v20 = vpop.f32.mrf.mxu0  ;;  %6107 = vmatmul.mubr.bf16.vlgmr.msra.gmra.mxu0 %v14918_v6 }
 0x2c3   :  { %v5903_v21 = vpop.f32.mrf.mxu1  ;;  %6148 = vmatmul.mubr.bf16.vlgmr.msra.gmra.mxu1 %v14920_v7  ;;  %v5863_v58 = vadd.f32 %v5862_v20, %v16808_v44  ;;  %6157 = vmatpush1.bf16.msra.mxu0 %v13760_v10  ;;  %v13811_v10 = vld [vmem:[%s19189_s1 + $0x19c0] ss:$52 sps:$4 sm:$0xff]  }
 0x2c4   :  { %6198 = vmatpush1.bf16.msra.mxu1 %v13763_v11  ;;  %v5864_v25 = vpop.f32.mrf.mxu0  ;;  %6158 = vmatprep.subr.bf16.mxu0 %v13768_v13  ;;  %v13816_v11 = vld [vmem:[%s19189_s1 + $0x12dc] ss:$52 sps:$4 sm:$0xff]   ;;  %v13825_v20 = vld [vmem:[%s19189_s1 + $0x18f4] ss:$52 sps:$4 sm:$0xff]  }
 0x2c5   :  { %v5905_v26 = vpop.f32.mrf.mxu1  ;;  %6199 = vmatprep.subr.bf16.mxu1 %v13771_v14  ;;  %v17009_v27 = vadd.f32 %v5903_v21, %v5863_v58  ;;  %v5865_v29 = vadd.f32 %v5864_v25, %v16812_v50  ;;  %6188 = vmatprep.mubr.bf16.mxu0 %v15014_v36  ;;  %v13783_v50 = vld [vmem:[%s19189_s1 + $0x154c] ss:$52 sps:$4 sm:$0xff]   ;;  %v13819_v13 = vld [vmem:[%s19189_s1 + $0x195c] ss:$52 sps:$4 sm:$0xff]  }
 0x2c6   :  { %6229 = vmatprep.mubr.bf16.mxu1 %v15018_v37  ;;  %v5866_v44 = vpop.f32.mrf.mxu0  ;;  %v13814_v14 = vld [vmem:[%s19189_s1 + $0x12d8] ss:$52 sps:$4 sm:$0xff]   ;;  %v13820_v21 = vld [vmem:[%s19189_s1 + $0x1270] ss:$52 sps:$4 sm:$0xff]   ;;  %v13826_v25 = vld [vmem:[%s19189_s1 + $0x1208] ss:$52 sps:$4 sm:$0xff]  }
 0x2c7   :  { %v5907_v59 = vpop.f32.mrf.mxu1  ;;  %v17026_v34 = vadd.f32 %v5905_v26, %v5865_v29  ;;  %6159 = vmatpush1.bf16.msra.mxu0 %v13766_v15  ;;  %v13817_v15 = vld [vmem:[%s19189_s1 + $0x1958] ss:$52 sps:$4 sm:$0xff]   ;;  %v13829_v26 = vld [vmem:[%s19189_s1 + $0x1888] ss:$52 sps:$4 sm:$0xff]   ;;  %v13835_v44 = vld [vmem:[%s19189_s1 + $0x1820] ss:$52 sps:$4 sm:$0xff]  }
 0x2c8   :  { %6200 = vmatpush1.bf16.msra.mxu1 %v13769_v19  ;;  %v5867_v39 = vpop.f32.mrf.mxu0  ;;  %6160 = vmatprep.subr.bf16.mxu0 %v13774_v22  ;;  %v13822_v19 = vld [vmem:[%s19189_s1 + $0x1274] ss:$52 sps:$4 sm:$0xff]   ;;  %v13823_v22 = vld [vmem:[%s19189_s1 + $0x18f0] ss:$52 sps:$4 sm:$0xff]   ;;  %v13831_v58 = vld [vmem:[%s19189_s1 + $0x188c] ss:$52 sps:$4 sm:$0xff]  }
 0x2c9   :  { %v5908_v42 = vpop.f32.mrf.mxu1  ;;  %6201 = vmatprep.subr.bf16.mxu1 %v13777_v24  ;;  %v13828_v24 = vld [vmem:[%s19189_s1 + $0x120c] ss:$52 sps:$4 sm:$0xff]   ;;  %v13834_v29 = vld [vmem:[%s19189_s1 + $0x11a4] ss:$52 sps:$4 sm:$0xff]   ;;  %v13840_v59 = vld [vmem:[%s19189_s1 + $0x113c] ss:$52 sps:$4 sm:$0xff]  }
 0x2ca   :  { %v13841_v39 = vld [vmem:[%s19189_s1 + $0x17b8] ss:$52 sps:$4 sm:$0xff]   ;;  %v13846_v42 = vld [vmem:[%s19189_s1 + $0x10d4] ss:$52 sps:$4 sm:$0xff]  }
 0x2cb   :  { %6161 = vmatpush1.bf16.msra.mxu0 %v13772_v30  ;;  %v13837_v30 = vld [vmem:[%s19189_s1 + $0x1824] ss:$52 sps:$4 sm:$0xff]  }
 0x2cc   :  { %6202 = vmatpush1.bf16.msra.mxu1 %v13775_v31  ;;  %6162 = vmatprep.subr.bf16.mxu0 %v13780_v33  ;;  %v13832_v31 = vld [vmem:[%s19189_s1 + $0x11a0] ss:$52 sps:$4 sm:$0xff]   ;;  %v13843_v33 = vld [vmem:[%s19189_s1 + $0x17bc] ss:$52 sps:$4 sm:$0xff]  }
 0x2cd   :  { %6203 = vmatprep.subr.bf16.mxu1 %v13783_v50  ;;  %v13838_v50 = vld [vmem:[%s19189_s1 + $0x1138] ss:$52 sps:$4 sm:$0xff]  }
 0x2cf   :  { %6163 = vmatpush1.bf16.msra.mxu0 %v13778_v2  ;;  %v13849_v2 = vld [vmem:[%s19189_s1 + $0x1754] ss:$52 sps:$4 sm:$0xff]  }
 0x2d0   :  { %6204 = vmatpush1.bf16.msra.mxu1 %v13781_v55  ;;  %6164 = vmatprep.subr.bf16.mxu0 %v13786_v43  ;;  %v13844_v55 = vld [vmem:[%s19189_s1 + $0x10d0] ss:$52 sps:$4 sm:$0xff]  }
 0x2d1   :  { %6205 = vmatprep.subr.bf16.mxu1 %v13789_v45  ;;  %v13847_v43 = vld [vmem:[%s19189_s1 + $0x1750] ss:$52 sps:$4 sm:$0xff]   ;;  %v13852_v45 = vld [vmem:[%s19189_s1 + $0x106c] ss:$52 sps:$4 sm:$0xff]  }
 0x2d3   :  { %6165 = vmatpush1.bf16.msra.mxu0 %v13784_v46  ;;  %v13855_v46 = vld [vmem:[%s19189_s1 + $0x16ec] ss:$52 sps:$4 sm:$0xff]  }
 0x2d4   :  { %6206 = vmatpush1.bf16.msra.mxu1 %v13787_v48  ;;  %6166 = vmatprep.subr.bf16.mxu0 %v13792_v52  ;;  %v13850_v48 = vld [vmem:[%s19189_s1 + $0x1068] ss:$52 sps:$4 sm:$0xff]  }
 0x2d5   :  { %6207 = vmatprep.subr.bf16.mxu1 %v13795_v53  ;;  %v13853_v52 = vld [vmem:[%s19189_s1 + $0x16e8] ss:$52 sps:$4 sm:$0xff]  }
 0x2d6   :  { %v934_v53 = vld [vmem:[%s19191_s2 + $0x8] sm:$0x1f] }
 0x2d7   :  { %6167 = vmatpush1.bf16.msra.mxu0 %v13790_v54  ;;  %v13856_v54 = vld [vmem:[%s19189_s1 + $0x648] ss:$52 sps:$4 sm:$0xff]  }
 0x2d8   :  { %6208 = vmatpush1.bf16.msra.mxu1 %v13793_v56  ;;  %6168 = vmatprep.subr.bf16.mxu0 %v13798_v12  ;;  %v13857_v56 = vld [vmem:[%s19189_s1 + $0xcc8] ss:$52 sps:$4 sm:$0xff]  }
 0x2d9   :  { %6209 = vmatprep.subr.bf16.mxu1 %v13801_v60  ;;  %v13858_v12 = vld [vmem:[%s19189_s1 + $0x308] ss:$52 sps:$4 sm:$0xff]  }
 0x2da   :  { %v13859_v60 = vld [vmem:[%s19189_s1 + $0x988] ss:$52 sps:$4 sm:$0xff]  }
 0x2db   :  { %6169 = vmatpush1.bf16.msra.mxu0 %v13796_v61  ;;  %v13860_v61 = vld [vmem:[%s19189_s1 + $0x5e0] ss:$52 sps:$4 sm:$0xff]  }
 0x2dc   :  { %6210 = vmatpush1.bf16.msra.mxu1 %v13799_v62  ;;  %6170 = vmatprep.subr.bf16.mxu0 %v13804_v1  ;;  %v13861_v62 = vld [vmem:[%s19189_s1 + $0xc60] ss:$52 sps:$4 sm:$0xff]   ;;  %v972_v1 = vrot.slane %v934_v53, %v15536_v35 }
 0x2dd   :  { %6211 = vmatprep.subr.bf16.mxu1 %v13807_v3  ;;  %v976_v3 = vrot.slane %v934_v53, %v15545_v40  ;;  %v13886_v53 = vld [vmem:[%s19189_s1 + $0x30] ss:$52 sps:$4 sm:$0xff]  }
 0x2df   :  { %6171 = vmatpush1.bf16.msra.mxu0 %v13802_v4  ;;  %v13862_v4 = vld [vmem:[%s19189_s1 + $0x2a0] ss:$52 sps:$4 sm:$0xff]  }
 0x2e0   :  { %6212 = vmatpush1.bf16.msra.mxu1 %v13805_v18  ;;  %6172 = vmatprep.subr.bf16.mxu0 %v13810_v5  ;;  %v13863_v18 = vld [vmem:[%s19189_s1 + $0x920] ss:$52 sps:$4 sm:$0xff]  }
 0x2e1   :  { %6213 = vmatprep.subr.bf16.mxu1 %v13813_v8 }
 0x2e3   :  { %6173 = vmatpush2.bf16.msra.mxu0 %v13808_v9  ;;  %v13864_v9 = vld [vmem:[%s19189_s1 + $0x578] ss:$52 sps:$4 sm:$0xff]  }
 0x2e4   :  { %6214 = vmatpush2.bf16.msra.mxu1 %v13811_v10  ;;  %6174 = vmatprep.subr.bf16.mxu0 %v13816_v11  ;;  %v13865_v10 = vld [vmem:[%s19189_s1 + $0xbf8] ss:$52 sps:$4 sm:$0xff]  }
 0x2e5   :  { %6215 = vmatprep.subr.bf16.mxu1 %v13819_v13 }
 0x2e7   :  { %6175 = vmatpush2.bf16.msra.mxu0 %v13814_v14 }
 0x2e8   :  { %6216 = vmatpush2.bf16.msra.mxu1 %v13817_v15  ;;  %6176 = vmatprep.subr.bf16.mxu0 %v13822_v19 }
 0x2e9   :  { %6217 = vmatprep.subr.bf16.mxu1 %v13825_v20 }
 0x2eb   :  { %6177 = vmatpush2.bf16.msra.mxu0 %v13820_v21 }
 0x2ec   :  { %6218 = vmatpush2.bf16.msra.mxu1 %v13823_v22  ;;  %6178 = vmatprep.subr.bf16.mxu0 %v13828_v24  ;;  %v13866_v24 = vld [vmem:[%s19189_s1 + $0x238] ss:$52 sps:$4 sm:$0xff]  }
 0x2ed   :  { %6219 = vmatprep.subr.bf16.mxu1 %v13831_v58  ;;  %v13867_v58 = vld [vmem:[%s19189_s1 + $0x8b8] ss:$52 sps:$4 sm:$0xff]  }
 0x2ef   :  { %6179 = vmatpush2.bf16.msra.mxu0 %v13826_v25 }
 0x2f0   :  { %6220 = vmatpush2.bf16.msra.mxu1 %v13829_v26  ;;  %6180 = vmatprep.subr.bf16.mxu0 %v13834_v29  ;;  %v13870_v29 = vld [vmem:[%s19189_s1 + $0x1d0] ss:$52 sps:$4 sm:$0xff]  }
 0x2f1   :  { %6221 = vmatprep.subr.bf16.mxu1 %v13837_v30  ;;  %v13871_v30 = vld [vmem:[%s19189_s1 + $0x850] ss:$52 sps:$4 sm:$0xff]  }
 0x2f3   :  { %6181 = vmatpush2.bf16.msra.mxu0 %v13832_v31  ;;  %v13872_v31 = vld [vmem:[%s19189_s1 + $0x4a8] ss:$52 sps:$4 sm:$0xff]  }
 0x2f4   :  { %6222 = vmatpush2.bf16.msra.mxu1 %v13835_v44  ;;  %6182 = vmatprep.subr.bf16.mxu0 %v13840_v59  ;;  %v13873_v44 = vld [vmem:[%s19189_s1 + $0xb28] ss:$52 sps:$4 sm:$0xff]  }
 0x2f5   :  { %6223 = vmatprep.subr.bf16.mxu1 %v13843_v33  ;;  %v13874_v59 = vld [vmem:[%s19189_s1 + $0x168] ss:$52 sps:$4 sm:$0xff]  }
 0x2f6   :  { %v13875_v33 = vld [vmem:[%s19189_s1 + $0x7e8] ss:$52 sps:$4 sm:$0xff]  }
 0x2f7   :  { %6183 = vmatpush2.bf16.msra.mxu0 %v13838_v50  ;;  %v13876_v50 = vld [vmem:[%s19189_s1 + $0x440] ss:$52 sps:$4 sm:$0xff]  }
 0x2f8   :  { %6224 = vmatpush2.bf16.msra.mxu1 %v13841_v39  ;;  %6184 = vmatprep.subr.bf16.mxu0 %v13846_v42  ;;  %v13877_v39 = vld [vmem:[%s19189_s1 + $0xac0] ss:$52 sps:$4 sm:$0xff]  }
 0x2f9   :  { %6225 = vmatprep.subr.bf16.mxu1 %v13849_v2  ;;  %v13878_v42 = vld [vmem:[%s19189_s1 + $0x100] ss:$52 sps:$4 sm:$0xff]  }
 0x2fa   :  { %v13879_v2 = vld [vmem:[%s19189_s1 + $0x780] ss:$52 sps:$4 sm:$0xff]  }
 0x2fb   :  { %6185 = vmatpush2.bf16.msra.mxu0 %v13844_v55  ;;  %v13880_v55 = vld [vmem:[%s19189_s1 + $0x3d8] ss:$52 sps:$4 sm:$0xff]  }
 0x2fc   :  { %6226 = vmatpush2.bf16.msra.mxu1 %v13847_v43  ;;  %6186 = vmatprep.subr.bf16.mxu0 %v13852_v45  ;;  %v13881_v43 = vld [vmem:[%s19189_s1 + $0xa58] ss:$52 sps:$4 sm:$0xff]  }
 0x2fd   :  { %6227 = vmatprep.subr.bf16.mxu1 %v13855_v46  ;;  %v13882_v45 = vld [vmem:[%s19189_s1 + $0x98] ss:$52 sps:$4 sm:$0xff]  }
 0x2fe   :  { %v13883_v46 = vld [vmem:[%s19189_s1 + $0x718] ss:$52 sps:$4 sm:$0xff]  }
 0x2ff   :  { %6187 = vmatpush2.bf16.msra.mxu0 %v13850_v48  ;;  %v13884_v48 = vld [vmem:[%s19189_s1 + $0x370] ss:$52 sps:$4 sm:$0xff]  }
 0x300   :  { %6228 = vmatpush2.bf16.msra.mxu1 %v13853_v52  ;;  %12372 = vmatprep.subr.bf16.mxu0 %v13856_v54  ;;  %v13885_v52 = vld [vmem:[%s19189_s1 + $0x9f0] ss:$52 sps:$4 sm:$0xff]  }
 0x301   :  { %12394 = vmatprep.subr.bf16.mxu1 %v13857_v56  ;;  %v13887_v54 = vld [vmem:[%s19189_s1 + $0x6b0] ss:$52 sps:$4 sm:$0xff]   ;;  %v13888_v56 = vld [vmem:[%s19189_s1 + $0x1348] ss:$52 sps:$4 sm:$0xff]  }
 0x302   :  { %v5944_v5 = vpop.f32.mrf.mxu0  ;;  %6189 = vmatmul.mubr.bf16.vlgmr.msra.gmra.mxu0 %v15138_v16 }
 0x303   :  { %v5985_v8 = vpop.f32.mrf.mxu1  ;;  %6230 = vmatmul.mubr.bf16.vlgmr.msra.gmra.mxu1 %v15142_v17  ;;  %v5945_v11 = vadd.f32 %v5944_v5, %v972_v1  ;;  %12373 = vmatpush3.bf16.msra.mxu0 %v13858_v12  ;;  %v13889_v12 = vld [vmem:[%s19189_s1 + $0x19c8] ss:$52 sps:$4 sm:$0xff]   ;;  %v13893_v1 = vld [vmem:[%s19189_s1 + $0x1960] ss:$52 sps:$4 sm:$0xff]   ;;  %v13897_v5 = vld [vmem:[%s19189_s1 + $0x18f8] ss:$52 sps:$4 sm:$0xff]  }
 0x304   :  { %12395 = vmatpush3.bf16.msra.mxu1 %v13859_v60  ;;  %v5946_v13 = vpop.f32.mrf.mxu0  ;;  %12374 = vmatprep.subr.bf16.mxu0 %v13860_v61  ;;  %v13890_v60 = vld [vmem:[%s19189_s1 + $0x1008] ss:$52 sps:$4 sm:$0xff]  }
 0x305   :  { %v5987_v14 = vpop.f32.mrf.mxu1  ;;  %12396 = vmatprep.subr.bf16.mxu1 %v13861_v62  ;;  %v17215_v15 = vadd.f32 %v5985_v8, %v5945_v11  ;;  %v5947_v19 = vadd.f32 %v5946_v13, %v976_v3  ;;  %6270 = vmatprep.mubr.bf16.mxu0 %v14849_v47  ;;  %v13868_v47 = vld [vmem:[%s19189_s1 + $0x510] ss:$52 sps:$4 sm:$0xff]   ;;  %v13891_v61 = vld [vmem:[%s19189_s1 + $0x1688] ss:$52 sps:$4 sm:$0xff]   ;;  %v13892_v62 = vld [vmem:[%s19189_s1 + $0x12e0] ss:$52 sps:$4 sm:$0xff]  }
 0x306   :  { %6310 = vmatprep.mubr.bf16.mxu1 %v14860_v51  ;;  %v5948_v20 = vpop.f32.mrf.mxu0  ;;  %v13869_v51 = vld [vmem:[%s19189_s1 + $0xb90] ss:$52 sps:$4 sm:$0xff]   ;;  %v13894_v3 = vld [vmem:[%s19189_s1 + $0xfa0] ss:$52 sps:$4 sm:$0xff]   ;;  %v13898_v8 = vld [vmem:[%s19189_s1 + $0xf38] ss:$52 sps:$4 sm:$0xff]  }
 0x307   :  { %v5989_v21 = vpop.f32.mrf.mxu1  ;;  %v17219_v22 = vadd.f32 %v5987_v14, %v5947_v19  ;;  %12375 = vmatpush3.bf16.msra.mxu0 %v13862_v4  ;;  %v13895_v4 = vld [vmem:[%s19189_s1 + $0x1620] ss:$52 sps:$4 sm:$0xff]   ;;  %v13905_v11 = vld [vmem:[%s19189_s1 + $0x1828] ss:$52 sps:$4 sm:$0xff]  }
 0x308   :  { %12397 = vmatpush3.bf16.msra.mxu1 %v13863_v18  ;;  %v5949_v25 = vpop.f32.mrf.mxu0  ;;  %12376 = vmatprep.subr.bf16.mxu0 %v13864_v9  ;;  %v13896_v18 = vld [vmem:[%s19189_s1 + $0x1278] ss:$52 sps:$4 sm:$0xff]   ;;  %v13901_v9 = vld [vmem:[%s19189_s1 + $0x1890] ss:$52 sps:$4 sm:$0xff]   ;;  %v13906_v13 = vld [vmem:[%s19189_s1 + $0xe68] ss:$52 sps:$4 sm:$0xff]  }
 0x309   :  { %v5990_v26 = vpop.f32.mrf.mxu1  ;;  %12398 = vmatprep.subr.bf16.mxu1 %v13865_v10  ;;  %v13902_v10 = vld [vmem:[%s19189_s1 + $0xed0] ss:$52 sps:$4 sm:$0xff]   ;;  %v13907_v14 = vld [vmem:[%s19189_s1 + $0x14e8] ss:$52 sps:$4 sm:$0xff]   ;;  %v13908_v19 = vld [vmem:[%s19189_s1 + $0x1140] ss:$52 sps:$4 sm:$0xff]  }
 0x30a   :  { %v13909_v20 = vld [vmem:[%s19189_s1 + $0x17c0] ss:$52 sps:$4 sm:$0xff]   ;;  %v13913_v25 = vld [vmem:[%s19189_s1 + $0x1758] ss:$52 sps:$4 sm:$0xff]  }
 0x30b   :  { %12377 = vmatpush3.bf16.msra.mxu0 %v13866_v24  ;;  %v13910_v21 = vld [vmem:[%s19189_s1 + $0xe00] ss:$52 sps:$4 sm:$0xff]   ;;  %v13914_v26 = vld [vmem:[%s19189_s1 + $0xd98] ss:$52 sps:$4 sm:$0xff]  }
 0x30c   :  { %12399 = vmatpush3.bf16.msra.mxu1 %v13867_v58  ;;  %12378 = vmatprep.subr.bf16.mxu0 %v13868_v47  ;;  %v13911_v24 = vld [vmem:[%s19189_s1 + $0x1480] ss:$52 sps:$4 sm:$0xff]   ;;  %v13912_v58 = vld [vmem:[%s19189_s1 + $0x10d8] ss:$52 sps:$4 sm:$0xff]  }
 0x30d   :  { %12400 = vmatprep.subr.bf16.mxu1 %v13869_v51  ;;  %v13915_v47 = vld [vmem:[%s19189_s1 + $0x1418] ss:$52 sps:$4 sm:$0xff]   ;;  %v13916_v51 = vld [vmem:[%s19189_s1 + $0x1070] ss:$52 sps:$4 sm:$0xff]  }
 0x30f   :  { %12379 = vmatpush3.bf16.msra.mxu0 %v13870_v29  ;;  %v13917_v29 = vld [vmem:[%s19189_s1 + $0x16f0] ss:$52 sps:$4 sm:$0xff]  }
 0x310   :  { %12401 = vmatpush3.bf16.msra.mxu1 %v13871_v30  ;;  %12380 = vmatprep.subr.bf16.mxu0 %v13872_v31  ;;  %v13918_v30 = vld [vmem:[%s19189_s1 + $0xd30] ss:$52 sps:$4 sm:$0xff]  }
 0x311   :  { %12402 = vmatprep.subr.bf16.mxu1 %v13873_v44  ;;  %v13919_v31 = vld [vmem:[%s19189_s1 + $0x13b0] ss:$52 sps:$4 sm:$0xff]  }
 0x312   :  { %v13922_v44 = vld [vmem:[%s19192_s3 + $0x11c] ss:$20 sps:$4 sm:$0xff]  }
 0x313   :  { %12381 = vmatpush3.bf16.msra.mxu0 %v13874_v59  ;;  %v13925_v59 = vld [vmem:[%s19192_s3 + $0x39c] ss:$20 sps:$4 sm:$0xff]  }
 0x314   :  { %12403 = vmatpush3.bf16.msra.mxu1 %v13875_v33  ;;  %12382 = vmatprep.subr.bf16.mxu0 %v13876_v50  ;;  %v6399_v33 = vmax.f32 %v15787_v28, 0.0  ;;  %v13920_v50 = vld [vmem:[%s19192_s3 + $0x118] ss:$20 sps:$4 sm:$0xff]   ;;  %v13931_v28 = vld [vmem:[%s19192_s3 + $0x374] ss:$20 sps:$4 sm:$0xff]  }
 0x315   :  { %12404 = vmatprep.subr.bf16.mxu1 %v13877_v39  ;;  %v6401_v39 = vmax.f32 %v16197_v38, 0.0 }
 0x317   :  { %12383 = vmatpush3.bf16.msra.mxu0 %v13878_v42  ;;  %v13923_v42 = vld [vmem:[%s19192_s3 + $0x398] ss:$20 sps:$4 sm:$0xff]  }
 0x318   :  { %12405 = vmatpush3.bf16.msra.mxu1 %v13879_v2  ;;  %12384 = vmatprep.subr.bf16.mxu0 %v13880_v55  ;;  %v13928_v2 = vld [vmem:[%s19192_s3 + $0xf4] ss:$20 sps:$4 sm:$0xff]   ;;  %v17407_v55 = vpack.c.bf16 %v6399_v33, %v6399_v33  ;;  %v13977_v33 = vld [vmem:[%s19192_s3 + $0x4b0] ss:$20 sps:$4 sm:$0xff]  }
 0x319   :  { %12406 = vmatprep.subr.bf16.mxu1 %v13881_v43  ;;  %v17409_v43 = vpack.c.bf16 %v6401_v39, %v6401_v39  ;;  %v13985_v39 = vld [vmem:[%s19192_s3 + $0x48c] ss:$20 sps:$4 sm:$0xff]  }
 0x31b   :  { %12385 = vmatpush3.bf16.msra.mxu0 %v13882_v45 }
 0x31c   :  { %12407 = vmatpush3.bf16.msra.mxu1 %v13883_v46  ;;  %12386 = vmatprep.subr.bf16.mxu0 %v13884_v48  ;;  %v13926_v46 = vld [vmem:[%s19192_s3 + $0xf0] ss:$20 sps:$4 sm:$0xff]  }
 0x31d   :  { %12408 = vmatprep.subr.bf16.mxu1 %v13885_v52  ;;  %v13929_v48 = vld [vmem:[%s19192_s3 + $0x370] ss:$20 sps:$4 sm:$0xff]  }
 0x31f   :  { %12387 = vmatpush3.bf16.msra.mxu0 %v13886_v53  ;;  %v13934_v53 = vld [vmem:[%s19192_s3 + $0xcc] ss:$20 sps:$4 sm:$0xff]  }
 0x320   :  { %12409 = vmatpush3.bf16.msra.mxu1 %v13887_v54  ;;  %12416 = vmatprep.subr.bf16.mxu0 %v13888_v56 }
 0x321   :  { %12438 = vmatprep.subr.bf16.mxu1 %v13889_v12 }
 0x322   :  { %6271 = vmatmul.mubr.bf16.vlgmr.msra.gmra.mxu0 %v14918_v6  ;;  %v13899_v6 = vld [vmem:[%s19189_s1 + $0x15b8] ss:$52 sps:$4 sm:$0xff]  }
 0x323   :  { %6311 = vmatmul.mubr.bf16.vlgmr.msra.gmra.mxu1 %v14920_v7  ;;  %12417 = vmatpush3.bf16.msra.mxu0 %v13890_v60  ;;  %v13900_v7 = vld [vmem:[%s19189_s1 + $0x1210] ss:$52 sps:$4 sm:$0xff]  }
 0x324   :  { %12439 = vmatpush3.bf16.msra.mxu1 %v13891_v61  ;;  %12418 = vmatprep.subr.bf16.mxu0 %v13892_v62  ;;  %v13932_v61 = vld [vmem:[%s19192_s3 + $0xc8] ss:$20 sps:$4 sm:$0xff]  }
 0x325   :  { %12440 = vmatprep.subr.bf16.mxu1 %v13893_v1  ;;  %6350 = vmatprep.mubr.bf16.mxu0 %v15014_v36  ;;  %v13903_v36 = vld [vmem:[%s19189_s1 + $0x1550] ss:$52 sps:$4 sm:$0xff]   ;;  %v13935_v62 = vld [vmem:[%s19192_s3 + $0x348] ss:$20 sps:$4 sm:$0xff]  }
 0x326   :  { %6390 = vmatprep.mubr.bf16.mxu1 %v15018_v37  ;;  %v13904_v37 = vld [vmem:[%s19189_s1 + $0x11a8] ss:$52 sps:$4 sm:$0xff]  }
 0x327   :  { %12419 = vmatpush3.bf16.msra.mxu0 %v13894_v3  ;;  %v13940_v3 = vld [vmem:[%s19192_s3 + $0xa4] ss:$20 sps:$4 sm:$0xff]  }
 0x328   :  { %12441 = vmatpush3.bf16.msra.mxu1 %v13895_v4  ;;  %12420 = vmatprep.subr.bf16.mxu0 %v13896_v18 }
 0x329   :  { %12442 = vmatprep.subr.bf16.mxu1 %v13897_v5  ;;  %v13938_v5 = vld [vmem:[%s19192_s3 + $0xa0] ss:$20 sps:$4 sm:$0xff]  }
 0x32b   :  { %12421 = vmatpush3.bf16.msra.mxu0 %v13898_v8  ;;  %v13941_v8 = vld [vmem:[%s19192_s3 + $0x320] ss:$20 sps:$4 sm:$0xff]  }
 0x32c   :  { %12443 = vmatpush3.bf16.msra.mxu1 %v13899_v6  ;;  %12422 = vmatprep.subr.bf16.mxu0 %v13900_v7  ;;  %v13946_v6 = vld [vmem:[%s19192_s3 + $0x7c] ss:$20 sps:$4 sm:$0xff]  }
 0x32d   :  { %12444 = vmatprep.subr.bf16.mxu1 %v13901_v9  ;;  %v13949_v7 = vld [vmem:[%s19192_s3 + $0x2fc] ss:$20 sps:$4 sm:$0xff]   ;;  %v13944_v9 = vld [vmem:[%s19192_s3 + $0x78] ss:$20 sps:$4 sm:$0xff]  }
 0x32f   :  { %12423 = vmatpush3.bf16.msra.mxu0 %v13902_v10  ;;  %v13947_v10 = vld [vmem:[%s19192_s3 + $0x2f8] ss:$20 sps:$4 sm:$0xff]  }
 0x330   :  { %12445 = vmatpush3.bf16.msra.mxu1 %v13903_v36  ;;  %12424 = vmatprep.subr.bf16.mxu0 %v13904_v37  ;;  %v13952_v36 = vld [vmem:[%s19192_s3 + $0x54] ss:$20 sps:$4 sm:$0xff]   ;;  %v13950_v37 = vld [vmem:[%s19192_s3 + $0x50] ss:$20 sps:$4 sm:$0xff]  }
 0x331   :  { %12446 = vmatprep.subr.bf16.mxu1 %v13905_v11  ;;  %v13955_v11 = vld [vmem:[%s19192_s3 + $0x2d4] ss:$20 sps:$4 sm:$0xff]  }
 0x333   :  { %12425 = vmatpush3.bf16.msra.mxu0 %v13906_v13  ;;  %v13953_v13 = vld [vmem:[%s19192_s3 + $0x2d0] ss:$20 sps:$4 sm:$0xff]  }
 0x334   :  { %12447 = vmatpush3.bf16.msra.mxu1 %v13907_v14  ;;  %12426 = vmatprep.subr.bf16.mxu0 %v13908_v19  ;;  %v13958_v14 = vld [vmem:[%s19192_s3 + $0x2c] ss:$20 sps:$4 sm:$0xff]   ;;  %v13956_v19 = vld [vmem:[%s19192_s3 + $0x28] ss:$20 sps:$4 sm:$0xff]  }
 0x335   :  { %12448 = vmatprep.subr.bf16.mxu1 %v13909_v20  ;;  %v13961_v20 = vld [vmem:[%s19192_s3 + $0x2ac] ss:$20 sps:$4 sm:$0xff]  }
 0x337   :  { %12427 = vmatpush3.bf16.msra.mxu0 %v13910_v21  ;;  %v13959_v21 = vld [vmem:[%s19192_s3 + $0x2a8] ss:$20 sps:$4 sm:$0xff]  }
 0x338   :  { %12449 = vmatpush3.bf16.msra.mxu1 %v13911_v24  ;;  %12428 = vmatprep.subr.bf16.mxu0 %v13912_v58  ;;  %v13964_v24 = vld [vmem:[%s19192_s3 + $0x4] ss:$20 sps:$4 sm:$0xff]   ;;  %v13962_v58 = vld [vmem:[%s19192_s3] ss:$20 sps:$4 sm:$0xff]  }
 0x339   :  { %12450 = vmatprep.subr.bf16.mxu1 %v13913_v25  ;;  %v13967_v25 = vld [vmem:[%s19192_s3 + $0x284] ss:$20 sps:$4 sm:$0xff]  }
 0x33b   :  { %12429 = vmatpush3.bf16.msra.mxu0 %v13914_v26  ;;  %v13965_v26 = vld [vmem:[%s19192_s3 + $0x280] ss:$20 sps:$4 sm:$0xff]  }
 0x33c   :  { %12451 = vmatpush3.bf16.msra.mxu1 %v13915_v47  ;;  %12430 = vmatprep.subr.bf16.mxu0 %v13916_v51  ;;  %v13970_v47 = vld [vmem:[%s19192_s3 + $0x25c] ss:$20 sps:$4 sm:$0xff]   ;;  %v13968_v51 = vld [vmem:[%s19192_s3 + $0x258] ss:$20 sps:$4 sm:$0xff]  }
 0x33d   :  { %12452 = vmatprep.subr.bf16.mxu1 %v13917_v29  ;;  %v13973_v29 = vld [vmem:[%s19192_s3 + $0x4dc] ss:$20 sps:$4 sm:$0xff]  }
 0x33f   :  { %12431 = vmatpush3.bf16.msra.mxu0 %v13918_v30  ;;  %v13971_v30 = vld [vmem:[%s19192_s3 + $0x4d8] ss:$20 sps:$4 sm:$0xff]  }
 0x340   :  { %12453 = vmatpush3.bf16.msra.mxu1 %v13919_v31  ;;  %9591 = vmatprep.subr.bf16.mxu0 %v13922_v44  ;;  %v13976_v31 = vld [vmem:[%s19192_s3 + $0x234] ss:$20 sps:$4 sm:$0xff]  }
 0x341   :  { %9632 = vmatprep.subr.bf16.mxu1 %v13925_v59  ;;  %v13979_v44 = vld [vmem:[%s19192_s3 + $0x4b4] ss:$20 sps:$4 sm:$0xff]   ;;  %v13974_v59 = vld [vmem:[%s19192_s3 + $0x230] ss:$20 sps:$4 sm:$0xff]  }
 0x342   :  { %v6026_v38 = vpop.f32.mrf.mxu0  ;;  %6351 = vmatmul.mubr.bf16.vlgmr.msra.gmra.mxu0 %v15138_v16  ;;  %v13937_v16 = vld [vmem:[%s19192_s3 + $0x34c] ss:$20 sps:$4 sm:$0xff]  }
 0x343   :  { %v6067_v45 = vpop.f32.mrf.mxu1  ;;  %6391 = vmatmul.mubr.bf16.vlgmr.msra.gmra.mxu1 %v15142_v17  ;;  %v6027_v52 = vadd.f32 %v6026_v38, %v17215_v15  ;;  %9592 = vmatpush1.bf16.msra.mxu0 %v13920_v50  ;;  %v13982_v50 = vld [vmem:[%s19192_s3 + $0x20c] ss:$20 sps:$4 sm:$0xff]   ;;  %v13991_v38 = vld [vmem:[%s19192_s3 + $0x464] ss:$20 sps:$4 sm:$0xff]  }
 0x344   :  { %9623 = vmatprep.mubr.bf16.mxu0 %v17407_v55  ;;  %9633 = vmatpush1.bf16.msra.mxu1 %v13923_v42  ;;  %v6028_v17 = vpop.f32.mrf.mxu0  ;;  %v13980_v42 = vld [vmem:[%s19192_s3 + $0x208] ss:$20 sps:$4 sm:$0xff]  }
 0x345   :  { %9664 = vmatprep.mubr.bf16.mxu1 %v17409_v43  ;;  %v6069_v54 = vpop.f32.mrf.mxu1  ;;  %v17428_v56 = vadd.f32 %v6067_v45, %v6027_v52  ;;  %v6029_v15 = vadd.f32 %v6028_v17, %v17219_v22  ;;  %9593 = vmatprep.subr.bf16.mxu0 %v13928_v2  ;;  %v13943_v22 = vld [vmem:[%s19192_s3 + $0x324] ss:$20 sps:$4 sm:$0xff]   ;;  %v13983_v2 = vld [vmem:[%s19192_s3 + $0x488] ss:$20 sps:$4 sm:$0xff]   ;;  %v13986_v45 = vld [vmem:[%s19192_s3 + $0x1e0] ss:$20 sps:$4 sm:$0xff]  }
 0x346   :  { %9634 = vmatprep.subr.bf16.mxu1 %v13931_v28  ;;  %v6030_v12 = vpop.f32.mrf.mxu0  ;;  %v13988_v28 = vld [vmem:[%s19192_s3 + $0x1e4] ss:$20 sps:$4 sm:$0xff]   ;;  %v14000_v17 = vld [vmem:[%s19192_s3 + $0x194] ss:$20 sps:$4 sm:$0xff]  }
 0x347   :  { %v6071_v60 = vpop.f32.mrf.mxu1  ;;  %v17437_v1 = vadd.f32 %v6069_v54, %v6029_v15  ;;  %9594 = vmatpush1.bf16.msra.mxu0 %v13926_v46  ;;  %v13989_v46 = vld [vmem:[%s19192_s3 + $0x460] ss:$20 sps:$4 sm:$0xff]   ;;  %v13992_v52 = vld [vmem:[%s19192_s3 + $0x1b8] ss:$20 sps:$4 sm:$0xff]   ;;  %v13998_v54 = vld [vmem:[%s19192_s3 + $0x190] ss:$20 sps:$4 sm:$0xff]  }
 0x348   :  { %9635 = vmatpush1.bf16.msra.mxu1 %v13929_v48  ;;  %v6031_v4 = vpop.f32.mrf.mxu0  ;;  %9595 = vmatprep.subr.bf16.mxu0 %v13934_v53  ;;  %v13994_v48 = vld [vmem:[%s19192_s3 + $0x1bc] ss:$20 sps:$4 sm:$0xff]   ;;  %v14003_v15 = vld [vmem:[%s19192_s3 + $0x414] ss:$20 sps:$4 sm:$0xff]   ;;  %v14006_v60 = vld [vmem:[%s19192_s3 + $0x16c] ss:$20 sps:$4 sm:$0xff]  }
 0x349   :  { %v6072_v18 = vpop.f32.mrf.mxu1  ;;  %9636 = vmatprep.subr.bf16.mxu1 %v13937_v16  ;;  %v13997_v53 = vld [vmem:[%s19192_s3 + $0x43c] ss:$20 sps:$4 sm:$0xff]   ;;  %v13995_v16 = vld [vmem:[%s19192_s3 + $0x438] ss:$20 sps:$4 sm:$0xff]   ;;  %v14010_v4 = vld [vmem:[%s19192_s3 + $0x140] ss:$20 sps:$4 sm:$0xff]  }
 0x34a   :  { %v14001_v12 = vld [vmem:[%s19192_s3 + $0x410] ss:$20 sps:$4 sm:$0xff]  }
 0x34b   :  { %9596 = vmatpush1.bf16.msra.mxu0 %v13932_v61  ;;  %v14004_v61 = vld [vmem:[%s19192_s3 + $0x168] ss:$20 sps:$4 sm:$0xff]   ;;  %v14015_v18 = vld [vmem:[%s19192_s3 + $0x3c4] ss:$20 sps:$4 sm:$0xff]  }
 0x34c   :  { %9637 = vmatpush1.bf16.msra.mxu1 %v13935_v62  ;;  %9597 = vmatprep.subr.bf16.mxu0 %v13940_v3  ;;  %v14009_v62 = vld [vmem:[%s19192_s3 + $0x3ec] ss:$20 sps:$4 sm:$0xff]   ;;  %v14007_v3 = vld [vmem:[%s19192_s3 + $0x3e8] ss:$20 sps:$4 sm:$0xff]  }
 0x34d   :  { %9638 = vmatprep.subr.bf16.mxu1 %v13943_v22  ;;  %v14012_v22 = vld [vmem:[%s19192_s3 + $0x144] ss:$20 sps:$4 sm:$0xff]  }
 0x34f   :  { %9598 = vmatpush1.bf16.msra.mxu0 %v13938_v5  ;;  %v6398_v5 = vmax.f32 %v15776_v23, 0.0  ;;  %v14016_v23 = vld [vmem:[%s19192_s3 + $0x618] ss:$20 sps:$4 sm:$0xff]  }
 0x350   :  { %9639 = vmatpush1.bf16.msra.mxu1 %v13941_v8  ;;  %9599 = vmatprep.subr.bf16.mxu0 %v13946_v6  ;;  %v14013_v8 = vld [vmem:[%s19192_s3 + $0x3c0] ss:$20 sps:$4 sm:$0xff]   ;;  %v14018_v6 = vld [vmem:[%s19192_s3 + $0x61c] ss:$20 sps:$4 sm:$0xff]  }
 0x351   :  { %9640 = vmatprep.subr.bf16.mxu1 %v13949_v7  ;;  %v14021_v7 = vld [vmem:[%s19192_s3 + $0x89c] ss:$20 sps:$4 sm:$0xff]  }
 0x353   :  { %9600 = vmatpush1.bf16.msra.mxu0 %v13944_v9  ;;  %v6400_v9 = vmax.f32 %v16189_v0, 0.0 }
 0x354   :  { %9641 = vmatpush1.bf16.msra.mxu1 %v13947_v10  ;;  %9601 = vmatprep.subr.bf16.mxu0 %v13952_v36  ;;  %v6403_v10 = vmax.f32 %v16608_v63, 0.0  ;;  %v14019_v36 = vld [vmem:[%s19192_s3 + $0x898] ss:$20 sps:$4 sm:$0xff]   ;;  %v17621_v63 = vpack.c.bf16 %v6398_v5, %v6398_v5  ;;  %v14061_v5 = vld [vmem:[%s19192_s3 + $0x780] ss:$20 sps:$4 sm:$0xff]  }
 0x355   :  { %9642 = vmatprep.subr.bf16.mxu1 %v13955_v11  ;;  %v17614_v11 = vld [vmem:[%s19191_s2 + $0x8] sm:$0x1f] }
 0x356   :  { %v980_v0 = vrot.slane %v17614_v11, %v15946_v32 }
 0x357   :  { %9602 = vmatpush1.bf16.msra.mxu0 %v13950_v37  ;;  %v6405_v37 = vmax.f32 %v17026_v34, 0.0  ;;  %v14027_v34 = vld [vmem:[%s19192_s3 + $0x874] ss:$20 sps:$4 sm:$0xff]  }
 0x358   :  { %9643 = vmatpush1.bf16.msra.mxu1 %v13953_v13  ;;  %9603 = vmatprep.subr.bf16.mxu0 %v13958_v14  ;;  %v14024_v13 = vld [vmem:[%s19192_s3 + $0x5f4] ss:$20 sps:$4 sm:$0xff]   ;;  %v17626_v14 = vpack.c.bf16 %v6400_v9, %v6400_v9  ;;  %v14067_v9 = vld [vmem:[%s19192_s3 + $0x9d8] ss:$20 sps:$4 sm:$0xff]  }
 0x359   :  { %9644 = vmatprep.subr.bf16.mxu1 %v13961_v20  ;;  %v17631_v20 = vpack.c.bf16 %v6403_v10, %v6403_v10  ;;  %v14070_v10 = vld [vmem:[%s19192_s3 + $0x730] ss:$20 sps:$4 sm:$0xff]  }
 0x35b   :  { %9604 = vmatpush1.bf16.msra.mxu0 %v13956_v19  ;;  %v14022_v19 = vld [vmem:[%s19192_s3 + $0x5f0] ss:$20 sps:$4 sm:$0xff]  }
 0x35c   :  { %9645 = vmatpush1.bf16.msra.mxu1 %v13959_v21  ;;  %9605 = vmatprep.subr.bf16.mxu0 %v13964_v24 }
 0x35d   :  { %9646 = vmatprep.subr.bf16.mxu1 %v13967_v25  ;;  %v14030_v25 = vld [vmem:[%s19192_s3 + $0x5cc] ss:$20 sps:$4 sm:$0xff]  }
 0x35f   :  { %9606 = vmatpush1.bf16.msra.mxu0 %v13962_v58  ;;  %v14025_v58 = vld [vmem:[%s19192_s3 + $0x870] ss:$20 sps:$4 sm:$0xff]  }
 0x360   :  { %9647 = vmatpush1.bf16.msra.mxu1 %v13965_v26  ;;  %9607 = vmatprep.subr.bf16.mxu0 %v13970_v47  ;;  %v17640_v26 = vpack.c.bf16 %v6405_v37, %v6405_v37  ;;  %v14073_v37 = vld [vmem:[%s19192_s3 + $0x9b0] ss:$20 sps:$4 sm:$0xff]  }
 0x361   :  { %9648 = vmatprep.subr.bf16.mxu1 %v13973_v29 }
 0x363   :  { %9608 = vmatpush2.bf16.msra.mxu0 %v13968_v51  ;;  %v14033_v51 = vld [vmem:[%s19192_s3 + $0x84c] ss:$20 sps:$4 sm:$0xff]  }
 0x364   :  { %9649 = vmatpush2.bf16.msra.mxu1 %v13971_v30  ;;  %9609 = vmatprep.subr.bf16.mxu0 %v13976_v31 }
 0x365   :  { %9650 = vmatprep.subr.bf16.mxu1 %v13979_v44 }
 0x367   :  { %9610 = vmatpush2.bf16.msra.mxu0 %v13974_v59 }
 0x368   :  { %9651 = vmatpush2.bf16.msra.mxu1 %v13977_v33  ;;  %9611 = vmatprep.subr.bf16.mxu0 %v13982_v50  ;;  %v14028_v33 = vld [vmem:[%s19192_s3 + $0x5c8] ss:$20 sps:$4 sm:$0xff]  }
 0x369   :  { %9652 = vmatprep.subr.bf16.mxu1 %v13985_v39  ;;  %v14031_v50 = vld [vmem:[%s19192_s3 + $0x848] ss:$20 sps:$4 sm:$0xff]   ;;  %v14036_v39 = vld [vmem:[%s19192_s3 + $0x5a4] ss:$20 sps:$4 sm:$0xff]  }
 0x36b   :  { %9612 = vmatpush2.bf16.msra.mxu0 %v13980_v42  ;;  %v14039_v42 = vld [vmem:[%s19192_s3 + $0x824] ss:$20 sps:$4 sm:$0xff]  }
 0x36c   :  { %9653 = vmatpush2.bf16.msra.mxu1 %v13983_v2  ;;  %9613 = vmatprep.subr.bf16.mxu0 %v13988_v28 }
 0x36d   :  { %9654 = vmatprep.subr.bf16.mxu1 %v13991_v38  ;;  %v14034_v38 = vld [vmem:[%s19192_s3 + $0x5a0] ss:$20 sps:$4 sm:$0xff]  }
 0x36f   :  { %9614 = vmatpush2.bf16.msra.mxu0 %v13986_v45  ;;  %v14037_v45 = vld [vmem:[%s19192_s3 + $0x820] ss:$20 sps:$4 sm:$0xff]  }
 0x370   :  { %9655 = vmatpush2.bf16.msra.mxu1 %v13989_v46  ;;  %9615 = vmatprep.subr.bf16.mxu0 %v13994_v48  ;;  %v14042_v46 = vld [vmem:[%s19192_s3 + $0x57c] ss:$20 sps:$4 sm:$0xff]  }
 0x371   :  { %9656 = vmatprep.subr.bf16.mxu1 %v13997_v53  ;;  %v14045_v48 = vld [vmem:[%s19192_s3 + $0x7fc] ss:$20 sps:$4 sm:$0xff]   ;;  %v14040_v53 = vld [vmem:[%s19192_s3 + $0x578] ss:$20 sps:$4 sm:$0xff]  }
 0x373   :  { %9616 = vmatpush2.bf16.msra.mxu0 %v13992_v52  ;;  %v6402_v52 = vmax.f32 %v16603_v57, 0.0  ;;  %v14118_v57 = vld [vmem:[%s19192_s3 + $0xaf0] ss:$20 sps:$4 sm:$0xff]  }
 0x374   :  { %9657 = vmatpush2.bf16.msra.mxu1 %v13995_v16  ;;  %9617 = vmatprep.subr.bf16.mxu0 %v14000_v17  ;;  %v14043_v16 = vld [vmem:[%s19192_s3 + $0x7f8] ss:$20 sps:$4 sm:$0xff]   ;;  %v14048_v17 = vld [vmem:[%s19192_s3 + $0x554] ss:$20 sps:$4 sm:$0xff]  }
 0x375   :  { %9658 = vmatprep.subr.bf16.mxu1 %v14003_v15  ;;  %v14051_v15 = vld [vmem:[%s19192_s3 + $0x7d4] ss:$20 sps:$4 sm:$0xff]  }
 0x377   :  { %9618 = vmatpush2.bf16.msra.mxu0 %v13998_v54  ;;  %v14046_v54 = vld [vmem:[%s19192_s3 + $0x550] ss:$20 sps:$4 sm:$0xff]  }
 0x378   :  { %9659 = vmatpush2.bf16.msra.mxu1 %v14001_v12  ;;  %9619 = vmatprep.subr.bf16.mxu0 %v14006_v60  ;;  %v14049_v12 = vld [vmem:[%s19192_s3 + $0x7d0] ss:$20 sps:$4 sm:$0xff]   ;;  %v14054_v60 = vld [vmem:[%s19192_s3 + $0x52c] ss:$20 sps:$4 sm:$0xff]  }
 0x379   :  { %9660 = vmatprep.subr.bf16.mxu1 %v14009_v62  ;;  %v14057_v62 = vld [vmem:[%s19192_s3 + $0x7ac] ss:$20 sps:$4 sm:$0xff]  }
 0x37b   :  { %9620 = vmatpush2.bf16.msra.mxu0 %v14004_v61  ;;  %v14052_v61 = vld [vmem:[%s19192_s3 + $0x528] ss:$20 sps:$4 sm:$0xff]  }
 0x37c   :  { %9661 = vmatpush2.bf16.msra.mxu1 %v14007_v3  ;;  %9621 = vmatprep.subr.bf16.mxu0 %v14012_v22  ;;  %v14055_v3 = vld [vmem:[%s19192_s3 + $0x7a8] ss:$20 sps:$4 sm:$0xff]   ;;  %v14060_v22 = vld [vmem:[%s19192_s3 + $0x504] ss:$20 sps:$4 sm:$0xff]  }
 0x37d   :  { %9662 = vmatprep.subr.bf16.mxu1 %v14015_v18  ;;  %v14063_v18 = vld [vmem:[%s19192_s3 + $0x784] ss:$20 sps:$4 sm:$0xff]  }
 0x37f   :  { %9622 = vmatpush2.bf16.msra.mxu0 %v14010_v4  ;;  %v14058_v4 = vld [vmem:[%s19192_s3 + $0x500] ss:$20 sps:$4 sm:$0xff]  }
 0x380   :  { %9663 = vmatpush2.bf16.msra.mxu1 %v14013_v8  ;;  %9673 = vmatprep.subr.bf16.mxu0 %v14018_v6  ;;  %v14066_v8 = vld [vmem:[%s19192_s3 + $0x75c] ss:$20 sps:$4 sm:$0xff]   ;;  %v14064_v6 = vld [vmem:[%s19192_s3 + $0x758] ss:$20 sps:$4 sm:$0xff]  }
 0x381   :  { %9714 = vmatprep.subr.bf16.mxu1 %v14021_v7  ;;  %v14069_v7 = vld [vmem:[%s19192_s3 + $0x9dc] ss:$20 sps:$4 sm:$0xff]  }
 0x382   :  { %v6108_v21 = vpop.f32.mrf.mxu0  ;;  %9624 = vmatmul.mubr.bf16.vlgmr.msra.gmra.mxu0 %v17621_v63 }
 0x383   :  { %v6149_v24 = vpop.f32.mrf.mxu1  ;;  %v6109_v47 = vadd.f32 %v6108_v21, %v980_v0  ;;  %9665 = vmatmul.mubr.bf16.vlgmr.msra.gmra.mxu1 %v17626_v14  ;;  %9674 = vmatpush1.bf16.msra.mxu0 %v14016_v23  ;;  %v14072_v23 = vld [vmem:[%s19192_s3 + $0x734] ss:$20 sps:$4 sm:$0xff]   ;;  %v14078_v0 = vld [vmem:[%s19192_s3 + $0x70c] ss:$20 sps:$4 sm:$0xff]   ;;  %v14084_v21 = vld [vmem:[%s19192_s3 + $0x6e4] ss:$20 sps:$4 sm:$0xff]  }
 0x384   :  { %9705 = vmatprep.mubr.bf16.mxu0 %v17631_v20  ;;  %9715 = vmatpush1.bf16.msra.mxu1 %v14019_v36  ;;  %v17647_v29 = vpop.f32.mrf.mxu0  ;;  %v14075_v36 = vld [vmem:[%s19192_s3 + $0x9b4] ss:$20 sps:$4 sm:$0xff]  }
 0x385   :  { %v17649_v30 = vpop.f32.mrf.mxu1  ;;  %v17651_v31 = vadd.f32 %v6149_v24, %v6109_v47  ;;  %9746 = vmatprep.mubr.bf16.mxu1 %v17640_v26  ;;  %9675 = vmatprep.subr.bf16.mxu0 %v14024_v13  ;;  %v14076_v13 = vld [vmem:[%s19192_s3 + $0x708] ss:$20 sps:$4 sm:$0xff]   ;;  %v14082_v24 = vld [vmem:[%s19192_s3 + $0x6e0] ss:$20 sps:$4 sm:$0xff]  }
 0x386   :  { %v6112_v44 = vpop.f32.mrf.mxu0  ;;  %9716 = vmatprep.subr.bf16.mxu1 %v14027_v34  ;;  %v14081_v34 = vld [vmem:[%s19192_s3 + $0x98c] ss:$20 sps:$4 sm:$0xff]   ;;  %v14090_v47 = vld [vmem:[%s19192_s3 + $0x6bc] ss:$20 sps:$4 sm:$0xff]  }
 0x387   :  { %v6153_v59 = vpop.f32.mrf.mxu1  ;;  %9676 = vmatpush1.bf16.msra.mxu0 %v14022_v19  ;;  %v14079_v19 = vld [vmem:[%s19192_s3 + $0x988] ss:$20 sps:$4 sm:$0xff]  }
 0x388   :  { %9717 = vmatpush1.bf16.msra.mxu1 %v14025_v58  ;;  %v6113_v2 = vpop.f32.mrf.mxu0  ;;  %9677 = vmatprep.subr.bf16.mxu0 %v14030_v25  ;;  %v14087_v58 = vld [vmem:[%s19192_s3 + $0x964] ss:$20 sps:$4 sm:$0xff]   ;;  %v14085_v25 = vld [vmem:[%s19192_s3 + $0x960] ss:$20 sps:$4 sm:$0xff]   ;;  %v14093_v44 = vld [vmem:[%s19192_s3 + $0x93c] ss:$20 sps:$4 sm:$0xff]  }
 0x389   :  { %v6154_v28 = vpop.f32.mrf.mxu1  ;;  %9718 = vmatprep.subr.bf16.mxu1 %v14033_v51  ;;  %v14088_v51 = vld [vmem:[%s19192_s3 + $0x6b8] ss:$20 sps:$4 sm:$0xff]  }
 0x38a   :  { %v14091_v59 = vld [vmem:[%s19192_s3 + $0x938] ss:$20 sps:$4 sm:$0xff]   ;;  %v14100_v28 = vld [vmem:[%s19192_s3 + $0x668] ss:$20 sps:$4 sm:$0xff]  }
 0x38b   :  { %9678 = vmatpush1.bf16.msra.mxu0 %v14028_v33  ;;  %v14096_v33 = vld [vmem:[%s19192_s3 + $0x694] ss:$20 sps:$4 sm:$0xff]   ;;  %v14102_v2 = vld [vmem:[%s19192_s3 + $0x66c] ss:$20 sps:$4 sm:$0xff]  }
 0x38c   :  { %9719 = vmatpush1.bf16.msra.mxu1 %v14031_v50  ;;  %9679 = vmatprep.subr.bf16.mxu0 %v14036_v39  ;;  %v14094_v50 = vld [vmem:[%s19192_s3 + $0x690] ss:$20 sps:$4 sm:$0xff]   ;;  %v14099_v39 = vld [vmem:[%s19192_s3 + $0x914] ss:$20 sps:$4 sm:$0xff]  }
 0x38d   :  { %9720 = vmatprep.subr.bf16.mxu1 %v14039_v42  ;;  %v14097_v42 = vld [vmem:[%s19192_s3 + $0x910] ss:$20 sps:$4 sm:$0xff]  }
 0x38f   :  { %9680 = vmatpush1.bf16.msra.mxu0 %v14034_v38  ;;  %v14105_v38 = vld [vmem:[%s19192_s3 + $0x8ec] ss:$20 sps:$4 sm:$0xff]  }
 0x390   :  { %9721 = vmatpush1.bf16.msra.mxu1 %v14037_v45  ;;  %9681 = vmatprep.subr.bf16.mxu0 %v14042_v46  ;;  %v14103_v45 = vld [vmem:[%s19192_s3 + $0x8e8] ss:$20 sps:$4 sm:$0xff]   ;;  %v14108_v46 = vld [vmem:[%s19192_s3 + $0x644] ss:$20 sps:$4 sm:$0xff]  }
 0x391   :  { %9722 = vmatprep.subr.bf16.mxu1 %v14045_v48  ;;  %v14106_v48 = vld [vmem:[%s19192_s3 + $0x640] ss:$20 sps:$4 sm:$0xff]  }
 0x393   :  { %9682 = vmatpush1.bf16.msra.mxu0 %v14040_v53  ;;  %v14111_v53 = vld [vmem:[%s19192_s3 + $0x8c4] ss:$20 sps:$4 sm:$0xff]  }
 0x394   :  { %9723 = vmatpush1.bf16.msra.mxu1 %v14043_v16  ;;  %9683 = vmatprep.subr.bf16.mxu0 %v14048_v17  ;;  %v14109_v16 = vld [vmem:[%s19192_s3 + $0x8c0] ss:$20 sps:$4 sm:$0xff]   ;;  %v984_v17 = vrot.slane %v17614_v11, %v15961_v41  ;;  %v14112_v11 = vld [vmem:[%s19192_s3 + $0xb18] ss:$20 sps:$4 sm:$0xff]  }
 0x395   :  { %9724 = vmatprep.subr.bf16.mxu1 %v14051_v15  ;;  %v14117_v15 = vld [vmem:[%s19192_s3 + $0xd9c] ss:$20 sps:$4 sm:$0xff]  }
 0x397   :  { %9684 = vmatpush1.bf16.msra.mxu0 %v14046_v54  ;;  %v14114_v54 = vld [vmem:[%s19192_s3 + $0xb1c] ss:$20 sps:$4 sm:$0xff]  }
 0x398   :  { %9725 = vmatpush1.bf16.msra.mxu1 %v14049_v12  ;;  %9685 = vmatprep.subr.bf16.mxu0 %v14054_v60  ;;  %v6404_v12 = vmax.f32 %v17009_v27, 0.0  ;;  %v6407_v60 = vmax.f32 %v17437_v1, 0.0  ;;  %v17840_v27 = vpack.c.bf16 %v6402_v52, %v6402_v52  ;;  %v14121_v52 = vld [vmem:[%s19192_s3 + $0xd70] ss:$20 sps:$4 sm:$0xff]  }
 0x399   :  { %9726 = vmatprep.subr.bf16.mxu1 %v14057_v62  ;;  %v6111_v62 = vadd.f32 %v17647_v29, %v984_v17  ;;  %v14157_v17 = vld [vmem:[%s19192_s3 + $0xc80] ss:$20 sps:$4 sm:$0xff]  }
 0x39a   :  { %v17842_v1 = vpack.c.bf16 %v6404_v12, %v6404_v12  ;;  %v17847_v29 = vpack.c.bf16 %v6407_v60, %v6407_v60  ;;  %v14165_v12 = vld [vmem:[%s19192_s3 + $0xedc] ss:$20 sps:$4 sm:$0xff]   ;;  %v14163_v60 = vld [vmem:[%s19192_s3 + $0xed8] ss:$20 sps:$4 sm:$0xff]  }
 0x39b   :  { %9686 = vmatpush1.bf16.msra.mxu0 %v14052_v61  ;;  %v14115_v61 = vld [vmem:[%s19192_s3 + $0xd98] ss:$20 sps:$4 sm:$0xff]  }
 0x39c   :  { %9727 = vmatpush1.bf16.msra.mxu1 %v14055_v3  ;;  %9687 = vmatprep.subr.bf16.mxu0 %v14060_v22  ;;  %v14120_v3 = vld [vmem:[%s19192_s3 + $0xaf4] ss:$20 sps:$4 sm:$0xff]  }
 0x39d   :  { %9728 = vmatprep.subr.bf16.mxu1 %v14063_v18  ;;  %v14123_v22 = vld [vmem:[%s19192_s3 + $0xd74] ss:$20 sps:$4 sm:$0xff]  }
 0x39f   :  { %9688 = vmatpush1.bf16.msra.mxu0 %v14058_v4 }
 0x3a0   :  { %9729 = vmatpush1.bf16.msra.mxu1 %v14061_v5  ;;  %9689 = vmatprep.subr.bf16.mxu0 %v14066_v8  ;;  %v6152_v5 = vadd.f32 %v17649_v30, %v6111_v62  ;;  %v14126_v8 = vld [vmem:[%s19192_s3 + $0xacc] ss:$20 sps:$4 sm:$0xff]   ;;  %v14171_v62 = vld [vmem:[%s19192_s3 + $0xeb4] ss:$20 sps:$4 sm:$0xff]  }
 0x3a1   :  { %9730 = vmatprep.subr.bf16.mxu1 %v14069_v7 }
 0x3a3   :  { %9690 = vmatpush2.bf16.msra.mxu0 %v14064_v6  ;;  %v14129_v6 = vld [vmem:[%s19192_s3 + $0xd4c] ss:$20 sps:$4 sm:$0xff]  }
 0x3a4   :  { %9731 = vmatpush2.bf16.msra.mxu1 %v14067_v9  ;;  %9691 = vmatprep.subr.bf16.mxu0 %v14072_v23 }
 0x3a5   :  { %9732 = vmatprep.subr.bf16.mxu1 %v14075_v36 }
 0x3a7   :  { %9692 = vmatpush2.bf16.msra.mxu0 %v14070_v10 }
 0x3a8   :  { %9733 = vmatpush2.bf16.msra.mxu1 %v14073_v37  ;;  %9693 = vmatprep.subr.bf16.mxu0 %v14078_v0  ;;  %v14124_v37 = vld [vmem:[%s19192_s3 + $0xac8] ss:$20 sps:$4 sm:$0xff]  }
 0x3a9   :  { %9734 = vmatprep.subr.bf16.mxu1 %v14081_v34  ;;  %v14127_v0 = vld [vmem:[%s19192_s3 + $0xd48] ss:$20 sps:$4 sm:$0xff]  }
 0x3ab   :  { %9694 = vmatpush2.bf16.msra.mxu0 %v14076_v13  ;;  %v14132_v13 = vld [vmem:[%s19192_s3 + $0xaa4] ss:$20 sps:$4 sm:$0xff]  }
 0x3ac   :  { %9735 = vmatpush2.bf16.msra.mxu1 %v14079_v19  ;;  %9695 = vmatprep.subr.bf16.mxu0 %v14084_v21 }
 0x3ad   :  { %9736 = vmatprep.subr.bf16.mxu1 %v14087_v58  ;;  %v14135_v58 = vld [vmem:[%s19192_s3 + $0xd24] ss:$20 sps:$4 sm:$0xff]  }
 0x3af   :  { %9696 = vmatpush2.bf16.msra.mxu0 %v14082_v24  ;;  %v14130_v24 = vld [vmem:[%s19192_s3 + $0xaa0] ss:$20 sps:$4 sm:$0xff]  }
 0x3b0   :  { %9737 = vmatpush2.bf16.msra.mxu1 %v14085_v25  ;;  %9697 = vmatprep.subr.bf16.mxu0 %v14090_v47  ;;  %v14133_v25 = vld [vmem:[%s19192_s3 + $0xd20] ss:$20 sps:$4 sm:$0xff]   ;;  %v14138_v47 = vld [vmem:[%s19192_s3 + $0xa7c] ss:$20 sps:$4 sm:$0xff]  }
 0x3b1   :  { %9738 = vmatprep.subr.bf16.mxu1 %v14093_v44  ;;  %v14141_v44 = vld [vmem:[%s19192_s3 + $0xcfc] ss:$20 sps:$4 sm:$0xff]  }
 0x3b3   :  { %9698 = vmatpush2.bf16.msra.mxu0 %v14088_v51 }
 0x3b4   :  { %9739 = vmatpush2.bf16.msra.mxu1 %v14091_v59  ;;  %9699 = vmatprep.subr.bf16.mxu0 %v14096_v33  ;;  %v14136_v59 = vld [vmem:[%s19192_s3 + $0xa78] ss:$20 sps:$4 sm:$0xff]  }
 0x3b5   :  { %9740 = vmatprep.subr.bf16.mxu1 %v14099_v39  ;;  %v14139_v33 = vld [vmem:[%s19192_s3 + $0xcf8] ss:$20 sps:$4 sm:$0xff]   ;;  %v14142_v39 = vld [vmem:[%s19192_s3 + $0xa50] ss:$20 sps:$4 sm:$0xff]  }
 0x3b7   :  { %9700 = vmatpush2.bf16.msra.mxu0 %v14094_v50  ;;  %v14144_v50 = vld [vmem:[%s19192_s3 + $0xa54] ss:$20 sps:$4 sm:$0xff]  }
 0x3b8   :  { %9741 = vmatpush2.bf16.msra.mxu1 %v14097_v42  ;;  %9701 = vmatprep.subr.bf16.mxu0 %v14102_v2  ;;  %v14147_v42 = vld [vmem:[%s19192_s3 + $0xcd4] ss:$20 sps:$4 sm:$0xff]   ;;  %v14145_v2 = vld [vmem:[%s19192_s3 + $0xcd0] ss:$20 sps:$4 sm:$0xff]  }
 0x3b9   :  { %9742 = vmatprep.subr.bf16.mxu1 %v14105_v38  ;;  %v14148_v38 = vld [vmem:[%s19192_s3 + $0xa28] ss:$20 sps:$4 sm:$0xff]  }
 0x3bb   :  { %9702 = vmatpush2.bf16.msra.mxu0 %v14100_v28  ;;  %v14150_v28 = vld [vmem:[%s19192_s3 + $0xa2c] ss:$20 sps:$4 sm:$0xff]  }
 0x3bc   :  { %9743 = vmatpush2.bf16.msra.mxu1 %v14103_v45  ;;  %9703 = vmatprep.subr.bf16.mxu0 %v14108_v46  ;;  %v14153_v45 = vld [vmem:[%s19192_s3 + $0xcac] ss:$20 sps:$4 sm:$0xff]   ;;  %v14151_v46 = vld [vmem:[%s19192_s3 + $0xca8] ss:$20 sps:$4 sm:$0xff]  }
 0x3bd   :  { %9744 = vmatprep.subr.bf16.mxu1 %v14111_v53  ;;  %v14154_v53 = vld [vmem:[%s19192_s3 + $0xa00] ss:$20 sps:$4 sm:$0xff]  }
 0x3bf   :  { %9704 = vmatpush2.bf16.msra.mxu0 %v14106_v48  ;;  %v14156_v48 = vld [vmem:[%s19192_s3 + $0xa04] ss:$20 sps:$4 sm:$0xff]  }
 0x3c0   :  { %9745 = vmatpush2.bf16.msra.mxu1 %v14109_v16  ;;  %9755 = vmatprep.subr.bf16.mxu0 %v14114_v54  ;;  %v14159_v16 = vld [vmem:[%s19192_s3 + $0xc84] ss:$20 sps:$4 sm:$0xff]   ;;  %v14162_v54 = vld [vmem:[%s19192_s3 + $0xc5c] ss:$20 sps:$4 sm:$0xff]  }
 0x3c1   :  { %9796 = vmatprep.subr.bf16.mxu1 %v14117_v15  ;;  %v14160_v15 = vld [vmem:[%s19192_s3 + $0xc58] ss:$20 sps:$4 sm:$0xff]  }
 0x3c2   :  { %v17849_v4 = vpop.f32.mrf.mxu0  ;;  %9706 = vmatmul.mubr.bf16.vlgmr.msra.gmra.mxu0 %v17840_v27 }
 0x3c3   :  { %v17851_v18 = vpop.f32.mrf.mxu1  ;;  %9747 = vmatmul.mubr.bf16.vlgmr.msra.gmra.mxu1 %v17842_v1  ;;  %9756 = vmatpush1.bf16.msra.mxu0 %v14112_v11  ;;  %v14168_v11 = vld [vmem:[%s19192_s3 + $0xc34] ss:$20 sps:$4 sm:$0xff]  }
 0x3c4   :  { %9787 = vmatprep.mubr.bf16.mxu0 %v17847_v29  ;;  %9797 = vmatpush1.bf16.msra.mxu1 %v14115_v61  ;;  %v6192_v7 = vpop.f32.mrf.mxu0  ;;  %v14166_v61 = vld [vmem:[%s19192_s3 + $0xc30] ss:$20 sps:$4 sm:$0xff]  }
 0x3c5   :  { %v6233_v9 = vpop.f32.mrf.mxu1  ;;  %v6193_v23 = vadd.f32 %v6192_v7, %v6152_v5  ;;  %9757 = vmatprep.subr.bf16.mxu0 %v14120_v3  ;;  %9798 = vmatprep.subr.bf16.mxu1 %v14123_v22  ;;  %v14169_v5 = vld [vmem:[%s19192_s3 + $0xeb0] ss:$20 sps:$4 sm:$0xff]  }
 0x3c6   :  { %v6194_v30 = vpop.f32.mrf.mxu0 }
 0x3c7   :  { %v6235_v10 = vpop.f32.mrf.mxu1  ;;  %v6234_v36 = vadd.f32 %v6233_v9, %v6193_v23  ;;  %9758 = vmatpush1.bf16.msra.mxu0 %v14118_v57  ;;  %v14172_v23 = vld [vmem:[%s19192_s3 + $0xc08] ss:$20 sps:$4 sm:$0xff]  }
 0x3c8   :  { %9799 = vmatpush1.bf16.msra.mxu1 %v14121_v52  ;;  %v6195_v34 = vpop.f32.mrf.mxu0  ;;  %9759 = vmatprep.subr.bf16.mxu0 %v14126_v8  ;;  %v14174_v8 = vld [vmem:[%s19192_s3 + $0xc0c] ss:$20 sps:$4 sm:$0xff]  }
 0x3c9   :  { %v6236_v19 = vpop.f32.mrf.mxu1  ;;  %v6409_v21 = vmax.f32 %v6234_v36, 0.0  ;;  %9800 = vmatprep.subr.bf16.mxu1 %v14129_v6  ;;  %v14177_v6 = vld [vmem:[%s19192_s3 + $0xe8c] ss:$20 sps:$4 sm:$0xff]   ;;  %v14175_v36 = vld [vmem:[%s19192_s3 + $0xe88] ss:$20 sps:$4 sm:$0xff]  }
 0x3ca   :  { %v14181_v34 = vld [vmem:[%s19192_s3 + $0xe60] ss:$20 sps:$4 sm:$0xff]   ;;  %v14186_v19 = vld [vmem:[%s19192_s3 + $0xbbc] ss:$20 sps:$4 sm:$0xff]  }
 0x3cb   :  { %v17890_v51 = vpack.c.bf16 %v6409_v21, %v6409_v21  ;;  %9760 = vmatpush1.bf16.msra.mxu0 %v14124_v37  ;;  %v14180_v37 = vld [vmem:[%s19192_s3 + $0xbe4] ss:$20 sps:$4 sm:$0xff]   ;;  %v14189_v21 = vld [vmem:[%s19192_s3 + $0xe3c] ss:$20 sps:$4 sm:$0xff]  }
 0x3cc   :  { %9801 = vmatpush1.bf16.msra.mxu1 %v14127_v0  ;;  %9761 = vmatprep.subr.bf16.mxu0 %v14132_v13  ;;  %v14183_v0 = vld [vmem:[%s19192_s3 + $0xe64] ss:$20 sps:$4 sm:$0xff]   ;;  %v14178_v13 = vld [vmem:[%s19192_s3 + $0xbe0] ss:$20 sps:$4 sm:$0xff]  }
 0x3cd   :  { %9828 = vmatprep.mubr.bf16.mxu1 %v17890_v51  ;;  %9802 = vmatprep.subr.bf16.mxu1 %v14135_v58  ;;  %v14187_v58 = vld [vmem:[%s19192_s3 + $0xe38] ss:$20 sps:$4 sm:$0xff]  }
 0x3cf   :  { %9762 = vmatpush1.bf16.msra.mxu0 %v14130_v24  ;;  %v14184_v24 = vld [vmem:[%s19192_s3 + $0xbb8] ss:$20 sps:$4 sm:$0xff]  }
 0x3d0   :  { %9803 = vmatpush1.bf16.msra.mxu1 %v14133_v25  ;;  %9763 = vmatprep.subr.bf16.mxu0 %v14138_v47  ;;  %v14192_v25 = vld [vmem:[%s19192_s3 + $0xb94] ss:$20 sps:$4 sm:$0xff]  }
 0x3d1   :  { %9804 = vmatprep.subr.bf16.mxu1 %v14141_v44  ;;  %v14195_v47 = vld [vmem:[%s19192_s3 + $0xe14] ss:$20 sps:$4 sm:$0xff]   ;;  %v14190_v44 = vld [vmem:[%s19192_s3 + $0xb90] ss:$20 sps:$4 sm:$0xff]  }
 0x3d3   :  { %9764 = vmatpush1.bf16.msra.mxu0 %v14136_v59  ;;  %v14193_v59 = vld [vmem:[%s19192_s3 + $0xe10] ss:$20 sps:$4 sm:$0xff]  }
 0x3d4   :  { %9805 = vmatpush1.bf16.msra.mxu1 %v14139_v33  ;;  %9765 = vmatprep.subr.bf16.mxu0 %v14144_v50  ;;  %v14198_v33 = vld [vmem:[%s19192_s3 + $0xb6c] ss:$20 sps:$4 sm:$0xff]   ;;  %v6191_v50 = vadd.f32 %v17849_v4, %v17651_v31  ;;  %v14204_v31 = vld [vmem:[%s19192_s3 + $0xb44] ss:$20 sps:$4 sm:$0xff]  }
 0x3d5   :  { %9806 = vmatprep.subr.bf16.mxu1 %v14147_v42  ;;  %v14196_v42 = vld [vmem:[%s19192_s3 + $0xb68] ss:$20 sps:$4 sm:$0xff]  }
 0x3d6   :  { %v6232_v4 = vadd.f32 %v17851_v18, %v6191_v50  ;;  %v14210_v18 = vld [vmem:[%s19192_s3 + $0x3a4] ss:$20 sps:$4 sm:$0xff]  }
 0x3d7   :  { %9766 = vmatpush1.bf16.msra.mxu0 %v14142_v39  ;;  %v14201_v39 = vld [vmem:[%s19192_s3 + $0xdec] ss:$20 sps:$4 sm:$0xff]   ;;  %v14234_v50 = vld [vmem:[%s19192_s3 + $0x304] ss:$20 sps:$4 sm:$0xff]  }
 0x3d8   :  { %9807 = vmatpush1.bf16.msra.mxu1 %v14145_v2  ;;  %9767 = vmatprep.subr.bf16.mxu0 %v14150_v28  ;;  %v14199_v2 = vld [vmem:[%s19192_s3 + $0xde8] ss:$20 sps:$4 sm:$0xff]   ;;  %v14207_v28 = vld [vmem:[%s19192_s3 + $0xdc4] ss:$20 sps:$4 sm:$0xff]  }
 0x3d9   :  { %9808 = vmatprep.subr.bf16.mxu1 %v14153_v45  ;;  %v6406_v45 = vmax.f32 %v17428_v56, 0.0 }
 0x3db   :  { %9768 = vmatpush1.bf16.msra.mxu0 %v14148_v38  ;;  %v14202_v38 = vld [vmem:[%s19192_s3 + $0xb40] ss:$20 sps:$4 sm:$0xff]  }
 0x3dc   :  { %9809 = vmatpush1.bf16.msra.mxu1 %v14151_v46  ;;  %9769 = vmatprep.subr.bf16.mxu0 %v14156_v48  ;;  %v14205_v46 = vld [vmem:[%s19192_s3 + $0xdc0] ss:$20 sps:$4 sm:$0xff]   ;;  %v6408_v48 = vmax.f32 %v6232_v4, 0.0  ;;  %v14238_v4 = vld [vmem:[%s19192_s3 + $0x2d8] ss:$20 sps:$4 sm:$0xff]  }
 0x3dd   :  { %9810 = vmatprep.subr.bf16.mxu1 %v14159_v16 }
 0x3df   :  { %9770 = vmatpush1.bf16.msra.mxu0 %v14154_v53  ;;  %v14653_v53 = vld [vmem:[%s19191_s2 + $0x8] sm:$0x1f] }
 0x3e0   :  { %9811 = vmatpush1.bf16.msra.mxu1 %v14157_v17  ;;  %9771 = vmatprep.subr.bf16.mxu0 %v14162_v54  ;;  %v988_v16 = vrot.slane %v14653_v53, %v16359_v49  ;;  %v14213_v17 = vld [vmem:[%s19192_s3 + $0xf2c] ss:$20 sps:$4 sm:$0xff]   ;;  %v14249_v53 = vld [vmem:[%s19192_s3 + $0x84] ss:$20 sps:$4 sm:$0xff]  }
 0x3e1   :  { %9812 = vmatprep.subr.bf16.mxu1 %v14165_v12  ;;  %v14208_v54 = vld [vmem:[%s19192_s3 + $0x3a0] ss:$20 sps:$4 sm:$0xff]   ;;  %v14216_v12 = vld [vmem:[%s19192_s3 + $0x37c] ss:$20 sps:$4 sm:$0xff]  }
 0x3e2   :  { %v17959_v3 = vpop.f32.mrf.mxu0 }
 0x3e3   :  { %v17961_v22 = vpop.f32.mrf.mxu1  ;;  %9772 = vmatpush2.bf16.msra.mxu0 %v14160_v15  ;;  %v18061_v15 = vpack.c.bf16 %v6406_v45, %v6406_v45  ;;  %v14243_v45 = vld [vmem:[%s19192_s3 + $0xac] ss:$20 sps:$4 sm:$0xff]  }
 0x3e4   :  { %9813 = vmatpush2.bf16.msra.mxu1 %v14163_v60  ;;  %v17963_v57 = vpop.f32.mrf.mxu0  ;;  %9773 = vmatprep.subr.bf16.mxu0 %v14168_v11  ;;  %v18066_v60 = vpack.c.bf16 %v6408_v48, %v6408_v48  ;;  %v14252_v48 = vld [vmem:[%s19192_s3 + $0x28c] ss:$20 sps:$4 sm:$0xff]  }
 0x3e5   :  { %v17965_v52 = vpop.f32.mrf.mxu1  ;;  %9814 = vmatprep.subr.bf16.mxu1 %v14171_v62  ;;  %v12390_v56 = vadd.f32 %v17963_v57, %v17959_v3  ;;  %v14211_v62 = vld [vmem:[%s19192_s3 + $0xf28] ss:$20 sps:$4 sm:$0xff]  }
 0x3e6   :  { %v12391_v7 = vpop.f32.mrf.mxu0 }
 0x3e7   :  { %v12413_v9 = vpop.f32.mrf.mxu1  ;;  %9774 = vmatpush2.bf16.msra.mxu0 %v14166_v61  ;;  %v6273_v11 = vadd.f32 %v12390_v56, %v988_v16  ;;  %v12412_v61 = vadd.f32 %v17965_v52, %v17961_v22  ;;  %v14214_v22 = vld [vmem:[%s19192_s3 + $0x378] ss:$20 sps:$4 sm:$0xff]   ;;  %v14250_v16 = vld [vmem:[%s19192_s3 + $0x288] ss:$20 sps:$4 sm:$0xff]   ;;  %v14247_v56 = vld [vmem:[%s19192_s3 + $0x80] ss:$20 sps:$4 sm:$0xff]  }
 0x3e8   :  { %9815 = vmatpush2.bf16.msra.mxu1 %v14169_v5  ;;  %v12392_v30 = vpop.f32.mrf.mxu0  ;;  %9775 = vmatprep.subr.bf16.mxu0 %v14174_v8  ;;  %v14219_v5 = vld [vmem:[%s19192_s3 + $0xf04] ss:$20 sps:$4 sm:$0xff]  }
 0x3e9   :  { %v12414_v10 = vpop.f32.mrf.mxu1  ;;  %9816 = vmatprep.subr.bf16.mxu1 %v14177_v6  ;;  %v14222_v6 = vld [vmem:[%s19192_s3 + $0x354] ss:$20 sps:$4 sm:$0xff]   ;;  %v6313_v7 = vadd.f32 %v12412_v61, %v6273_v11  ;;  %v14655_v30 = vmov 0   ;;  %v14253_v11 = vld [vmem:[%s19192_s3 + $0x58] ss:$20 sps:$4 sm:$0xff]  }
 0x3ea   :  { %v14264_v61 = vld [vmem:[%s19192_s3 + $0x4bc] ss:$20 sps:$4 sm:$0xff]  }
 0x3eb   :  { %9776 = vmatpush2.bf16.msra.mxu0 %v14172_v23  ;;  %v14217_v23 = vld [vmem:[%s19192_s3 + $0xf00] ss:$20 sps:$4 sm:$0xff]  }
 0x3ec   :  { %9817 = vmatpush2.bf16.msra.mxu1 %v14175_v36  ;;  %9777 = vmatprep.subr.bf16.mxu0 %v14180_v37  ;;  %v14225_v37 = vld [vmem:[%s19192_s3 + $0x124] ss:$20 sps:$4 sm:$0xff]  }
 0x3ed   :  { %9818 = vmatprep.subr.bf16.mxu1 %v14183_v0 }
 0x3ef   :  { %9778 = vmatpush2.bf16.msra.mxu0 %v14178_v13 }
 0x3f0   :  { %9819 = vmatpush2.bf16.msra.mxu1 %v14181_v34  ;;  %9779 = vmatprep.subr.bf16.mxu0 %v14186_v19  ;;  %v14220_v34 = vld [vmem:[%s19192_s3 + $0x350] ss:$20 sps:$4 sm:$0xff]  }
 0x3f1   :  { %9820 = vmatprep.subr.bf16.mxu1 %v14189_v21 }
 0x3f3   :  { %9780 = vmatpush2.bf16.msra.mxu0 %v14184_v24  ;;  %v14228_v24 = vld [vmem:[%s19192_s3 + $0x32c] ss:$20 sps:$4 sm:$0xff]  }
 0x3f4   :  { %9821 = vmatpush2.bf16.msra.mxu1 %v14187_v58  ;;  %9781 = vmatprep.subr.bf16.mxu0 %v14192_v25 }
 0x3f5   :  { %9822 = vmatprep.subr.bf16.mxu1 %v14195_v47  ;;  %v14226_v47 = vld [vmem:[%s19192_s3 + $0x328] ss:$20 sps:$4 sm:$0xff]  }
 0x3f7   :  { %9782 = vmatpush2.bf16.msra.mxu0 %v14190_v44  ;;  %v14223_v44 = vld [vmem:[%s19192_s3 + $0x120] ss:$20 sps:$4 sm:$0xff]  }
 0x3f8   :  { %9823 = vmatpush2.bf16.msra.mxu1 %v14193_v59  ;;  %9783 = vmatprep.subr.bf16.mxu0 %v14198_v33  ;;  %v14231_v33 = vld [vmem:[%s19192_s3 + $0xfc] ss:$20 sps:$4 sm:$0xff]  }
 0x3f9   :  { %9824 = vmatprep.subr.bf16.mxu1 %v14201_v39  ;;  %v14232_v39 = vld [vmem:[%s19192_s3 + $0x300] ss:$20 sps:$4 sm:$0xff]  }
 0x3fb   :  { %9784 = vmatpush2.bf16.msra.mxu0 %v14196_v42  ;;  %v14229_v42 = vld [vmem:[%s19192_s3 + $0xf8] ss:$20 sps:$4 sm:$0xff]  }
 0x3fc   :  { %9825 = vmatpush2.bf16.msra.mxu1 %v14199_v2  ;;  %9785 = vmatprep.subr.bf16.mxu0 %v14204_v31  ;;  %v14240_v2 = vld [vmem:[%s19192_s3 + $0x2dc] ss:$20 sps:$4 sm:$0xff]   ;;  %v14237_v31 = vld [vmem:[%s19192_s3 + $0xd4] ss:$20 sps:$4 sm:$0xff]  }
 0x3fd   :  { %9826 = vmatprep.subr.bf16.mxu1 %v14207_v28  ;;  %v14235_v28 = vld [vmem:[%s19192_s3 + $0xd0] ss:$20 sps:$4 sm:$0xff]  }
 0x3ff   :  { %9786 = vmatpush2.bf16.msra.mxu0 %v14202_v38  ;;  %v14246_v38 = vld [vmem:[%s19192_s3 + $0x2b4] ss:$20 sps:$4 sm:$0xff]  }
 0x400   :  { %9827 = vmatpush2.bf16.msra.mxu1 %v14205_v46  ;;  %9919 = vmatprep.subr.bf16.mxu0 %v14210_v18  ;;  %v14244_v46 = vld [vmem:[%s19192_s3 + $0x2b0] ss:$20 sps:$4 sm:$0xff]   ;;  %v14241_v18 = vld [vmem:[%s19192_s3 + $0xa8] ss:$20 sps:$4 sm:$0xff]  }
 0x401   :  { %9849 = vmatprep.subr.bf16.mxu1 %v14213_v17  ;;  %v14258_v17 = vld [vmem:[%s19192_s3 + $0x4e4] ss:$20 sps:$4 sm:$0xff]  }
 0x402   :  { %v12432_v3 = vpop.f32.mrf.mxu0  ;;  %9788 = vmatmul.mubr.bf16.vlgmr.msra.gmra.mxu0 %v18061_v15 }
 0x403   :  { %v12454_v57 = vpop.f32.mrf.mxu1  ;;  %9829 = vmatmul.mubr.bf16.vlgmr.msra.gmra.mxu1 %v18066_v60  ;;  %9920 = vmatpush1.bf16.msra.mxu0 %v14208_v54  ;;  %v14255_v54 = vld [vmem:[%s19192_s3 + $0x5c] ss:$20 sps:$4 sm:$0xff]  }
 0x404   :  { %9951 = vmatprep.mubr.bf16.mxu0 %v17409_v43  ;;  %v12433_v52 = vpop.f32.mrf.mxu0  ;;  %9921 = vmatprep.subr.bf16.mxu0 %v14216_v12  ;;  %v14256_v12 = vld [vmem:[%s19192_s3 + $0x4e0] ss:$20 sps:$4 sm:$0xff]  }
 0x405   :  { %v12455_v8 = vpop.f32.mrf.mxu1  ;;  %v12434_v9 = vadd.f32 %v12433_v52, %v12432_v3  ;;  %9850 = vmatpush1.bf16.msra.mxu1 %v14211_v62  ;;  %9869 = vmatprep.mubr.bf16.mxu1 %v14655_v30  ;;  %v14261_v62 = vld [vmem:[%s19192_s3 + $0x34] ss:$20 sps:$4 sm:$0xff]   ;;  %v14262_v3 = vld [vmem:[%s19192_s3 + $0x4b8] ss:$20 sps:$4 sm:$0xff]   ;;  %v14268_v52 = vld [vmem:[%s19192_s3 + $0x490] ss:$20 sps:$4 sm:$0xff]  }
 0x406   :  { %v12435_v10 = vpop.f32.mrf.mxu0  ;;  %9851 = vmatprep.subr.bf16.mxu1 %v14219_v5  ;;  %v12456_v13 = vadd.f32 %v12455_v8, %v12454_v57  ;;  %v14259_v57 = vld [vmem:[%s19192_s3 + $0x30] ss:$20 sps:$4 sm:$0xff]   ;;  %v14270_v5 = vld [vmem:[%s19192_s3 + $0x494] ss:$20 sps:$4 sm:$0xff]  }
 0x407   :  { %v12457_v36 = vpop.f32.mrf.mxu1  ;;  %v6353_v0 = vadd.f32 %v12434_v9, %v6313_v7  ;;  %9922 = vmatpush1.bf16.msra.mxu0 %v14214_v22  ;;  %v14267_v22 = vld [vmem:[%s19192_s3 + $0xc] ss:$20 sps:$4 sm:$0xff]   ;;  %v14265_v8 = vld [vmem:[%s19192_s3 + $0x8] ss:$20 sps:$4 sm:$0xff]   ;;  %v14273_v7 = vld [vmem:[%s19192_s3 + $0x264] ss:$20 sps:$4 sm:$0xff]  }
 0x408   :  { %v12436_v19 = vpop.f32.mrf.mxu0  ;;  %9923 = vmatprep.subr.bf16.mxu0 %v14222_v6  ;;  %v14276_v6 = vld [vmem:[%s19192_s3 + $0x46c] ss:$20 sps:$4 sm:$0xff]   ;;  %v14274_v9 = vld [vmem:[%s19192_s3 + $0x468] ss:$20 sps:$4 sm:$0xff]   ;;  %v14282_v10 = vld [vmem:[%s19192_s3 + $0x444] ss:$20 sps:$4 sm:$0xff]  }
 0x409   :  { %v12458_v21 = vpop.f32.mrf.mxu1  ;;  %v6393_v58 = vadd.f32 %v12456_v13, %v6353_v0  ;;  %9852 = vmatpush1.bf16.msra.mxu1 %v14217_v23  ;;  %v14271_v23 = vld [vmem:[%s19192_s3 + $0x260] ss:$20 sps:$4 sm:$0xff]   ;;  %v14279_v36 = vld [vmem:[%s19192_s3 + $0x23c] ss:$20 sps:$4 sm:$0xff]   ;;  %v14277_v0 = vld [vmem:[%s19192_s3 + $0x238] ss:$20 sps:$4 sm:$0xff]  }
 0x40a   :  { %9878 = vmatprep.subr.bf16.mxu1 %v14225_v37  ;;  %v14280_v37 = vld [vmem:[%s19192_s3 + $0x440] ss:$20 sps:$4 sm:$0xff]   ;;  %v14288_v13 = vld [vmem:[%s19192_s3 + $0x41c] ss:$20 sps:$4 sm:$0xff]   ;;  %v14286_v19 = vld [vmem:[%s19192_s3 + $0x418] ss:$20 sps:$4 sm:$0xff]  }
 0x40b   :  { %v6410_v25 = vmax.f32 %v6393_v58, 0.0  ;;  %9924 = vmatpush1.bf16.msra.mxu0 %v14220_v34  ;;  %v14285_v34 = vld [vmem:[%s19192_s3 + $0x214] ss:$20 sps:$4 sm:$0xff]   ;;  %v14283_v21 = vld [vmem:[%s19192_s3 + $0x210] ss:$20 sps:$4 sm:$0xff]  }
 0x40c   :  { %9925 = vmatprep.subr.bf16.mxu0 %v14228_v24  ;;  %v14294_v24 = vld [vmem:[%s19192_s3 + $0x3f4] ss:$20 sps:$4 sm:$0xff]   ;;  %v14291_v58 = vld [vmem:[%s19192_s3 + $0x1ec] ss:$20 sps:$4 sm:$0xff]  }
 0x40d   :  { %v18104_v59 = vpack.c.bf16 %v6410_v25, %v6410_v25  ;;  %v14292_v25 = vld [vmem:[%s19192_s3 + $0x3f0] ss:$20 sps:$4 sm:$0xff]  }
 0x40f   :  { %12322 = vmatmul.mubr.msk.bf16.vlgmr.msra.gmra.mxu1 %vm9587_vm0, %v18104_v59  ;;  %9926 = vmatpush1.bf16.msra.mxu0 %v14226_v47  ;;  %v14289_v47 = vld [vmem:[%s19192_s3 + $0x1e8] ss:$20 sps:$4 sm:$0xff]  }
 0x410   :  { %9879 = vmatpush1.bf16.msra.mxu1 %v14223_v44  ;;  %9910 = vmatprep.mubr.bf16.mxu1 %v17407_v55  ;;  %v14300_v44 = vld [vmem:[%s19192_s3 + $0x3cc] ss:$20 sps:$4 sm:$0xff]  }
 0x411   :  { %9880 = vmatprep.subr.bf16.mxu1 %v14231_v33  ;;  %9927 = vmatprep.subr.bf16.mxu0 %v14234_v50  ;;  %v14297_v33 = vld [vmem:[%s19192_s3 + $0x1c4] ss:$20 sps:$4 sm:$0xff]   ;;  %v14298_v50 = vld [vmem:[%s19192_s3 + $0x3c8] ss:$20 sps:$4 sm:$0xff]  }
 0x413   :  { %9928 = vmatpush1.bf16.msra.mxu0 %v14232_v39  ;;  %v14295_v39 = vld [vmem:[%s19192_s3 + $0x1c0] ss:$20 sps:$4 sm:$0xff]  }
 0x414   :  { %9881 = vmatpush1.bf16.msra.mxu1 %v14229_v42  ;;  %9929 = vmatprep.subr.bf16.mxu0 %v14240_v2  ;;  %v7012_v42 = vld [vmem:[%s19193_s4] sm:$0x1f] }
 0x415   :  { %9882 = vmatprep.subr.bf16.mxu1 %v14237_v31  ;;  %v14306_v2 = vld [vmem:[%s19192_s3 + $0x8a4] ss:$20 sps:$4 sm:$0xff]   ;;  %v14303_v31 = vld [vmem:[%s19192_s3 + $0x19c] ss:$20 sps:$4 sm:$0xff]  }
 0x417   :  { %9930 = vmatpush1.bf16.msra.mxu0 %v14238_v4  ;;  %v7017_v4 = vrot.slane %v7012_v42, %v15536_v35  ;;  %v14309_v35 = vld [vmem:[%s19192_s3 + $0x174] ss:$20 sps:$4 sm:$0xff]  }
 0x418   :  { %9883 = vmatpush1.bf16.msra.mxu1 %v14235_v28  ;;  %9931 = vmatprep.subr.bf16.mxu0 %v14246_v38  ;;  %v14304_v28 = vld [vmem:[%s19192_s3 + $0x8a0] ss:$20 sps:$4 sm:$0xff]   ;;  %v14301_v38 = vld [vmem:[%s19192_s3 + $0x198] ss:$20 sps:$4 sm:$0xff]  }
 0x419   :  { %9884 = vmatprep.subr.bf16.mxu1 %v14243_v45  ;;  %v14312_v45 = vld [vmem:[%s19192_s3 + $0x87c] ss:$20 sps:$4 sm:$0xff]  }
 0x41b   :  { %9932 = vmatpush1.bf16.msra.mxu0 %v14244_v46  ;;  %v7021_v46 = vrot.slane %v7012_v42, %v15545_v40  ;;  %v14307_v40 = vld [vmem:[%s19192_s3 + $0x170] ss:$20 sps:$4 sm:$0xff]  }
 0x41c   :  { %9885 = vmatpush1.bf16.msra.mxu1 %v14241_v18  ;;  %9933 = vmatprep.subr.bf16.mxu0 %v14252_v48  ;;  %v14354_v42 = vld [vmem:[%s19192_s3 + $0x9e4] ss:$20 sps:$4 sm:$0xff]  }
 0x41d   :  { %9886 = vmatprep.subr.bf16.mxu1 %v14249_v53 }
 0x41f   :  { %9934 = vmatpush1.bf16.msra.mxu0 %v14250_v16  ;;  %v14310_v16 = vld [vmem:[%s19192_s3 + $0x878] ss:$20 sps:$4 sm:$0xff]  }
 0x420   :  { %9887 = vmatpush1.bf16.msra.mxu1 %v14247_v56  ;;  %9935 = vmatprep.subr.bf16.mxu0 %v14258_v17  ;;  %v14318_v17 = vld [vmem:[%s19192_s3 + $0x854] ss:$20 sps:$4 sm:$0xff]  }
 0x421   :  { %9888 = vmatprep.subr.bf16.mxu1 %v14255_v54 }
 0x423   :  { %9936 = vmatpush2.bf16.msra.mxu0 %v14256_v12 }
 0x424   :  { %9889 = vmatpush1.bf16.msra.mxu1 %v14253_v11  ;;  %9937 = vmatprep.subr.bf16.mxu0 %v14264_v61  ;;  %v14315_v61 = vld [vmem:[%s19192_s3 + $0x14c] ss:$20 sps:$4 sm:$0xff]  }
 0x425   :  { %9890 = vmatprep.subr.bf16.mxu1 %v14261_v62 }
 0x427   :  { %9938 = vmatpush2.bf16.msra.mxu0 %v14262_v3 }
 0x428   :  { %9891 = vmatpush1.bf16.msra.mxu1 %v14259_v57  ;;  %9939 = vmatprep.subr.bf16.mxu0 %v14270_v5  ;;  %v14316_v5 = vld [vmem:[%s19192_s3 + $0x850] ss:$20 sps:$4 sm:$0xff]  }
 0x429   :  { %9892 = vmatprep.subr.bf16.mxu1 %v14267_v22 }
 0x42b   :  { %9940 = vmatpush2.bf16.msra.mxu0 %v14268_v52  ;;  %v14313_v52 = vld [vmem:[%s19192_s3 + $0x148] ss:$20 sps:$4 sm:$0xff]  }
 0x42c   :  { %9893 = vmatpush1.bf16.msra.mxu1 %v14265_v8  ;;  %9941 = vmatprep.subr.bf16.mxu0 %v14276_v6  ;;  %v14324_v8 = vld [vmem:[%s19192_s3 + $0x82c] ss:$20 sps:$4 sm:$0xff]  }
 0x42d   :  { %9894 = vmatprep.subr.bf16.mxu1 %v14273_v7  ;;  %v14321_v7 = vld [vmem:[%s19192_s3 + $0x624] ss:$20 sps:$4 sm:$0xff]  }
 0x42f   :  { %9942 = vmatpush2.bf16.msra.mxu0 %v14274_v9  ;;  %v14322_v9 = vld [vmem:[%s19192_s3 + $0x828] ss:$20 sps:$4 sm:$0xff]  }
 0x430   :  { %9895 = vmatpush2.bf16.msra.mxu1 %v14271_v23  ;;  %9943 = vmatprep.subr.bf16.mxu0 %v14282_v10  ;;  %v14319_v23 = vld [vmem:[%s19192_s3 + $0x620] ss:$20 sps:$4 sm:$0xff]   ;;  %v14327_v10 = vld [vmem:[%s19192_s3 + $0x5fc] ss:$20 sps:$4 sm:$0xff]  }
 0x431   :  { %9896 = vmatprep.subr.bf16.mxu1 %v14279_v36  ;;  %v14330_v36 = vld [vmem:[%s19192_s3 + $0x804] ss:$20 sps:$4 sm:$0xff]  }
 0x433   :  { %9944 = vmatpush2.bf16.msra.mxu0 %v14280_v37  ;;  %v14328_v37 = vld [vmem:[%s19192_s3 + $0x800] ss:$20 sps:$4 sm:$0xff]  }
 0x434   :  { %9897 = vmatpush2.bf16.msra.mxu1 %v14277_v0  ;;  %9945 = vmatprep.subr.bf16.mxu0 %v14288_v13  ;;  %v14325_v0 = vld [vmem:[%s19192_s3 + $0x5f8] ss:$20 sps:$4 sm:$0xff]   ;;  %v14336_v13 = vld [vmem:[%s19192_s3 + $0x7dc] ss:$20 sps:$4 sm:$0xff]  }
 0x435   :  { %9898 = vmatprep.subr.bf16.mxu1 %v14285_v34  ;;  %v14333_v34 = vld [vmem:[%s19192_s3 + $0x5d4] ss:$20 sps:$4 sm:$0xff]  }
 0x437   :  { %9946 = vmatpush2.bf16.msra.mxu0 %v14286_v19  ;;  %v14334_v19 = vld [vmem:[%s19192_s3 + $0x7d8] ss:$20 sps:$4 sm:$0xff]  }
 0x438   :  { %9899 = vmatpush2.bf16.msra.mxu1 %v14283_v21  ;;  %9947 = vmatprep.subr.bf16.mxu0 %v14294_v24  ;;  %v14331_v21 = vld [vmem:[%s19192_s3 + $0x5d0] ss:$20 sps:$4 sm:$0xff]   ;;  %v14342_v24 = vld [vmem:[%s19192_s3 + $0x7b4] ss:$20 sps:$4 sm:$0xff]  }
 0x439   :  { %9900 = vmatprep.subr.bf16.mxu1 %v14291_v58  ;;  %v14339_v58 = vld [vmem:[%s19192_s3 + $0x5ac] ss:$20 sps:$4 sm:$0xff]  }
 0x43b   :  { %9948 = vmatpush2.bf16.msra.mxu0 %v14292_v25  ;;  %v14340_v25 = vld [vmem:[%s19192_s3 + $0x7b0] ss:$20 sps:$4 sm:$0xff]  }
 0x43c   :  { %9901 = vmatpush2.bf16.msra.mxu1 %v14289_v47  ;;  %9949 = vmatprep.subr.bf16.mxu0 %v14300_v44  ;;  %v14337_v47 = vld [vmem:[%s19192_s3 + $0x5a8] ss:$20 sps:$4 sm:$0xff]   ;;  %v14348_v44 = vld [vmem:[%s19192_s3 + $0x78c] ss:$20 sps:$4 sm:$0xff]  }
 0x43d   :  { %9902 = vmatprep.subr.bf16.mxu1 %v14297_v33  ;;  %v14345_v33 = vld [vmem:[%s19192_s3 + $0x584] ss:$20 sps:$4 sm:$0xff]  }
 0x43f   :  { %9950 = vmatpush2.bf16.msra.mxu0 %v14298_v50  ;;  %v14346_v50 = vld [vmem:[%s19192_s3 + $0x788] ss:$20 sps:$4 sm:$0xff]  }
 0x440   :  { %9903 = vmatpush2.bf16.msra.mxu1 %v14295_v39  ;;  %10001 = vmatprep.subr.bf16.mxu0 %v14306_v2  ;;  %v14343_v39 = vld [vmem:[%s19192_s3 + $0x580] ss:$20 sps:$4 sm:$0xff]   ;;  %v14351_v2 = vld [vmem:[%s19192_s3 + $0x55c] ss:$20 sps:$4 sm:$0xff]  }
 0x441   :  { %9904 = vmatprep.subr.bf16.mxu1 %v14303_v31  ;;  %v14352_v31 = vld [vmem:[%s19192_s3 + $0x9e0] ss:$20 sps:$4 sm:$0xff]  }
 0x442   :  { %v9625_v18 = vpop.f32.mrf.mxu0  ;;  %9952 = vmatmul.mubr.bf16.vlgmr.msra.gmra.mxu0 %v17626_v14 }
 0x443   :  { %v9626_v48 = vadd.f32 %v9625_v18, %v7017_v4  ;;  %v9666_v53 = vpop.f32.mrf.mxu1  ;;  %10002 = vmatpush1.bf16.msra.mxu0 %v14304_v28  ;;  %10033 = vmatprep.mubr.bf16.mxu0 %v17640_v26  ;;  %v14349_v4 = vld [vmem:[%s19192_s3 + $0x558] ss:$20 sps:$4 sm:$0xff]   ;;  %v14360_v28 = vld [vmem:[%s19192_s3 + $0x9bc] ss:$20 sps:$4 sm:$0xff]  }
 0x444   :  { %9905 = vmatpush2.bf16.msra.mxu1 %v14301_v38  ;;  %v9627_v56 = vpop.f32.mrf.mxu0  ;;  %10003 = vmatprep.subr.bf16.mxu0 %v14312_v45  ;;  %v14357_v38 = vld [vmem:[%s19192_s3 + $0x534] ss:$20 sps:$4 sm:$0xff]   ;;  %v14358_v45 = vld [vmem:[%s19192_s3 + $0x9b8] ss:$20 sps:$4 sm:$0xff]  }
 0x445   :  { %v18287_v54 = vadd.f32 %v9666_v53, %v9626_v48  ;;  %v9628_v12 = vadd.f32 %v9627_v56, %v7021_v46  ;;  %v9668_v11 = vpop.f32.mrf.mxu1  ;;  %9906 = vmatprep.subr.bf16.mxu1 %v14309_v35  ;;  %v14355_v46 = vld [vmem:[%s19192_s3 + $0x530] ss:$20 sps:$4 sm:$0xff]   ;;  %v14366_v35 = vld [vmem:[%s19192_s3 + $0x994] ss:$20 sps:$4 sm:$0xff]   ;;  %v14363_v18 = vld [vmem:[%s19192_s3 + $0x50c] ss:$20 sps:$4 sm:$0xff]  }
 0x446   :  { %v9629_v62 = vpop.f32.mrf.mxu0  ;;  %v14364_v48 = vld [vmem:[%s19192_s3 + $0x990] ss:$20 sps:$4 sm:$0xff]   ;;  %v14361_v53 = vld [vmem:[%s19192_s3 + $0x508] ss:$20 sps:$4 sm:$0xff]  }
 0x447   :  { %v18292_v3 = vadd.f32 %v9668_v11, %v9628_v12  ;;  %v9670_v57 = vpop.f32.mrf.mxu1  ;;  %10004 = vmatpush1.bf16.msra.mxu0 %v14310_v16  ;;  %v14372_v16 = vld [vmem:[%s19192_s3 + $0x96c] ss:$20 sps:$4 sm:$0xff]   ;;  %v14369_v56 = vld [vmem:[%s19192_s3 + $0x764] ss:$20 sps:$4 sm:$0xff]   ;;  %v14375_v11 = vld [vmem:[%s19192_s3 + $0x73c] ss:$20 sps:$4 sm:$0xff]  }
 0x448   :  { %9907 = vmatpush2.bf16.msra.mxu1 %v14307_v40  ;;  %v9630_v22 = vpop.f32.mrf.mxu0  ;;  %10005 = vmatprep.subr.bf16.mxu0 %v14318_v17  ;;  %v14370_v40 = vld [vmem:[%s19192_s3 + $0x968] ss:$20 sps:$4 sm:$0xff]   ;;  %v14367_v17 = vld [vmem:[%s19192_s3 + $0x760] ss:$20 sps:$4 sm:$0xff]   ;;  %v14378_v12 = vld [vmem:[%s19192_s3 + $0x944] ss:$20 sps:$4 sm:$0xff]  }
 0x449   :  { %v9671_v6 = vpop.f32.mrf.mxu1  ;;  %9908 = vmatprep.subr.bf16.mxu1 %v14315_v61  ;;  %v14376_v61 = vld [vmem:[%s19192_s3 + $0x940] ss:$20 sps:$4 sm:$0xff]   ;;  %v14373_v62 = vld [vmem:[%s19192_s3 + $0x738] ss:$20 sps:$4 sm:$0xff]   ;;  %v14384_v57 = vld [vmem:[%s19192_s3 + $0x91c] ss:$20 sps:$4 sm:$0xff]  }
 0x44a   :  { %v14382_v22 = vld [vmem:[%s19192_s3 + $0x918] ss:$20 sps:$4 sm:$0xff]  }
 0x44b   :  { %10006 = vmatpush1.bf16.msra.mxu0 %v14316_v5  ;;  %v14381_v5 = vld [vmem:[%s19192_s3 + $0x714] ss:$20 sps:$4 sm:$0xff]   ;;  %v14387_v6 = vld [vmem:[%s19192_s3 + $0x6ec] ss:$20 sps:$4 sm:$0xff]  }
 0x44c   :  { %9909 = vmatpush2.bf16.msra.mxu1 %v14313_v52  ;;  %10007 = vmatprep.subr.bf16.mxu0 %v14324_v8  ;;  %v14379_v52 = vld [vmem:[%s19192_s3 + $0x710] ss:$20 sps:$4 sm:$0xff]   ;;  %v14390_v8 = vld [vmem:[%s19192_s3 + $0x8f4] ss:$20 sps:$4 sm:$0xff]  }
 0x44d   :  { %9960 = vmatprep.subr.bf16.mxu1 %v14321_v7  ;;  %v14388_v7 = vld [vmem:[%s19192_s3 + $0x8f0] ss:$20 sps:$4 sm:$0xff]  }
 0x44f   :  { %9911 = vmatmul.mubr.bf16.vlgmr.msra.gmra.mxu1 %v17621_v63  ;;  %10008 = vmatpush1.bf16.msra.mxu0 %v14322_v9  ;;  %v14385_v9 = vld [vmem:[%s19192_s3 + $0x6e8] ss:$20 sps:$4 sm:$0xff]  }
 0x450   :  { %9961 = vmatpush1.bf16.msra.mxu1 %v14319_v23  ;;  %9992 = vmatprep.mubr.bf16.mxu1 %v17631_v20  ;;  %v14396_v23 = vld [vmem:[%s19192_s3 + $0x8cc] ss:$20 sps:$4 sm:$0xff]  }
 0x451   :  { %9962 = vmatprep.subr.bf16.mxu1 %v14327_v10  ;;  %10009 = vmatprep.subr.bf16.mxu0 %v14330_v36  ;;  %v14393_v10 = vld [vmem:[%s19192_s3 + $0x6c4] ss:$20 sps:$4 sm:$0xff]   ;;  %v14394_v36 = vld [vmem:[%s19192_s3 + $0x8c8] ss:$20 sps:$4 sm:$0xff]  }
 0x453   :  { %10010 = vmatpush1.bf16.msra.mxu0 %v14328_v37  ;;  %v14391_v37 = vld [vmem:[%s19192_s3 + $0x6c0] ss:$20 sps:$4 sm:$0xff]  }
 0x454   :  { %9963 = vmatpush1.bf16.msra.mxu1 %v14325_v0  ;;  %10011 = vmatprep.subr.bf16.mxu0 %v14336_v13  ;;  %v14402_v0 = vld [vmem:[%s19192_s3 + $0xda4] ss:$20 sps:$4 sm:$0xff]   ;;  %v14399_v13 = vld [vmem:[%s19192_s3 + $0x69c] ss:$20 sps:$4 sm:$0xff]  }
 0x455   :  { %9964 = vmatprep.subr.bf16.mxu1 %v14333_v34  ;;  %v14400_v34 = vld [vmem:[%s19192_s3 + $0xda0] ss:$20 sps:$4 sm:$0xff]  }
 0x457   :  { %10012 = vmatpush1.bf16.msra.mxu0 %v14334_v19  ;;  %v14397_v19 = vld [vmem:[%s19192_s3 + $0x698] ss:$20 sps:$4 sm:$0xff]  }
 0x458   :  { %9965 = vmatpush1.bf16.msra.mxu1 %v14331_v21  ;;  %10013 = vmatprep.subr.bf16.mxu0 %v14342_v24  ;;  %v14408_v21 = vld [vmem:[%s19192_s3 + $0xd7c] ss:$20 sps:$4 sm:$0xff]   ;;  %v14405_v24 = vld [vmem:[%s19192_s3 + $0x674] ss:$20 sps:$4 sm:$0xff]  }
 0x459   :  { %9966 = vmatprep.subr.bf16.mxu1 %v14339_v58 }
 0x45b   :  { %10014 = vmatpush1.bf16.msra.mxu0 %v14340_v25 }
 0x45c   :  { %9967 = vmatpush1.bf16.msra.mxu1 %v14337_v47  ;;  %10015 = vmatprep.subr.bf16.mxu0 %v14348_v44  ;;  %v14406_v44 = vld [vmem:[%s19192_s3 + $0xd78] ss:$20 sps:$4 sm:$0xff]  }
 0x45d   :  { %9968 = vmatprep.subr.bf16.mxu1 %v14345_v33 }
 0x45f   :  { %10016 = vmatpush1.bf16.msra.mxu0 %v14346_v50  ;;  %v14403_v50 = vld [vmem:[%s19192_s3 + $0x670] ss:$20 sps:$4 sm:$0xff]  }
 0x460   :  { %9969 = vmatpush1.bf16.msra.mxu1 %v14343_v39  ;;  %10017 = vmatprep.subr.bf16.mxu0 %v14354_v42  ;;  %v14414_v39 = vld [vmem:[%s19192_s3 + $0xd54] ss:$20 sps:$4 sm:$0xff]  }
 0x461   :  { %9970 = vmatprep.subr.bf16.mxu1 %v14351_v2 }
 0x463   :  { %10018 = vmatpush2.bf16.msra.mxu0 %v14352_v31  ;;  %v14411_v31 = vld [vmem:[%s19192_s3 + $0x64c] ss:$20 sps:$4 sm:$0xff]  }
 0x464   :  { %9971 = vmatpush1.bf16.msra.mxu1 %v14349_v4  ;;  %10019 = vmatprep.subr.bf16.mxu0 %v14360_v28 }
 0x465   :  { %9972 = vmatprep.subr.bf16.mxu1 %v14357_v38 }
 0x467   :  { %10020 = vmatpush2.bf16.msra.mxu0 %v14358_v45  ;;  %v14412_v45 = vld [vmem:[%s19192_s3 + $0xd50] ss:$20 sps:$4 sm:$0xff]  }
 0x468   :  { %9973 = vmatpush1.bf16.msra.mxu1 %v14355_v46  ;;  %10021 = vmatprep.subr.bf16.mxu0 %v14366_v35  ;;  %v14420_v35 = vld [vmem:[%s19192_s3 + $0xd2c] ss:$20 sps:$4 sm:$0xff]  }
 0x469   :  { %9974 = vmatprep.subr.bf16.mxu1 %v14363_v18 }
 0x46b   :  { %10022 = vmatpush2.bf16.msra.mxu0 %v14364_v48  ;;  %v14417_v48 = vld [vmem:[%s19192_s3 + $0xb24] ss:$20 sps:$4 sm:$0xff]  }
 0x46c   :  { %9975 = vmatpush1.bf16.msra.mxu1 %v14361_v53  ;;  %10023 = vmatprep.subr.bf16.mxu0 %v14372_v16  ;;  %v14418_v53 = vld [vmem:[%s19192_s3 + $0xd28] ss:$20 sps:$4 sm:$0xff]   ;;  %v14415_v16 = vld [vmem:[%s19192_s3 + $0xb20] ss:$20 sps:$4 sm:$0xff]  }
 0x46d   :  { %9976 = vmatprep.subr.bf16.mxu1 %v14369_v56  ;;  %v14423_v56 = vld [vmem:[%s19192_s3 + $0xafc] ss:$20 sps:$4 sm:$0xff]  }
 0x46f   :  { %10024 = vmatpush2.bf16.msra.mxu0 %v14370_v40  ;;  %v14426_v40 = vld [vmem:[%s19192_s3 + $0xd04] ss:$20 sps:$4 sm:$0xff]  }
 0x470   :  { %9977 = vmatpush2.bf16.msra.mxu1 %v14367_v17  ;;  %10025 = vmatprep.subr.bf16.mxu0 %v14378_v12  ;;  %v14424_v17 = vld [vmem:[%s19192_s3 + $0xd00] ss:$20 sps:$4 sm:$0xff]   ;;  %v14421_v12 = vld [vmem:[%s19192_s3 + $0xaf8] ss:$20 sps:$4 sm:$0xff]  }
 0x471   :  { %9978 = vmatprep.subr.bf16.mxu1 %v14375_v11  ;;  %v14432_v11 = vld [vmem:[%s19192_s3 + $0xcdc] ss:$20 sps:$4 sm:$0xff]  }
 0x473   :  { %10026 = vmatpush2.bf16.msra.mxu0 %v14376_v61  ;;  %v14429_v61 = vld [vmem:[%s19192_s3 + $0xad4] ss:$20 sps:$4 sm:$0xff]  }
 0x474   :  { %9979 = vmatpush2.bf16.msra.mxu1 %v14373_v62  ;;  %10027 = vmatprep.subr.bf16.mxu0 %v14384_v57  ;;  %v14430_v62 = vld [vmem:[%s19192_s3 + $0xcd8] ss:$20 sps:$4 sm:$0xff]   ;;  %v14427_v57 = vld [vmem:[%s19192_s3 + $0xad0] ss:$20 sps:$4 sm:$0xff]  }
 0x475   :  { %9980 = vmatprep.subr.bf16.mxu1 %v14381_v5  ;;  %v14438_v5 = vld [vmem:[%s19192_s3 + $0xcb4] ss:$20 sps:$4 sm:$0xff]  }
 0x477   :  { %10028 = vmatpush2.bf16.msra.mxu0 %v14382_v22  ;;  %v14435_v22 = vld [vmem:[%s19192_s3 + $0xaac] ss:$20 sps:$4 sm:$0xff]  }
 0x478   :  { %9981 = vmatpush2.bf16.msra.mxu1 %v14379_v52  ;;  %10029 = vmatprep.subr.bf16.mxu0 %v14390_v8  ;;  %v14436_v52 = vld [vmem:[%s19192_s3 + $0xcb0] ss:$20 sps:$4 sm:$0xff]   ;;  %v14433_v8 = vld [vmem:[%s19192_s3 + $0xaa8] ss:$20 sps:$4 sm:$0xff]  }
 0x479   :  { %9982 = vmatprep.subr.bf16.mxu1 %v14387_v6  ;;  %v14444_v6 = vld [vmem:[%s19192_s3 + $0xc8c] ss:$20 sps:$4 sm:$0xff]  }
 0x47b   :  { %10030 = vmatpush2.bf16.msra.mxu0 %v14388_v7  ;;  %v14441_v7 = vld [vmem:[%s19192_s3 + $0xa84] ss:$20 sps:$4 sm:$0xff]  }
 0x47c   :  { %9983 = vmatpush2.bf16.msra.mxu1 %v14385_v9  ;;  %10031 = vmatprep.subr.bf16.mxu0 %v14396_v23  ;;  %v14442_v9 = vld [vmem:[%s19192_s3 + $0xc88] ss:$20 sps:$4 sm:$0xff]   ;;  %v14439_v23 = vld [vmem:[%s19192_s3 + $0xa80] ss:$20 sps:$4 sm:$0xff]  }
 0x47d   :  { %9984 = vmatprep.subr.bf16.mxu1 %v14393_v10  ;;  %v14450_v10 = vld [vmem:[%s19192_s3 + $0xee4] ss:$20 sps:$4 sm:$0xff]  }
 0x47f   :  { %10032 = vmatpush2.bf16.msra.mxu0 %v14394_v36  ;;  %v14447_v36 = vld [vmem:[%s19192_s3 + $0xa5c] ss:$20 sps:$4 sm:$0xff]  }
 0x480   :  { %9985 = vmatpush2.bf16.msra.mxu1 %v14391_v37  ;;  %10083 = vmatprep.subr.bf16.mxu0 %v14402_v0  ;;  %v14448_v37 = vld [vmem:[%s19192_s3 + $0xee0] ss:$20 sps:$4 sm:$0xff]   ;;  %v14445_v0 = vld [vmem:[%s19192_s3 + $0xa58] ss:$20 sps:$4 sm:$0xff]  }
 0x481   :  { %9986 = vmatprep.subr.bf16.mxu1 %v14399_v13  ;;  %v14456_v13 = vld [vmem:[%s19192_s3 + $0xebc] ss:$20 sps:$4 sm:$0xff]  }
 0x482   :  { %v9707_v58 = vpop.f32.mrf.mxu0  ;;  %10034 = vmatmul.mubr.bf16.vlgmr.msra.gmra.mxu0 %v17842_v1 }
 0x483   :  { %v9708_v25 = vadd.f32 %v9707_v58, %v18287_v54  ;;  %v9748_v47 = vpop.f32.mrf.mxu1  ;;  %10084 = vmatpush1.bf16.msra.mxu0 %v14400_v34  ;;  %10115 = vmatprep.mubr.bf16.mxu0 %v17890_v51  ;;  %v14453_v34 = vld [vmem:[%s19192_s3 + $0xa34] ss:$20 sps:$4 sm:$0xff]   ;;  %v14459_v58 = vld [vmem:[%s19192_s3 + $0xa0c] ss:$20 sps:$4 sm:$0xff]  }
 0x484   :  { %9987 = vmatpush2.bf16.msra.mxu1 %v14397_v19  ;;  %v9709_v33 = vpop.f32.mrf.mxu0  ;;  %10085 = vmatprep.subr.bf16.mxu0 %v14408_v21  ;;  %v14454_v19 = vld [vmem:[%s19192_s3 + $0xeb8] ss:$20 sps:$4 sm:$0xff]   ;;  %v14451_v21 = vld [vmem:[%s19192_s3 + $0xa30] ss:$20 sps:$4 sm:$0xff]  }
 0x485   :  { %v18488_v54 = vadd.f32 %v9748_v47, %v9708_v25  ;;  %v9710_v42 = vadd.f32 %v9709_v33, %v18292_v3  ;;  %v9750_v2 = vpop.f32.mrf.mxu1  ;;  %9988 = vmatprep.subr.bf16.mxu1 %v14405_v24  ;;  %v14409_v3 = vld [vmem:[%s19192_s3 + $0x648] ss:$20 sps:$4 sm:$0xff]   ;;  %v14460_v25 = vld [vmem:[%s19192_s3 + $0xe90] ss:$20 sps:$4 sm:$0xff]  }
 0x486   :  { %v9711_v4 = vpop.f32.mrf.mxu0  ;;  %v14462_v24 = vld [vmem:[%s19192_s3 + $0xe94] ss:$20 sps:$4 sm:$0xff]   ;;  %v14465_v33 = vld [vmem:[%s19192_s3 + $0xc64] ss:$20 sps:$4 sm:$0xff]  }
 0x487   :  { %v18494_v28 = vadd.f32 %v9750_v2, %v9710_v42  ;;  %v9752_v38 = vpop.f32.mrf.mxu1  ;;  %10086 = vmatpush1.bf16.msra.mxu0 %v14406_v44  ;;  %v14457_v47 = vld [vmem:[%s19192_s3 + $0xa08] ss:$20 sps:$4 sm:$0xff]   ;;  %v14468_v44 = vld [vmem:[%s19192_s3 + $0xe6c] ss:$20 sps:$4 sm:$0xff]   ;;  %v14474_v42 = vld [vmem:[%s19192_s3 + $0xe44] ss:$20 sps:$4 sm:$0xff]  }
 0x488   :  { %9989 = vmatpush2.bf16.msra.mxu1 %v14403_v50  ;;  %v9712_v46 = vpop.f32.mrf.mxu0  ;;  %10087 = vmatprep.subr.bf16.mxu0 %v14414_v39  ;;  %v14466_v50 = vld [vmem:[%s19192_s3 + $0xe68] ss:$20 sps:$4 sm:$0xff]   ;;  %v14463_v39 = vld [vmem:[%s19192_s3 + $0xc60] ss:$20 sps:$4 sm:$0xff]   ;;  %v14469_v4 = vld [vmem:[%s19192_s3 + $0xc38] ss:$20 sps:$4 sm:$0xff]  }
 0x489   :  { %v9753_v18 = vpop.f32.mrf.mxu1  ;;  %9990 = vmatprep.subr.bf16.mxu1 %v14411_v31  ;;  %v14471_v2 = vld [vmem:[%s19192_s3 + $0xc3c] ss:$20 sps:$4 sm:$0xff]   ;;  %v14472_v31 = vld [vmem:[%s19192_s3 + $0xe40] ss:$20 sps:$4 sm:$0xff]   ;;  %v14478_v46 = vld [vmem:[%s19192_s3 + $0xe18] ss:$20 sps:$4 sm:$0xff]  }
 0x48a   :  { %v14480_v38 = vld [vmem:[%s19192_s3 + $0xe1c] ss:$20 sps:$4 sm:$0xff]   ;;  %v14483_v18 = vld [vmem:[%s19192_s3 + $0xbec] ss:$20 sps:$4 sm:$0xff]  }
 0x48b   :  { %10088 = vmatpush1.bf16.msra.mxu0 %v14412_v45  ;;  %v14477_v45 = vld [vmem:[%s19192_s3 + $0xc14] ss:$20 sps:$4 sm:$0xff]  }
 0x48c   :  { %9991 = vmatpush2.bf16.msra.mxu1 %v14409_v3  ;;  %10089 = vmatprep.subr.bf16.mxu0 %v14420_v35  ;;  %v14475_v3 = vld [vmem:[%s19192_s3 + $0xc10] ss:$20 sps:$4 sm:$0xff]   ;;  %v14486_v35 = vld [vmem:[%s19192_s3 + $0xdf4] ss:$20 sps:$4 sm:$0xff]  }
 0x48d   :  { %10042 = vmatprep.subr.bf16.mxu1 %v14417_v48  ;;  %v14481_v48 = vld [vmem:[%s19192_s3 + $0xbe8] ss:$20 sps:$4 sm:$0xff]  }
 0x48f   :  { %9993 = vmatmul.mubr.bf16.vlgmr.msra.gmra.mxu1 %v17840_v27  ;;  %10090 = vmatpush1.bf16.msra.mxu0 %v14418_v53  ;;  %v14484_v53 = vld [vmem:[%s19192_s3 + $0xdf0] ss:$20 sps:$4 sm:$0xff]  }
 0x490   :  { %10043 = vmatpush1.bf16.msra.mxu1 %v14415_v16  ;;  %10074 = vmatprep.mubr.bf16.mxu1 %v17847_v29  ;;  %v14489_v16 = vld [vmem:[%s19192_s3 + $0xbc4] ss:$20 sps:$4 sm:$0xff]  }
 0x491   :  { %10044 = vmatprep.subr.bf16.mxu1 %v14423_v56  ;;  %10091 = vmatprep.subr.bf16.mxu0 %v14426_v40  ;;  %v14492_v56 = vld [vmem:[%s19192_s3 + $0xdcc] ss:$20 sps:$4 sm:$0xff]   ;;  %v14490_v40 = vld [vmem:[%s19192_s3 + $0xdc8] ss:$20 sps:$4 sm:$0xff]  }
 0x493   :  { %10092 = vmatpush1.bf16.msra.mxu0 %v14424_v17  ;;  %v14487_v17 = vld [vmem:[%s19192_s3 + $0xbc0] ss:$20 sps:$4 sm:$0xff]  }
 0x494   :  { %10045 = vmatpush1.bf16.msra.mxu1 %v14421_v12  ;;  %10093 = vmatprep.subr.bf16.mxu0 %v14432_v11  ;;  %v14495_v12 = vld [vmem:[%s19192_s3 + $0xb9c] ss:$20 sps:$4 sm:$0xff]  }
 0x495   :  { %10046 = vmatprep.subr.bf16.mxu1 %v14429_v61  ;;  %v14496_v11 = vld [vmem:[%s19192_s3 + $0x268] ss:$20 sps:$4 sm:$0xff]  }
 0x496   :  { %v14497_v61 = vld [vmem:[%s19192_s3 + $0x128] ss:$20 sps:$4 sm:$0xff]  }
 0x497   :  { %10094 = vmatpush1.bf16.msra.mxu0 %v14430_v62  ;;  %v14493_v62 = vld [vmem:[%s19192_s3 + $0xb98] ss:$20 sps:$4 sm:$0xff]  }
 0x498   :  { %10047 = vmatpush1.bf16.msra.mxu1 %v14427_v57  ;;  %10095 = vmatprep.subr.bf16.mxu0 %v14438_v5  ;;  %v14501_v57 = vld [vmem:[%s19192_s3 + $0x240] ss:$20 sps:$4 sm:$0xff]  }
 0x499   :  { %10048 = vmatprep.subr.bf16.mxu1 %v14435_v22  ;;  %v14500_v5 = vld [vmem:[%s19192_s3 + $0xb74] ss:$20 sps:$4 sm:$0xff]  }
 0x49b   :  { %10096 = vmatpush1.bf16.msra.mxu0 %v14436_v52  ;;  %v14498_v52 = vld [vmem:[%s19192_s3 + $0xb70] ss:$20 sps:$4 sm:$0xff]  }
 0x49c   :  { %10049 = vmatpush1.bf16.msra.mxu1 %v14433_v8  ;;  %10097 = vmatprep.subr.bf16.mxu0 %v14444_v6  ;;  %v14502_v8 = vld [vmem:[%s19192_s3 + $0x100] ss:$20 sps:$4 sm:$0xff]   ;;  %v14506_v6 = vld [vmem:[%s19192_s3 + $0x218] ss:$20 sps:$4 sm:$0xff]  }
 0x49d   :  { %10050 = vmatprep.subr.bf16.mxu1 %v14441_v7 }
 0x49f   :  { %10098 = vmatpush1.bf16.msra.mxu0 %v14442_v9 }
 0x4a0   :  { %10051 = vmatpush1.bf16.msra.mxu1 %v14439_v23  ;;  %10099 = vmatprep.subr.bf16.mxu0 %v14450_v10  ;;  %v14505_v23 = vld [vmem:[%s19192_s3 + $0xb4c] ss:$20 sps:$4 sm:$0xff]  }
 0x4a1   :  { %10052 = vmatprep.subr.bf16.mxu1 %v14447_v36 }
 0x4a3   :  { %10100 = vmatpush2.bf16.msra.mxu0 %v14448_v37 }
 0x4a4   :  { %10053 = vmatpush1.bf16.msra.mxu1 %v14445_v0  ;;  %10101 = vmatprep.subr.bf16.mxu0 %v14456_v13 }
 0x4a5   :  { %10054 = vmatprep.subr.bf16.mxu1 %v14453_v34 }
 0x4a7   :  { %10102 = vmatpush2.bf16.msra.mxu0 %v14454_v19 }
 0x4a8   :  { %10055 = vmatpush1.bf16.msra.mxu1 %v14451_v21  ;;  %10103 = vmatprep.subr.bf16.mxu0 %v14462_v24  ;;  %v14510_v21 = vld [vmem:[%s19192_s3 + $0xf34] ss:$20 sps:$4 sm:$0xff]   ;;  %v14511_v24 = vld [vmem:[%s19192_s3 + $0x1f0] ss:$20 sps:$4 sm:$0xff]  }
 0x4a9   :  { %10056 = vmatprep.subr.bf16.mxu1 %v14459_v58 }
 0x4ab   :  { %10104 = vmatpush2.bf16.msra.mxu0 %v14460_v25  ;;  %v14512_v25 = vld [vmem:[%s19192_s3 + $0xb0] ss:$20 sps:$4 sm:$0xff]  }
 0x4ac   :  { %10057 = vmatpush1.bf16.msra.mxu1 %v14457_v47  ;;  %10105 = vmatprep.subr.bf16.mxu0 %v14468_v44  ;;  %v14508_v47 = vld [vmem:[%s19192_s3 + $0xf30] ss:$20 sps:$4 sm:$0xff]   ;;  %v14516_v44 = vld [vmem:[%s19192_s3 + $0x1c8] ss:$20 sps:$4 sm:$0xff]  }
 0x4ad   :  { %10058 = vmatprep.subr.bf16.mxu1 %v14465_v33  ;;  %v14515_v33 = vld [vmem:[%s19192_s3 + $0xf0c] ss:$20 sps:$4 sm:$0xff]  }
 0x4af   :  { %10106 = vmatpush2.bf16.msra.mxu0 %v14466_v50  ;;  %v14517_v50 = vld [vmem:[%s19192_s3 + $0x88] ss:$20 sps:$4 sm:$0xff]  }
 0x4b0   :  { %10059 = vmatpush2.bf16.msra.mxu1 %v14463_v39  ;;  %10107 = vmatprep.subr.bf16.mxu0 %v14474_v42  ;;  %v14513_v39 = vld [vmem:[%s19192_s3 + $0xf08] ss:$20 sps:$4 sm:$0xff]   ;;  %v14518_v42 = vld [vmem:[%s19192_s3 + $0x1a0] ss:$20 sps:$4 sm:$0xff]  }
 0x4b1   :  { %10060 = vmatprep.subr.bf16.mxu1 %v14471_v2 }
 0x4b3   :  { %10108 = vmatpush2.bf16.msra.mxu0 %v14472_v31  ;;  %v14519_v31 = vld [vmem:[%s19192_s3 + $0x4e8] ss:$20 sps:$4 sm:$0xff]  }
 0x4b4   :  { %10061 = vmatpush2.bf16.msra.mxu1 %v14469_v4  ;;  %10109 = vmatprep.subr.bf16.mxu0 %v14480_v38 }
 0x4b5   :  { %10062 = vmatprep.subr.bf16.mxu1 %v14477_v45 }
 0x4b7   :  { %10110 = vmatpush2.bf16.msra.mxu0 %v14478_v46 }
 0x4b8   :  { %10063 = vmatpush2.bf16.msra.mxu1 %v14475_v3  ;;  %10111 = vmatprep.subr.bf16.mxu0 %v14486_v35  ;;  %v14520_v3 = vld [vmem:[%s19192_s3 + $0x60] ss:$20 sps:$4 sm:$0xff]   ;;  %v14521_v35 = vld [vmem:[%s19192_s3 + $0x3a8] ss:$20 sps:$4 sm:$0xff]  }
 0x4b9   :  { %10064 = vmatprep.subr.bf16.mxu1 %v14483_v18 }
 0x4bb   :  { %10112 = vmatpush2.bf16.msra.mxu0 %v14484_v53  ;;  %v14524_v53 = vld [vmem:[%s19192_s3 + $0x38] ss:$20 sps:$4 sm:$0xff]  }
 0x4bc   :  { %10065 = vmatpush2.bf16.msra.mxu1 %v14481_v48  ;;  %10113 = vmatprep.subr.bf16.mxu0 %v14492_v56  ;;  %v14523_v48 = vld [vmem:[%s19192_s3 + $0x4c0] ss:$20 sps:$4 sm:$0xff]   ;;  %v14526_v56 = vld [vmem:[%s19192_s3 + $0x150] ss:$20 sps:$4 sm:$0xff]  }
 0x4bd   :  { %10066 = vmatprep.subr.bf16.mxu1 %v14489_v16  ;;  %v14525_v16 = vld [vmem:[%s19192_s3 + $0x380] ss:$20 sps:$4 sm:$0xff]  }
 0x4bf   :  { %10114 = vmatpush2.bf16.msra.mxu0 %v14490_v40  ;;  %v14527_v40 = vld [vmem:[%s19192_s3 + $0x498] ss:$20 sps:$4 sm:$0xff]  }
 0x4c0   :  { %10067 = vmatpush2.bf16.msra.mxu1 %v14487_v17  ;;  %12460 = vmatprep.subr.bf16.mxu0 %v14496_v11  ;;  %v14528_v17 = vld [vmem:[%s19192_s3 + $0x10] ss:$20 sps:$4 sm:$0xff]  }
 0x4c1   :  { %10068 = vmatprep.subr.bf16.mxu1 %v14495_v12  ;;  %v14531_v12 = vld [vmem:[%s19192_s3 + $0x768] ss:$20 sps:$4 sm:$0xff]   ;;  %v14530_v11 = vld [vmem:[%s19192_s3 + $0x470] ss:$20 sps:$4 sm:$0xff]  }
 0x4c2   :  { %v9789_v22 = vpop.f32.mrf.mxu0  ;;  %10116 = vmatmul.mubr.bf16.vlgmr.msra.gmra.mxu0 %v18066_v60 }
 0x4c3   :  { %v9790_v7 = vadd.f32 %v9789_v22, %v18488_v54  ;;  %v9830_v9 = vpop.f32.mrf.mxu1  ;;  %12461 = vmatpush3.bf16.msra.mxu0 %v14497_v61  ;;  %10197 = vmatprep.mubr.bf16.mxu0 %v17407_v55  ;;  %v14503_v54 = vld [vmem:[%s19192_s3 + $0xb48] ss:$20 sps:$4 sm:$0xff]   ;;  %v14507_v55 = vld [vmem:[%s19192_s3 + $0xd8] ss:$20 sps:$4 sm:$0xff]   ;;  %v14537_v22 = vld [vmem:[%s19192_s3 + $0x600] ss:$20 sps:$4 sm:$0xff]  }
 0x4c4   :  { %10069 = vmatpush2.bf16.msra.mxu1 %v14493_v62  ;;  %v9791_v10 = vpop.f32.mrf.mxu0  ;;  %12462 = vmatprep.subr.bf16.mxu0 %v14501_v57  ;;  %v14533_v61 = vld [vmem:[%s19192_s3 + $0x628] ss:$20 sps:$4 sm:$0xff]   ;;  %v14532_v62 = vld [vmem:[%s19192_s3 + $0x330] ss:$20 sps:$4 sm:$0xff]   ;;  %v14535_v57 = vld [vmem:[%s19192_s3 + $0x740] ss:$20 sps:$4 sm:$0xff]  }
 0x4c5   :  { %v9831_v36 = vadd.f32 %v9830_v9, %v9790_v7  ;;  %v9792_v37 = vadd.f32 %v9791_v10, %v18494_v28  ;;  %v9832_v0 = vpop.f32.mrf.mxu1  ;;  %10070 = vmatprep.subr.bf16.mxu1 %v14500_v5  ;;  %v14534_v5 = vld [vmem:[%s19192_s3 + $0x448] ss:$20 sps:$4 sm:$0xff]   ;;  %v14543_v7 = vld [vmem:[%s19192_s3 + $0x6f0] ss:$20 sps:$4 sm:$0xff]   ;;  %v14542_v9 = vld [vmem:[%s19192_s3 + $0x3f8] ss:$20 sps:$4 sm:$0xff]  }
 0x4c6   :  { %v9793_v13 = vpop.f32.mrf.mxu0  ;;  %v14544_v10 = vld [vmem:[%s19192_s3 + $0x2b8] ss:$20 sps:$4 sm:$0xff]  }
 0x4c7   :  { %v9833_v34 = vadd.f32 %v9832_v0, %v9792_v37  ;;  %v9834_v19 = vpop.f32.mrf.mxu1  ;;  %12463 = vmatpush3.bf16.msra.mxu0 %v14502_v8  ;;  %v14539_v8 = vld [vmem:[%s19192_s3 + $0x718] ss:$20 sps:$4 sm:$0xff]   ;;  %v14546_v37 = vld [vmem:[%s19192_s3 + $0x3d0] ss:$20 sps:$4 sm:$0xff]   ;;  %v14549_v0 = vld [vmem:[%s19192_s3 + $0x588] ss:$20 sps:$4 sm:$0xff]  }
 0x4c8   :  { %10071 = vmatpush2.bf16.msra.mxu1 %v14498_v52  ;;  %v9794_v28 = vpop.f32.mrf.mxu0  ;;  %12464 = vmatprep.subr.bf16.mxu0 %v14506_v6  ;;  %v14536_v52 = vld [vmem:[%s19192_s3 + $0x308] ss:$20 sps:$4 sm:$0xff]   ;;  %v14540_v6 = vld [vmem:[%s19192_s3 + $0x2e0] ss:$20 sps:$4 sm:$0xff]   ;;  %v14548_v13 = vld [vmem:[%s19192_s3 + $0x290] ss:$20 sps:$4 sm:$0xff]  }
 0x4c9   :  { %v9835_v58 = vpop.f32.mrf.mxu1  ;;  %10072 = vmatprep.subr.bf16.mxu1 %v14505_v23  ;;  %v14545_v23 = vld [vmem:[%s19192_s3 + $0x5b0] ss:$20 sps:$4 sm:$0xff]   ;;  %v14553_v19 = vld [vmem:[%s19192_s3 + $0x8a8] ss:$20 sps:$4 sm:$0xff]   ;;  %v14555_v28 = vld [vmem:[%s19192_s3 + $0x9c0] ss:$20 sps:$4 sm:$0xff]  }
 0x4ca   :  { %v14557_v58 = vld [vmem:[%s19192_s3 + $0x880] ss:$20 sps:$4 sm:$0xff]  }
 0x4cb   :  { %12465 = vmatpush3.bf16.msra.mxu0 %v14507_v55  ;;  %v14551_v55 = vld [vmem:[%s19192_s3 + $0x9e8] ss:$20 sps:$4 sm:$0xff]  }
 0x4cc   :  { %10073 = vmatpush2.bf16.msra.mxu1 %v14503_v54  ;;  %12466 = vmatprep.subr.bf16.mxu0 %v14511_v24  ;;  %v14550_v54 = vld [vmem:[%s19192_s3 + $0x6a0] ss:$20 sps:$4 sm:$0xff]   ;;  %v14556_v24 = vld [vmem:[%s19192_s3 + $0x538] ss:$20 sps:$4 sm:$0xff]  }
 0x4cd   :  { %10136 = vmatprep.subr.bf16.mxu1 %v14510_v21  ;;  %v14554_v21 = vld [vmem:[%s19192_s3 + $0x678] ss:$20 sps:$4 sm:$0xff]  }
 0x4cf   :  { %10075 = vmatmul.mubr.bf16.vlgmr.msra.gmra.mxu1 %v18061_v15  ;;  %v9871_v2 = vpop.f32.mrf.mxu1  ;;  %12467 = vmatpush3.bf16.msra.mxu0 %v14512_v25  ;;  %v14558_v25 = vld [vmem:[%s19192_s3 + $0x650] ss:$20 sps:$4 sm:$0xff]  }
 0x4d0   :  { %v18731_v4 = vadd.f32 %v9871_v2, %v9831_v36  ;;  %10137 = vmatpush1.bf16.msra.mxu1 %v14508_v47  ;;  %12468 = vmatprep.subr.bf16.mxu0 %v14516_v44  ;;  %v14547_v36 = vld [vmem:[%s19192_s3 + $0x6c8] ss:$20 sps:$4 sm:$0xff]   ;;  %v14560_v47 = vld [vmem:[%s19192_s3 + $0x510] ss:$20 sps:$4 sm:$0xff]  }
 0x4d1   :  { %v9873_v38 = vpop.f32.mrf.mxu1  ;;  %10138 = vmatprep.subr.bf16.mxu1 %v14515_v33  ;;  %10156 = vmatprep.mubr.bf16.mxu1 %v14655_v30  ;;  %v14522_v30 = vld [vmem:[%s19192_s3 + $0x178] ss:$20 sps:$4 sm:$0xff]   ;;  %v14563_v44 = vld [vmem:[%s19192_s3 + $0xc68] ss:$20 sps:$4 sm:$0xff]   ;;  %v14562_v33 = vld [vmem:[%s19192_s3 + $0x970] ss:$20 sps:$4 sm:$0xff]  }
 0x4d2   :  { %v18734_v45 = vadd.f32 %v9873_v38, %v9833_v34  ;;  %v14552_v34 = vld [vmem:[%s19192_s3 + $0x560] ss:$20 sps:$4 sm:$0xff]   ;;  %v14566_v2 = vld [vmem:[%s19192_s3 + $0x948] ss:$20 sps:$4 sm:$0xff]  }
 0x4d3   :  { %v9875_v46 = vpop.f32.mrf.mxu1  ;;  %12469 = vmatpush3.bf16.msra.mxu0 %v14517_v50  ;;  %v14565_v50 = vld [vmem:[%s19192_s3 + $0xb28] ss:$20 sps:$4 sm:$0xff]   ;;  %v14569_v38 = vld [vmem:[%s19192_s3 + $0xb00] ss:$20 sps:$4 sm:$0xff]  }
 0x4d4   :  { %10139 = vmatpush1.bf16.msra.mxu1 %v14513_v39  ;;  %12470 = vmatprep.subr.bf16.mxu0 %v14518_v42  ;;  %v14564_v39 = vld [vmem:[%s19192_s3 + $0x830] ss:$20 sps:$4 sm:$0xff]   ;;  %v14567_v42 = vld [vmem:[%s19192_s3 + $0xc40] ss:$20 sps:$4 sm:$0xff]  }
 0x4d5   :  { %v9876_v18 = vpop.f32.mrf.mxu1  ;;  %12482 = vmatprep.subr.bf16.mxu1 %v14519_v31 }
 0x4d6   :  { %v14573_v18 = vld [vmem:[%s19192_s3 + $0xad8] ss:$20 sps:$4 sm:$0xff]  }
 0x4d7   :  { %12323 = vmatmul.mubr.msk.bf16.vlgmr.msra.gmra.mxu1 %vm9587_vm0, %v18104_v59  ;;  %12471 = vmatpush3.bf16.msra.mxu0 %v14520_v3  ;;  %v14568_v3 = vld [vmem:[%s19192_s3 + $0x808] ss:$20 sps:$4 sm:$0xff]  }
 0x4d8   :  { %12483 = vmatpush3.bf16.msra.mxu1 %v14521_v35  ;;  %10237 = vmatprep.mubr.bf16.mxu1 %v17409_v43  ;;  %v14529_v43 = vld [vmem:[%s19192_s3 + $0x358] ss:$20 sps:$4 sm:$0xff]  }
 0x4d9   :  { %12472 = vmatprep.subr.bf16.mxu0 %v14522_v30  ;;  %12484 = vmatprep.subr.bf16.mxu1 %v14523_v48  ;;  %v14571_v35 = vld [vmem:[%s19192_s3 + $0xc18] ss:$20 sps:$4 sm:$0xff]   ;;  %v14572_v48 = vld [vmem:[%s19192_s3 + $0x7e0] ss:$20 sps:$4 sm:$0xff]  }
 0x4db   :  { %12473 = vmatpush3.bf16.msra.mxu0 %v14524_v53  ;;  %v14575_v53 = vld [vmem:[%s19192_s3 + $0xbf0] ss:$20 sps:$4 sm:$0xff]  }
 0x4dc   :  { %12485 = vmatpush3.bf16.msra.mxu1 %v14525_v16  ;;  %12474 = vmatprep.subr.bf16.mxu0 %v14526_v56  ;;  %v14574_v16 = vld [vmem:[%s19192_s3 + $0x8f8] ss:$20 sps:$4 sm:$0xff]   ;;  %v14577_v56 = vld [vmem:[%s19192_s3 + $0xab0] ss:$20 sps:$4 sm:$0xff]  }
 0x4dd   :  { %12486 = vmatprep.subr.bf16.mxu1 %v14527_v40  ;;  %v18919_v40 = vld [vmem:[%s19193_s4] sm:$0x1f] }
 0x4df   :  { %12475 = vmatpush3.bf16.msra.mxu0 %v14528_v17  ;;  %v7025_v17 = vrot.slane %v18919_v40, %v15946_v32  ;;  %v14581_v32 = vld [vmem:[%s19192_s3 + $0xa88] ss:$20 sps:$4 sm:$0xff]  }
 0x4e0   :  { %12487 = vmatpush3.bf16.msra.mxu1 %v14529_v43  ;;  %12504 = vmatprep.subr.bf16.mxu0 %v14531_v12  ;;  %v14576_v43 = vld [vmem:[%s19192_s3 + $0x7b8] ss:$20 sps:$4 sm:$0xff]   ;;  %v14579_v12 = vld [vmem:[%s19192_s3 + $0xbc8] ss:$20 sps:$4 sm:$0xff]  }
 0x4e1   :  { %12488 = vmatprep.subr.bf16.mxu1 %v14530_v11  ;;  %v14578_v11 = vld [vmem:[%s19192_s3 + $0x8d0] ss:$20 sps:$4 sm:$0xff]  }
 0x4e2   :  { %10198 = vmatmul.mubr.bf16.vlgmr.msra.gmra.mxu0 %v17621_v63  ;;  %v14538_v63 = vld [vmem:[%s19192_s3 + $0x420] ss:$20 sps:$4 sm:$0xff]  }
 0x4e3   :  { %12505 = vmatpush3.bf16.msra.mxu0 %v14533_v61  ;;  %10277 = vmatprep.mubr.bf16.mxu0 %v17631_v20  ;;  %v14541_v20 = vld [vmem:[%s19192_s3 + $0x5d8] ss:$20 sps:$4 sm:$0xff]   ;;  %v7029_v61 = vrot.slane %v18919_v40, %v15961_v41  ;;  %v14583_v41 = vld [vmem:[%s19192_s3 + $0xee8] ss:$20 sps:$4 sm:$0xff]  }
 0x4e4   :  { %12489 = vmatpush3.bf16.msra.mxu1 %v14532_v62  ;;  %12506 = vmatprep.subr.bf16.mxu0 %v14535_v57 }
 0x4e5   :  { %12490 = vmatprep.subr.bf16.mxu1 %v14534_v5  ;;  %v14580_v5 = vld [vmem:[%s19192_s3 + $0x790] ss:$20 sps:$4 sm:$0xff]  }
 0x4e7   :  { %12507 = vmatpush3.bf16.msra.mxu0 %v14537_v22  ;;  %v14582_v22 = vld [vmem:[%s19192_s3 + $0xba0] ss:$20 sps:$4 sm:$0xff]  }
 0x4e8   :  { %12491 = vmatpush3.bf16.msra.mxu1 %v14536_v52  ;;  %12508 = vmatprep.subr.bf16.mxu0 %v14539_v8 }
 0x4e9   :  { %12492 = vmatprep.subr.bf16.mxu1 %v14538_v63 }
 0x4eb   :  { %12509 = vmatpush3.bf16.msra.mxu0 %v14541_v20 }
 0x4ec   :  { %12493 = vmatpush3.bf16.msra.mxu1 %v14540_v6  ;;  %12510 = vmatprep.subr.bf16.mxu0 %v14543_v7  ;;  %v14584_v6 = vld [vmem:[%s19192_s3 + $0xa60] ss:$20 sps:$4 sm:$0xff]   ;;  %v14585_v7 = vld [vmem:[%s19192_s3 + $0xda8] ss:$20 sps:$4 sm:$0xff]  }
 0x4ed   :  { %12494 = vmatprep.subr.bf16.mxu1 %v14542_v9 }
 0x4ef   :  { %12511 = vmatpush3.bf16.msra.mxu0 %v14545_v23 }
 0x4f0   :  { %12495 = vmatpush3.bf16.msra.mxu1 %v14544_v10  ;;  %12512 = vmatprep.subr.bf16.mxu0 %v14547_v36  ;;  %v14586_v10 = vld [vmem:[%s19192_s3 + $0xb78] ss:$20 sps:$4 sm:$0xff]   ;;  %v14587_v36 = vld [vmem:[%s19192_s3 + $0xec0] ss:$20 sps:$4 sm:$0xff]  }
 0x4f1   :  { %12496 = vmatprep.subr.bf16.mxu1 %v14546_v37  ;;  %v14588_v37 = vld [vmem:[%s19192_s3 + $0xa38] ss:$20 sps:$4 sm:$0xff]  }
 0x4f3   :  { %12513 = vmatpush3.bf16.msra.mxu0 %v14549_v0  ;;  %v14589_v0 = vld [vmem:[%s19192_s3 + $0xd80] ss:$20 sps:$4 sm:$0xff]  }
 0x4f4   :  { %12497 = vmatpush3.bf16.msra.mxu1 %v14548_v13  ;;  %12514 = vmatprep.subr.bf16.mxu0 %v14550_v54  ;;  %v14590_v13 = vld [vmem:[%s19192_s3 + $0xb50] ss:$20 sps:$4 sm:$0xff]  }
 0x4f5   :  { %12526 = vmatprep.subr.bf16.mxu1 %v14551_v55  ;;  %v14592_v54 = vld [vmem:[%s19192_s3 + $0xa10] ss:$20 sps:$4 sm:$0xff]  }
 0x4f6   :  { %v14594_v55 = vld [vmem:[%s19192_s3 + $0xe70] ss:$20 sps:$4 sm:$0xff]  }
 0x4f7   :  { %10238 = vmatmul.mubr.bf16.vlgmr.msra.gmra.mxu1 %v17626_v14  ;;  %12515 = vmatpush3.bf16.msra.mxu0 %v14552_v34  ;;  %v14559_v14 = vld [vmem:[%s19192_s3 + $0x998] ss:$20 sps:$4 sm:$0xff]  }
 0x4f8   :  { %12527 = vmatpush3.bf16.msra.mxu1 %v14553_v19  ;;  %10317 = vmatprep.mubr.bf16.mxu1 %v17640_v26  ;;  %v14561_v26 = vld [vmem:[%s19192_s3 + $0x858] ss:$20 sps:$4 sm:$0xff]   ;;  %v14656_v19 = vmov 0.0  }
 0x4f9   :  { %12516 = vmatprep.subr.bf16.mxu0 %v14554_v21  ;;  %12528 = vmatprep.subr.bf16.mxu1 %v14555_v28  ;;  %v14596_v34 = vld [vmem:[%s19192_s3 + $0xf38] ss:$20 sps:$4 sm:$0xff]   ;;  %v14595_v21 = vld [vmem:[%s19192_s3 + $0xd30] ss:$20 sps:$4 sm:$0xff]   ;;  %v14597_v28 = vld [vmem:[%s19192_s3 + $0xe48] ss:$20 sps:$4 sm:$0xff]  }
 0x4fb   :  { %12517 = vmatpush3.bf16.msra.mxu0 %v14556_v24  ;;  %v14599_v24 = vld [vmem:[%s19192_s3 + $0xf10] ss:$20 sps:$4 sm:$0xff]  }
 0x4fc   :  { %12529 = vmatpush3.bf16.msra.mxu1 %v14557_v58  ;;  %12518 = vmatprep.subr.bf16.mxu0 %v14558_v25  ;;  %v14598_v58 = vld [vmem:[%s19192_s3 + $0xd08] ss:$20 sps:$4 sm:$0xff]   ;;  %v14600_v25 = vld [vmem:[%s19192_s3 + $0xe20] ss:$20 sps:$4 sm:$0xff]  }
 0x4fd   :  { %12530 = vmatprep.subr.bf16.mxu1 %v14559_v14  ;;  %v14623_v14 = vld [vmem:[%s19194_s5 + $0xb8] sm:$0xff]  }
 0x4ff   :  { %12519 = vmatpush3.bf16.msra.mxu0 %v14560_v47  ;;  %v14601_v47 = vld [vmem:[%s19192_s3 + $0xce0] ss:$20 sps:$4 sm:$0xff]  }
 0x500   :  { %12531 = vmatpush3.bf16.msra.mxu1 %v14561_v26  ;;  %12548 = vmatprep.subr.bf16.mxu0 %v14563_v44  ;;  %v14624_v26 = vld [vmem:[%s19194_s5 + $0xf0] sm:$0xff]   ;;  %v14602_v44 = vld [vmem:[%s19192_s3 + $0xdf8] ss:$20 sps:$4 sm:$0xff]  }
 0x501   :  { %12532 = vmatprep.subr.bf16.mxu1 %v14562_v33  ;;  %v14625_v33 = vld [vmem:[%s19194_s5 + $0xb0] sm:$0xff]  }
 0x502   :  { %v9953_v31 = vpop.f32.mrf.mxu0  ;;  %10278 = vmatmul.mubr.bf16.vlgmr.msra.gmra.mxu0 %v17840_v27  ;;  %v14570_v27 = vld [vmem:[%s19192_s3 + $0x920] ss:$20 sps:$4 sm:$0xff]  }
 0x503   :  { %12549 = vmatpush3.bf16.msra.mxu0 %v14565_v50  ;;  %10357 = vmatprep.mubr.bf16.mxu0 %v17847_v29  ;;  %v14603_v50 = vld [vmem:[%s19192_s3 + $0xcb8] ss:$20 sps:$4 sm:$0xff]  }
 0x504   :  { %12533 = vmatpush3.bf16.msra.mxu1 %v14564_v39  ;;  %v9955_v46 = vpop.f32.mrf.mxu0  ;;  %12550 = vmatprep.subr.bf16.mxu0 %v14567_v42  ;;  %v14626_v39 = vld [vmem:[%s19194_s5 + $0xe8] sm:$0xff]  }
 0x505   :  { %12534 = vmatprep.subr.bf16.mxu1 %v14566_v2  ;;  %v14627_v42 = vld [vmem:[%s19194_s5 + $0xa8] sm:$0xff]   ;;  %v14605_v2 = vld [vmem:[%s19192_s3 + $0xc90] ss:$20 sps:$4 sm:$0xff]  }
 0x506   :  { %v9957_v29 = vpop.f32.mrf.mxu0 }
 0x507   :  { %12551 = vmatpush3.bf16.msra.mxu0 %v14569_v38  ;;  %v14606_v38 = vld [vmem:[%s19194_s5 + $0x78] sm:$0xff]  }
 0x508   :  { %12535 = vmatpush3.bf16.msra.mxu1 %v14568_v3  ;;  %v9958_v30 = vpop.f32.mrf.mxu0  ;;  %12552 = vmatprep.subr.bf16.mxu0 %v14571_v35  ;;  %v14629_v3 = vld [vmem:[%s19194_s5 + $0xa0] sm:$0xff]   ;;  %v14607_v35 = vld [vmem:[%s19194_s5 + $0x38] sm:$0xff]  }
 0x509   :  { %12536 = vmatprep.subr.bf16.mxu1 %v14570_v27  ;;  %v14608_v27 = vld [vmem:[%s19194_s5 + $0x70] sm:$0xff]  }
 0x50a   :  { %v14609_v30 = vld [vmem:[%s19194_s5 + $0x30] sm:$0xff]  }
 0x50b   :  { %12553 = vmatpush3.bf16.msra.mxu0 %v14573_v18  ;;  %v14631_v18 = vld [vmem:[%s19194_s5 + $0x98] sm:$0xff]  }
 0x50c   :  { %12537 = vmatpush3.bf16.msra.mxu1 %v14572_v48  ;;  %12554 = vmatprep.subr.bf16.mxu0 %v14575_v53  ;;  %v14632_v48 = vld [vmem:[%s19194_s5 + $0xd0] sm:$0xff]  }
 0x50d   :  { %12538 = vmatprep.subr.bf16.mxu1 %v14574_v16  ;;  %v14633_v53 = vld [vmem:[%s19194_s5 + $0x90] sm:$0xff]   ;;  %v14611_v16 = vld [vmem:[%s19194_s5 + $0x28] sm:$0xff]  }
 0x50f   :  { %v9912_v62 = vpop.f32.mrf.mxu1  ;;  %12555 = vmatpush3.bf16.msra.mxu0 %v14577_v56  ;;  %v14634_v56 = vld [vmem:[%s19194_s5 + $0xc8] sm:$0xff]  }
 0x510   :  { %v9913_v57 = vadd.f32 %v9912_v62, %v7025_v17  ;;  %12539 = vmatpush3.bf16.msra.mxu1 %v14576_v43  ;;  %12556 = vmatprep.subr.bf16.mxu0 %v14579_v12  ;;  %v14612_v17 = vld [vmem:[%s19194_s5 + $0x60] sm:$0xff]   ;;  %v14635_v43 = vld [vmem:[%s19194_s5 + $0x88] sm:$0xff]  }
 0x511   :  { %v9914_v52 = vpop.f32.mrf.mxu1  ;;  %12540 = vmatprep.subr.bf16.mxu1 %v14578_v11  ;;  %v14613_v12 = vld [vmem:[%s19194_s5 + $0x20] sm:$0xff]  }
 0x512   :  { %v9915_v8 = vadd.f32 %v9914_v52, %v7029_v61  ;;  %v18946_v63 = vadd.f32 %v9953_v31, %v9913_v57  ;;  %v14628_v31 = vld [vmem:[%s19194_s5 + $0xe0] sm:$0xff]   ;;  %v14614_v61 = vld [vmem:[%s19194_s5 + $0x58] sm:$0xff]  }
 0x513   :  { %v9916_v20 = vpop.f32.mrf.mxu1  ;;  %12557 = vmatpush3.bf16.msra.mxu0 %v14581_v32  ;;  %v14636_v11 = vld [vmem:[%s19194_s5 + $0xc0] sm:$0xff]  }
 0x514   :  { %12541 = vmatpush3.bf16.msra.mxu1 %v14580_v5  ;;  %12558 = vmatprep.subr.bf16.mxu0 %v14582_v22  ;;  %v18954_v9 = vadd.f32 %v9955_v46, %v9915_v8  ;;  %v10446_v46 = vmax.f32 %v18734_v45, 0.0  ;;  %v14630_v45 = vld [vmem:[%s19194_s5 + $0xd8] sm:$0xff]   ;;  %v14637_v32 = vld [vmem:[%s19194_s5 + $0x80] sm:$0xff]   ;;  %v14616_v22 = vld [vmem:[%s19194_s5 + $0x50] sm:$0xff]  }
 0x515   :  { %v9917_v23 = vpop.f32.mrf.mxu1  ;;  %12570 = vmatprep.subr.bf16.mxu1 %v14583_v41  ;;  %v14615_v5 = vld [vmem:[%s19194_s5 + $0x18] sm:$0xff]   ;;  %v14617_v8 = vld [vmem:[%s19194_s5 + $0x10] sm:$0xff]   ;;  %v14618_v20 = vld [vmem:[%s19194_s5 + $0x48] sm:$0xff]  }
 0x516   :  { %v10451_v29 = vpack.c.bf16 %v10446_v46, %v10446_v46 }
 0x517   :  { %10318 = vmatmul.mubr.bf16.vlgmr.msra.gmra.mxu1 %v17842_v1  ;;  %12559 = vmatpush3.bf16.msra.mxu0 %v14584_v6  ;;  %v14591_v1 = vld [vmem:[%s19192_s3 + $0xe98] ss:$20 sps:$4 sm:$0xff]  }
 0x518   :  { %12571 = vmatpush3.bf16.msra.mxu1 %v14585_v7  ;;  %10397 = vmatprep.mubr.bf16.mxu1 %v17890_v51  ;;  %v14593_v51 = vld [vmem:[%s19192_s3 + $0xd58] ss:$20 sps:$4 sm:$0xff]   ;;  %v14620_v7 = vld [vmem:[%s19194_s5 + $0x40] sm:$0xff]  }
 0x519   :  { %12560 = vmatprep.subr.bf16.mxu0 %v14586_v10  ;;  %12572 = vmatprep.subr.bf16.mxu1 %v14587_v36  ;;  %v14619_v6 = vld [vmem:[%s19194_s5 + $0x8] sm:$0xff]   ;;  %v14621_v36 = vld [vmem:[%s19194_s5] sm:$0xff]  }
 0x51b   :  { %12561 = vmatpush3.bf16.msra.mxu0 %v14588_v37  ;;  %v10445_v37 = vmax.f32 %v18731_v4, 0.0  ;;  %v14638_v4 = vld [vmem:[%s19194_s5 + $0x118] sm:$0xff]  }
 0x51c   :  { %12573 = vmatpush3.bf16.msra.mxu1 %v14589_v0  ;;  %12562 = vmatprep.subr.bf16.mxu0 %v14590_v13 }
 0x51d   :  { %12574 = vmatprep.subr.bf16.mxu1 %v14591_v1 }
 0x51f   :  { %12563 = vmatpush3.bf16.msra.mxu0 %v14592_v54 }
 0x520   :  { %12575 = vmatpush3.bf16.msra.mxu1 %v14593_v51  ;;  %12653 = vmatprep.subr.bf16.mxu0 %v14656_v19 }
 0x521   :  { %12576 = vmatprep.subr.bf16.mxu1 %v14594_v55  ;;  %v10450_v55 = vpack.c.bf16 %v10445_v37, %v10445_v37 }
 0x522   :  { %10358 = vmatmul.mubr.bf16.vlgmr.msra.gmra.mxu0 %v18061_v15  ;;  %v14622_v15 = vld [vmem:[%s19194_s5 + $0xf8] sm:$0xff]  }
 0x523   :  { %12654 = vmatpush3.bf16.msra.mxu0 %v14596_v34  ;;  %12657 = vmatprep.mubr.msk.bf16.mxu0 %vm14657_vm1, %v14656_v19 }
 0x524   :  { %12577 = vmatpush3.bf16.msra.mxu1 %v14595_v21  ;;  %12655 = vmatprep.subr.bf16.mxu0 %v14656_v19  ;;  %v14641_v21 = vld [vmem:[%s19194_s5 + $0x100] sm:$0xff]  }
 0x525   :  { %12578 = vmatprep.subr.bf16.mxu1 %v14597_v28 }
 0x527   :  { %12656 = vmatpush3.bf16.msra.mxu0 %v14599_v24 }
 0x528   :  { %12579 = vmatpush3.bf16.msra.mxu1 %v14598_v58  ;;  %12617 = vmatprep.subr.bf16.mxu0 %v14622_v15 }
 0x529   :  { %12580 = vmatprep.subr.bf16.mxu1 %v14600_v25 }
 0x52a   :  { %12658 = vmatmul.mubr.msk.bf16.vlgmr.msra.gmra.mxu0 %vm9587_vm0, %v18104_v59  ;;  %v14604_v59 = vld [vmem:[%s19192_s3 + $0xdd0] ss:$20 sps:$4 sm:$0xff]  }
 0x52b   :  { %12618 = vmatpush3.bf16.msra.mxu0 %v14623_v14 }
 0x52c   :  { %12581 = vmatpush3.bf16.msra.mxu1 %v14601_v47  ;;  %12619 = vmatprep.subr.bf16.mxu0 %v14624_v26 }
 0x52d   :  { %12582 = vmatprep.subr.bf16.mxu1 %v14602_v44 }
 0x52f   :  { %12620 = vmatpush3.bf16.msra.mxu0 %v14625_v33 }
 0x530   :  { %12583 = vmatpush3.bf16.msra.mxu1 %v14603_v50  ;;  %12621 = vmatprep.subr.bf16.mxu0 %v14626_v39 }
 0x531   :  { %12584 = vmatprep.subr.bf16.mxu1 %v14604_v59 }
 0x533   :  { %12622 = vmatpush3.bf16.msra.mxu0 %v14627_v42 }
 0x534   :  { %12585 = vmatpush3.bf16.msra.mxu1 %v14605_v2  ;;  %12623 = vmatprep.subr.bf16.mxu0 %v14628_v31 }
 0x535   :  { %12595 = vmatprep.subr.bf16.mxu1 %v14606_v38 }
 0x537   :  { %10398 = vmatmul.mubr.bf16.vlgmr.msra.gmra.mxu1 %v18066_v60  ;;  %12624 = vmatpush3.bf16.msra.mxu0 %v14629_v3  ;;  %v14610_v60 = vld [vmem:[%s19194_s5 + $0x68] sm:$0xff]  }
 0x538   :  { %12596 = vmatpush3.bf16.msra.mxu1 %v14607_v35  ;;  %10786 = vmatprep.mubr.bf16.mxu1 %v10451_v29 }
 0x539   :  { %12597 = vmatprep.subr.bf16.mxu1 %v14608_v27  ;;  %12625 = vmatprep.subr.bf16.mxu0 %v14630_v45 }
 0x53b   :  { %12626 = vmatpush3.bf16.msra.mxu0 %v14631_v18 }
 0x53c   :  { %12598 = vmatpush3.bf16.msra.mxu1 %v14609_v30  ;;  %12627 = vmatprep.subr.bf16.mxu0 %v14632_v48 }
 0x53d   :  { %12599 = vmatprep.subr.bf16.mxu1 %v14610_v60 }
 0x53f   :  { %12628 = vmatpush3.bf16.msra.mxu0 %v14633_v53 }
 0x540   :  { %12600 = vmatpush3.bf16.msra.mxu1 %v14611_v16  ;;  %12629 = vmatprep.subr.bf16.mxu0 %v14634_v56 }
 0x541   :  { %12601 = vmatprep.subr.bf16.mxu1 %v14612_v17 }
 0x542   :  { %v10035_v62 = vpop.f32.mrf.mxu0 }
 0x543   :  { %12630 = vmatpush3.bf16.msra.mxu0 %v14635_v43 }
 0x544   :  { %12602 = vmatpush3.bf16.msra.mxu1 %v14613_v12  ;;  %v10037_v57 = vpop.f32.mrf.mxu0  ;;  %12631 = vmatprep.subr.bf16.mxu0 %v14636_v11 }
 0x545   :  { %12603 = vmatprep.subr.bf16.mxu1 %v14614_v61 }
 0x546   :  { %v10039_v52 = vpop.f32.mrf.mxu0 }
 0x547   :  { %12632 = vmatpush3.bf16.msra.mxu0 %v14637_v32 }
 0x548   :  { %12604 = vmatpush3.bf16.msra.mxu1 %v14615_v5  ;;  %v10040_v41 = vpop.f32.mrf.mxu0  ;;  %12673 = vmatprep.subr.bf16.mxu0 %v14656_v19 }
 0x549   :  { %12605 = vmatprep.subr.bf16.mxu1 %v14616_v22 }
 0x54c   :  { %12606 = vmatpush3.bf16.msra.mxu1 %v14617_v8 }
 0x54d   :  { %12607 = vmatprep.subr.bf16.mxu1 %v14618_v20  ;;  %v14642_v20 = vld [vmem:[%s19195_s7 + $0x38] sm:$0xff]  }
 0x54f   :  { %v9994_v23 = vpop.f32.mrf.mxu1 }
 0x550   :  { %v9995_v10 = vadd.f32 %v9994_v23, %v18946_v63  ;;  %12608 = vmatpush3.bf16.msra.mxu1 %v14619_v6  ;;  %v14639_v63 = vld [vmem:[%s19194_s5 + $0x110] sm:$0xff]  }
 0x551   :  { %v9996_v0 = vpop.f32.mrf.mxu1  ;;  %12609 = vmatprep.subr.bf16.mxu1 %v14620_v7  ;;  %v14643_v7 = vld [vmem:[%s19195_s7 + $0x30] sm:$0xff]  }
 0x552   :  { %v9997_v13 = vadd.f32 %v9996_v0, %v18954_v9  ;;  %v10036_v1 = vadd.f32 %v10035_v62, %v9995_v10  ;;  %v14640_v9 = vld [vmem:[%s19194_s5 + $0x108] sm:$0xff]  }
 0x553   :  { %v9998_v54 = vpop.f32.mrf.mxu1  ;;  %v14644_v10 = vld [vmem:[%s19195_s7 + $0x28] sm:$0xff]  }
 0x554   :  { %12610 = vmatpush3.bf16.msra.mxu1 %v14621_v36  ;;  %v10038_v51 = vadd.f32 %v10037_v57, %v9997_v13  ;;  %v7033_v36 = vrot.slane %v18919_v40, %v16359_v49  ;;  %v14646_v49 = vld [vmem:[%s19195_s7 + $0x18] sm:$0xff]  }
 0x555   :  { %v9999_v34 = vpop.f32.mrf.mxu1  ;;  %12661 = vmatprep.subr.bf16.mxu1 %v14656_v19 }
 0x557   :  { %10787 = vmatmul.mubr.bf16.vlgmr.msra.gmra.mxu1 %v10450_v55 }
 0x558   :  { %12669 = vmatprep.mubr.msk.bf16.mxu1 %vm14657_vm1, %v14656_v19  ;;  %12662 = vmatpush3.bf16.msra.mxu1 %v14638_v4 }
 0x559   :  { %12663 = vmatprep.subr.bf16.mxu1 %v14656_v19 }
 0x55c   :  { %12664 = vmatpush3.bf16.msra.mxu1 %v14639_v63 }
 0x55d   :  { %12665 = vmatprep.subr.bf16.mxu1 %v14656_v19 }
 0x560   :  { %12666 = vmatpush3.bf16.msra.mxu1 %v14640_v9 }
 0x561   :  { %12667 = vmatprep.subr.bf16.mxu1 %v14656_v19 }
 0x564   :  { %12668 = vmatpush3.bf16.msra.mxu1 %v14641_v21 }
 0x582   :  { %v10117_v28 = vpop.f32.mrf.mxu0 }
 0x584   :  { %v10119_v24 = vpop.f32.mrf.mxu0 }
 0x586   :  { %v10121_v58 = vpop.f32.mrf.mxu0 }
 0x587   :  { %v14647_v58 = vld [vmem:[%s19195_s7 + $0x10] sm:$0xff]  }
 0x588   :  { %v10122_v15 = vpop.f32.mrf.mxu0 }
 0x58f   :  { %v10076_v25 = vpop.f32.mrf.mxu1 }
 0x590   :  { %v10077_v47 = vadd.f32 %v10076_v25, %v10036_v1 }
 0x591   :  { %v10078_v14 = vpop.f32.mrf.mxu1 }
 0x592   :  { %v10079_v44 = vadd.f32 %v10078_v14, %v10038_v51  ;;  %v10118_v50 = vadd.f32 %v10117_v28, %v10077_v47  ;;  %v14645_v51 = vld [vmem:[%s19195_s7 + $0x20] sm:$0xff]  }
 0x593   :  { %v10080_v26 = vpop.f32.mrf.mxu1 }
 0x594   :  { %v10120_v42 = vadd.f32 %v10119_v24, %v10079_v44 }
 0x595   :  { %v10081_v33 = vpop.f32.mrf.mxu1 }
 0x597   :  { %v10158_v39 = vpop.f32.mrf.mxu1 }
 0x598   :  { %v10159_v59 = vadd.f32 %v10158_v39, %v10118_v50 }
 0x599   :  { %v10160_v2 = vpop.f32.mrf.mxu1 }
 0x59a   :  { %v10161_v31 = vadd.f32 %v10160_v2, %v10120_v42  ;;  %v10447_v38 = vmax.f32 %v10159_v59, 0.0  ;;  %v14648_v2 = vld [vmem:[%s19195_s7 + $0x8] sm:$0xff]  }
 0x59b   :  { %v10162_v46 = vpop.f32.mrf.mxu1 }
 0x59c   :  { %v10448_v3 = vmax.f32 %v10161_v31, 0.0  ;;  %v10452_v45 = vpack.c.bf16 %v10447_v38, %v10447_v38  ;;  %v14649_v31 = vld [vmem:[%s19195_s7] sm:$0xff]  }
 0x59d   :  { %v10163_v35 = vpop.f32.mrf.mxu1  ;;  %v12325_v38 = vld [vmem:[%s19196_s6] ss:$0 sm:$0xff] }
 0x59e   :  { %v10453_v27 = vpack.c.bf16 %v10448_v3, %v10448_v3 }
 0x5a0   :  { %10826 = vmatprep.mubr.bf16.mxu0 %v10453_v27 }
 0x5a1   :  { %10827 = vmatmul.mubr.bf16.vlgmr.msra.gmra.mxu0 %v10452_v45 }
 0x5a2   :  { %v12476_v29 = vpop.f32.mrf.mxu0  ;;  %12689 = vmatprep.mubr.msk.bf16.mxu0 %vm14657_vm1, %v14656_v19  ;;  %12674 = vmatpush3.bf16.msra.mxu0 %v14642_v20 }
 0x5a3   :  { %12675 = vmatprep.subr.bf16.mxu0 %v14656_v19 }
 0x5a4   :  { %v12477_v18 = vpop.f32.mrf.mxu0 }
 0x5a5   :  { %v12478_v30 = vadd.f32 %v12477_v18, %v12476_v29 }
 0x5a6   :  { %v12479_v48 = vpop.f32.mrf.mxu0  ;;  %12676 = vmatpush3.bf16.msra.mxu0 %v14643_v7 }
 0x5a7   :  { %12677 = vmatprep.subr.bf16.mxu0 %v14656_v19  ;;  %v10200_v1 = vadd.f32 %v12478_v30, %v7033_v36 }
 0x5a8   :  { %v12480_v60 = vpop.f32.mrf.mxu0 }
 0x5aa   :  { %12678 = vmatpush3.bf16.msra.mxu0 %v14644_v10 }
 0x5ab   :  { %12679 = vmatprep.subr.bf16.mxu0 %v14656_v19 }
 0x5ae   :  { %12680 = vmatpush3.bf16.msra.mxu0 %v14645_v51 }
 0x5af   :  { %12681 = vmatprep.subr.bf16.mxu0 %v14656_v19 }
 0x5b2   :  { %12682 = vmatpush3.bf16.msra.mxu0 %v14646_v49 }
 0x5b3   :  { %12683 = vmatprep.subr.bf16.mxu0 %v14656_v19 }
 0x5b6   :  { %12684 = vmatpush3.bf16.msra.mxu0 %v14647_v58 }
 0x5b7   :  { %v12498_v53 = vpop.f32.mrf.mxu1  ;;  %12685 = vmatprep.subr.bf16.mxu0 %v14656_v19 }
 0x5b9   :  { %v12499_v16 = vpop.f32.mrf.mxu1 }
 0x5ba   :  { %v12500_v0 = vadd.f32 %v12499_v16, %v12498_v53  ;;  %12686 = vmatpush3.bf16.msra.mxu0 %v14648_v2 }
 0x5bb   :  { %v12501_v56 = vpop.f32.mrf.mxu1  ;;  %12687 = vmatprep.subr.bf16.mxu0 %v14656_v19 }
 0x5bc   :  { %v10240_v55 = vadd.f32 %v12500_v0, %v10200_v1 }
 0x5bd   :  { %v12502_v17 = vpop.f32.mrf.mxu1 }
 0x5be   :  { %12688 = vmatpush3.bf16.msra.mxu0 %v14649_v31  ;;  %v12363_v17 = vld [vmem:[%s19197_s8] ss:$0 sm:$0xff] }
 0x5c2   :  { %v12520_v43 = vpop.f32.mrf.mxu0 }
 0x5c4   :  { %v12521_v12 = vpop.f32.mrf.mxu0 }
 0x5c5   :  { %v12522_v54 = vadd.f32 %v12521_v12, %v12520_v43 }
 0x5c6   :  { %v12523_v11 = vpop.f32.mrf.mxu0 }
 0x5c7   :  { %v10280_v4 = vadd.f32 %v12522_v54, %v10240_v55 }
 0x5c8   :  { %v12524_v61 = vpop.f32.mrf.mxu0 }
 0x5d7   :  { %v12542_v62 = vpop.f32.mrf.mxu1 }
 0x5d9   :  { %v12543_v32 = vpop.f32.mrf.mxu1 }
 0x5da   :  { %v12544_v34 = vadd.f32 %v12543_v32, %v12542_v62 }
 0x5db   :  { %v12545_v57 = vpop.f32.mrf.mxu1 }
 0x5dc   :  { %v10320_v9 = vadd.f32 %v12544_v34, %v10280_v4 }
 0x5dd   :  { %v12546_v5 = vpop.f32.mrf.mxu1 }
 0x5e2   :  { %v12564_v22 = vpop.f32.mrf.mxu0 }
 0x5e4   :  { %v12565_v52 = vpop.f32.mrf.mxu0 }
 0x5e5   :  { %v12566_v63 = vadd.f32 %v12565_v52, %v12564_v22 }
 0x5e6   :  { %v12567_v41 = vpop.f32.mrf.mxu0 }
 0x5e7   :  { %v10360_v28 = vadd.f32 %v12566_v63, %v10320_v9 }
 0x5e8   :  { %v12568_v8 = vpop.f32.mrf.mxu0 }
 0x5ea   :  { %v10439_v6 = vpop.f32.mrf.mxu0 }
 0x5ec   :  { %v12659_v23 = vpop.f32.mrf.mxu0 }
 0x5ee   :  { %v10442_v37 = vpop.f32.mrf.mxu0 }
 0x5f0   :  { %v12660_v13 = vpop.f32.mrf.mxu0 }
 0x5f7   :  { %v12586_v40 = vpop.f32.mrf.mxu1 }
 0x5f9   :  { %v12587_v21 = vpop.f32.mrf.mxu1 }
 0x5fa   :  { %v12588_v24 = vadd.f32 %v12587_v21, %v12586_v40 }
 0x5fb   :  { %v12589_v15 = vpop.f32.mrf.mxu1 }
 0x5fc   :  { %v10400_v25 = vadd.f32 %v12588_v24, %v10360_v28 }
 0x5fd   :  { %v12590_v14 = vpop.f32.mrf.mxu1 }
 0x5fe   :  { %v10440_v47 = vadd.f32 %v10439_v6, %v10400_v25 }
 0x600   :  { %v10449_v26 = vmax.f32 %v10440_v47, 0.0 }
 0x602   :  { %v10454_v44 = vpack.c.bf16 %v10449_v26, %v10449_v26 }
 0x604   :  { %12670 = vmatmul.mubr.msk.bf16.vlgmr.msra.gmra.mxu1 %vm10750_vm2, %v10454_v44 }
 0x617   :  { %v12611_v33 = vpop.f32.mrf.mxu1 }
 0x619   :  { %v12612_v50 = vpop.f32.mrf.mxu1 }
 0x61a   :  { %v12613_v39 = vadd.f32 %v12612_v50, %v12611_v33 }
 0x61b   :  { %v12614_v59 = vpop.f32.mrf.mxu1 }
 0x61c   :  { %v10789_v35 = vadd.f32 %v12613_v39, %v12325_v38 }
 0x61d   :  { %v12615_v42 = vpop.f32.mrf.mxu1 }
 0x661   :  { %v12633_v46 = vpop.f32.mrf.mxu0 }
 0x663   :  { %v12634_v3 = vpop.f32.mrf.mxu0 }
 0x664   :  { %v12635_v27 = vadd.f32 %v12634_v3, %v12633_v46 }
 0x665   :  { %v12636_v45 = vpop.f32.mrf.mxu0 }
 0x666   :  { %v10829_v29 = vadd.f32 %v12635_v27, %v10789_v35 }
 0x667   :  { %v12637_v18 = vpop.f32.mrf.mxu0 }
 0x6c4   :  { %v10868_v30 = vpop.f32.mrf.mxu1 }
 0x6c5   :  { %v10869_v48 = vadd.f32 %v10868_v30, %v10829_v29 }
 0x6c6   :  { %v12671_v60 = vpop.f32.mrf.mxu1 }
 0x6c7   :  { %v10874_v19 = vmax.f32 %v10869_v48, 0.0 }
 0x6c8   :  { %v10871_v53 = vpop.f32.mrf.mxu1 }
 0x6c9   :  { %v10875_v16 = vpack.c.bf16 %v10874_v19, %v10874_v19 }
 0x6ca   :  { %v12672_v56 = vpop.f32.mrf.mxu1 }
 0x6cb   :  { %12690 = vmatmul.mubr.bf16.vlgmr.msra.gmra.mxu0 %v10875_v16 }
 0x78b   :  { %v10981_v43 = vpop.f32.mrf.mxu0 }
 0x78c   :  { %v10982_v12 = vadd.f32 %v12363_v17, %v10981_v43 }
 0x78d   :  { %v12691_v11 = vpop.f32.mrf.mxu0 }
 0x78e   :  { %10987 = vst [vmem:[%s19198_s9] sm:$0xff] %v10982_v12 }
 0x78f   :  { %v10984_v61 = vpop.f32.mrf.mxu0 }
 0x791   :  { %v12692_v62 = vpop.f32.mrf.mxu0 }

</bundles_post_ra>
